<compile_context>
chip_gen: v7x
topology: tpu7x:2x2x1
jax: 0.10.0
libtpu: 0.0.40
codegen_flags: <defaults>
</compile_context>

<pallas_src>
import math
import functools

import jax
import jax.numpy as jnp
from jax.experimental import pallas as pl
from jax.experimental.pallas import tpu as pltpu

NEG_INF = -1e30
LN_EPS = 1e-5
VMEM_LIMIT = 32 * 1024 * 1024


def _round_up(x, m):
    return ((x + m - 1) // m) * m


def _full_spec(arr):
    """Whole-array block, same block for every grid step (weights/biases)."""
    zero = (0,) * arr.ndim
    return pl.BlockSpec(arr.shape, lambda *_: zero)


# ---------------------------------------------------------------------------
# In-kernel helpers (traced inside Pallas kernel bodies)
# ---------------------------------------------------------------------------
def _layernorm(h, g, b, eps=LN_EPS):
    mean = jnp.mean(h, axis=-1, keepdims=True)
    c = h - mean
    var = jnp.mean(c * c, axis=-1, keepdims=True)
    return (c * jax.lax.rsqrt(var + eps)) * g + b


def _attn_heads(q, k, v, wo, bo, mask_add, n_heads):
    """Multi-head attention with all heads handled inside one grid step.

    q: [Tq, D], k/v: [Tk, D] (already projected), wo: [D, D], bo: [1, D],
    mask_add: [Tq, Tk] additive mask shared across heads.
    The head concat is folded into the output projection as a per-head
    accumulation (avoids in-kernel concatenation / 3-D reshapes).
    """
    _, D = q.shape
    dh = D // n_heads
    scale = 1.0 / math.sqrt(dh)
    acc = None
    for h in range(n_heads):
        lo, hi = h * dh, (h + 1) * dh
        qh = q[:, lo:hi]
        kh = k[:, lo:hi]
        vh = v[:, lo:hi]
        s = jnp.dot(qh, kh.T, preferred_element_type=jnp.float32) * scale + mask_add
        s = s - jnp.max(s, axis=-1, keepdims=True)
        p = jnp.exp(s)
        p = p * pl.reciprocal(jnp.sum(p, axis=-1, keepdims=True), approx=True)
        oh = jnp.dot(p, vh, preferred_element_type=jnp.float32)            # [Tq, dh]
        acc_h = jnp.dot(oh, wo[lo:hi, :], preferred_element_type=jnp.float32)
        acc = acc_h if acc is None else acc + acc_h
    return acc + bo


# ---------------------------------------------------------------------------
# Fused encoder layer kernel
# ---------------------------------------------------------------------------
def _enc_layer_kernel(src_len_ref, x_ref,
                      wqkv_ref, bqkv_ref, wo_ref, bo_ref,
                      ln1g_ref, ln1b_ref,
                      w1_ref, b1_ref, w2_ref, b2_ref,
                      ln2g_ref, ln2b_ref,
                      o_ref, *, n_heads):
    b = pl.program_id(0)
    x = x_ref[0]                                        # [S, D]
    S, D = x.shape

    # Key-padding mask built in-kernel (no [B*H, S, S] HBM tensor).
    slen = src_len_ref[b]
    kidx = jax.lax.broadcasted_iota(jnp.int32, (S, S), 1)
    mask_add = jnp.where(kidx >= slen, NEG_INF, 0.0).astype(jnp.float32)

    # Fused QKV projection.
    qkv = jnp.dot(x, wqkv_ref[...], preferred_element_type=jnp.float32) + bqkv_ref[...]
    a = _attn_heads(qkv[:, :D], qkv[:, D:2 * D], qkv[:, 2 * D:],
                    wo_ref[...], bo_ref[...], mask_add, n_heads)
    h = _layernorm(x + a, ln1g_ref[...], ln1b_ref[...])

    # Fused FFN (bias + ReLU + second matmul) with residual + LN epilogue.
    f = jnp.dot(h, w1_ref[...], preferred_element_type=jnp.float32) + b1_ref[...]
    f = jnp.maximum(f, 0.0)
    f = jnp.dot(f, w2_ref[...], preferred_element_type=jnp.float32) + b2_ref[...]
    o_ref[0] = _layernorm(h + f, ln2g_ref[...], ln2b_ref[...])


def encoder_layer(x, p, src_len, n_heads):
    B, S, D = x.shape
    sa = p["self"]
    ops = (sa["wqkv"], sa["bqkv"], sa["wo"], sa["bo"],
           p["ln1_g"], p["ln1_b"],
           p["w1"], p["b1"], p["w2"], p["b2"],
           p["ln2_g"], p["ln2_b"])
    grid_spec = pltpu.PrefetchScalarGridSpec(
        num_scalar_prefetch=1,
        grid=(B,),
        in_specs=[pl.BlockSpec((1, S, D), lambda b, *_: (b, 0, 0))]
                 + [_full_spec(o) for o in ops],
        out_specs=pl.BlockSpec((1, S, D), lambda b, *_: (b, 0, 0)),
    )
    return pl.pallas_call(
        functools.partial(_enc_layer_kernel, n_heads=n_heads),
        out_shape=jax.ShapeDtypeStruct((B, S, D), jnp.float32),
        grid_spec=grid_spec,
        compiler_params=pltpu.CompilerParams(
            dimension_semantics=("parallel",),
            vmem_limit_bytes=VMEM_LIMIT),
    )(src_len, x, *ops)


# ---------------------------------------------------------------------------
# Fused decoder layer kernel
# ---------------------------------------------------------------------------
def _dec_layer_kernel(src_len_ref, x_ref, mem_ref,
                      swqkv_ref, sbqkv_ref, swo_ref, sbo_ref,
                      ln1g_ref, ln1b_ref,
                      cwq_ref, cbq_ref, cwkv_ref, cbkv_ref, cwo_ref, cbo_ref,
                      ln2g_ref, ln2b_ref,
                      w1_ref, b1_ref, w2_ref, b2_ref,
                      ln3g_ref, ln3b_ref,
                      o_ref, *, n_heads):
    b = pl.program_id(0)
    x = x_ref[0]                                        # [T, D]
    mem = mem_ref[0]                                    # [S, D]
    T, D = x.shape
    S = mem.shape[0]

    # Causal self-attention mask (in-kernel).
    qidx = jax.lax.broadcasted_iota(jnp.int32, (T, T), 0)
    kidx = jax.lax.broadcasted_iota(jnp.int32, (T, T), 1)
    causal = jnp.where(kidx > qidx, NEG_INF, 0.0).astype(jnp.float32)

    qkv = jnp.dot(x, swqkv_ref[...], preferred_element_type=jnp.float32) + sbqkv_ref[...]
    a = _attn_heads(qkv[:, :D], qkv[:, D:2 * D], qkv[:, 2 * D:],
                    swo_ref[...], sbo_ref[...], causal, n_heads)
    h = _layernorm(x + a, ln1g_ref[...], ln1b_ref[...])

    # Cross-attention: memory key-padding mask from the SMEM-prefetched src_len.
    slen = src_len_ref[b]
    ckidx = jax.lax.broadcasted_iota(jnp.int32, (T, S), 1)
    cmask = jnp.where(ckidx >= slen, NEG_INF, 0.0).astype(jnp.float32)

    q = jnp.dot(h, cwq_ref[...], preferred_element_type=jnp.float32) + cbq_ref[...]
    kv = jnp.dot(mem, cwkv_ref[...], preferred_element_type=jnp.float32) + cbkv_ref[...]
    c = _attn_heads(q, kv[:, :D], kv[:, D:], cwo_ref[...], cbo_ref[...], cmask, n_heads)
    h2 = _layernorm(h + c, ln2g_ref[...], ln2b_ref[...])

    f = jnp.dot(h2, w1_ref[...], preferred_element_type=jnp.float32) + b1_ref[...]
    f = jnp.maximum(f, 0.0)
    f = jnp.dot(f, w2_ref[...], preferred_element_type=jnp.float32) + b2_ref[...]
    o_ref[0] = _layernorm(h2 + f, ln3g_ref[...], ln3b_ref[...])


def decoder_layer(x, memory, p, src_len, n_heads):
    B, T, D = x.shape
    S = memory.shape[1]
    sa, ca = p["self"], p["cross"]
    ops = (sa["wqkv"], sa["bqkv"], sa["wo"], sa["bo"],
           p["ln1_g"], p["ln1_b"],
           ca["wq"], ca["bq"], ca["wkv"], ca["bkv"], ca["wo"], ca["bo"],
           p["ln2_g"], p["ln2_b"],
           p["w1"], p["b1"], p["w2"], p["b2"],
           p["ln3_g"], p["ln3_b"])
    grid_spec = pltpu.PrefetchScalarGridSpec(
        num_scalar_prefetch=1,
        grid=(B,),
        in_specs=[pl.BlockSpec((1, T, D), lambda b, *_: (b, 0, 0)),
                  pl.BlockSpec((1, S, D), lambda b, *_: (b, 0, 0))]
                 + [_full_spec(o) for o in ops],
        out_specs=pl.BlockSpec((1, T, D), lambda b, *_: (b, 0, 0)),
    )
    return pl.pallas_call(
        functools.partial(_dec_layer_kernel, n_heads=n_heads),
        out_shape=jax.ShapeDtypeStruct((B, T, D), jnp.float32),
        grid_spec=grid_spec,
        compiler_params=pltpu.CompilerParams(
            dimension_semantics=("parallel",),
            vmem_limit_bytes=VMEM_LIMIT),
    )(src_len, x, memory, *ops)


# ---------------------------------------------------------------------------
# Tiled linear (used for the final output map), lane-dense N via padding
# ---------------------------------------------------------------------------
def _linear_kernel(x_ref, w_ref, b_ref, o_ref, acc_ref, *, activation):
    @pl.when(pl.program_id(2) == 0)
    def _():
        acc_ref[...] = jnp.zeros_like(acc_ref)

    acc_ref[...] += jnp.dot(x_ref[...], w_ref[...],
                            preferred_element_type=jnp.float32)

    @pl.when(pl.program_id(2) == pl.num_programs(2) - 1)
    def _():
        r = acc_ref[...] + b_ref[...]
        if activation == "relu":
            r = jnp.maximum(r, 0.0)
        o_ref[...] = r.astype(o_ref.dtype)


def linear(x, w, b, activation=None, tm=256, tn=256, tk=512):
    """Tiled x @ w + b.  x: [M, K], w: [K, N], b: [N] or [1, N]  ->  [M, N]."""
    M, K = x.shape
    N = w.shape[1]
    tm = min(tm, _round_up(M, 8))
    tn = min(tn, _round_up(N, 128))
    tk = min(tk, _round_up(K, 128))
    Mp, Kp, Np = _round_up(M, tm), _round_up(K, tk), _round_up(N, tn)
    xp = jnp.pad(x, ((0, Mp - M), (0, Kp - K)))
    wp = jnp.pad(w, ((0, Kp - K), (0, Np - N)))
    bp = jnp.pad(jnp.reshape(b, (1, -1)), ((0, 0), (0, Np - N)))
    out = pl.pallas_call(
        functools.partial(_linear_kernel, activation=activation),
        out_shape=jax.ShapeDtypeStruct((Mp, Np), jnp.float32),
        grid=(Mp // tm, Np // tn, Kp // tk),
        in_specs=[pl.BlockSpec((tm, tk), lambda i, j, k: (i, k)),
                  pl.BlockSpec((tk, tn), lambda i, j, k: (k, j)),
                  pl.BlockSpec((1, tn), lambda i, j, k: (0, j))],
        out_specs=pl.BlockSpec((tm, tn), lambda i, j, k: (i, j)),
        scratch_shapes=[pltpu.VMEM((tm, tn), jnp.float32)],
        compiler_params=pltpu.CompilerParams(
            dimension_semantics=("parallel", "parallel", "arbitrary"),
            vmem_limit_bytes=VMEM_LIMIT),
    )(xp, wp, bp)
    return out[:M, :N]


# ---------------------------------------------------------------------------
# Full model: TransformerEncDecModel.forward(teacher_forcing=True)
# ---------------------------------------------------------------------------
def make_pos_encoding(max_len, d_model):
    pos = jnp.arange(max_len, dtype=jnp.float32)[:, None]
    div = jnp.exp(jnp.arange(0, d_model, 2, dtype=jnp.float32)
                  * (-math.log(10000.0) / d_model))
    pe = jnp.zeros((max_len, d_model), jnp.float32)
    pe = pe.at[:, 0::2].set(jnp.sin(pos * div))
    pe = pe.at[:, 1::2].set(jnp.cos(pos * div))
    return pe


def transformer_enc_dec_forward(params, src, src_len, target, target_len, cfg):
    B, S = src.shape
    T = target.shape[1]
    H = cfg["n_heads"]

    # encoder SOS prepend (encoder_sos=True path)
    sos = jnp.full((B, 1), cfg["encoder_sos_token"], dtype=src.dtype)
    src = jnp.concatenate([sos, src], axis=1)
    src_len = (src_len + 1).astype(jnp.int32)
    S1 = S + 1

    # embeddings + positional encoding (scale_mode='none', scale=1.0);
    # token gathers stay in XLA (no small-gather Pallas equivalent needed here).
    src_e = jnp.take(params["input_embedding"], src, axis=0) + params["pe"][:S1][None]
    dec_sos = jnp.full((B, 1), cfg["decoder_sos_eos"], dtype=target.dtype)
    tgt_in = jnp.concatenate([dec_sos, target[:, :-1]], axis=1)
    tgt_e = jnp.take(params["output_embedding"], tgt_in, axis=0) + params["pe"][:T][None]

    # encoder (1 fused pallas_call per layer)
    mem = src_e
    for p in params["enc"]:
        mem = encoder_layer(mem, p, src_len, H)

    # decoder (1 fused pallas_call per layer)
    x = tgt_e
    for p in params["dec"]:
        x = decoder_layer(x, mem, p, src_len, H)

    # output map: Linear(state_size_decoder, n_out_tokens + 1), lane-padded
    D = x.shape[-1]
    logits = linear(x.reshape(B * T, D), params["out_map_w"], params["out_map_b"])
    logits = logits.reshape(B, T, cfg["n_out_tokens"] + 1)

    # TransformerResult.create(data, length)
    return {"data": logits, "length": target_len}


# ---------------------------------------------------------------------------
# Deterministic parameter construction
# ---------------------------------------------------------------------------
def init_params(key, cfg):
    D = cfg["state_size"]
    F = cfg["ff"]
    keys = iter(jax.random.split(key, 512))

    def xavier(shape):
        limit = math.sqrt(6.0 / (shape[0] + shape[1]))
        return jax.random.uniform(next(keys), shape, jnp.float32, -limit, limit)

    def zeros(shape):
        return jnp.zeros(shape, jnp.float32)

    def ones(shape):
        return jnp.ones(shape, jnp.float32)

    def mha_self():
        return dict(
            wqkv=jnp.concatenate([xavier((D, D)), xavier((D, D)), xavier((D, D))],
                                 axis=1),
            bqkv=zeros((1, 3 * D)),
            wo=xavier((D, D)), bo=zeros((1, D)))

    def mha_cross():
        return dict(
            wq=xavier((D, D)), bq=zeros((1, D)),
            wkv=jnp.concatenate([xavier((D, D)), xavier((D, D))], axis=1),
            bkv=zeros((1, 2 * D)),
            wo=xavier((D, D)), bo=zeros((1, D)))

    enc = []
    for _ in range(cfg["n_enc_layers"]):
        enc.append(dict(self=mha_self(),
                        w1=xavier((D, F)), b1=zeros((1, F)),
                        w2=xavier((F, D)), b2=zeros((1, D)),
                        ln1_g=ones((1, D)), ln1_b=zeros((1, D)),
                        ln2_g=ones((1, D)), ln2_b=zeros((1, D))))
    dec = []
    for _ in range(cfg["n_dec_layers"]):
        dec.append(dict(self=mha_self(), cross=mha_cross(),
                        w1=xavier((D, F)), b1=zeros((1, F)),
                        w2=xavier((F, D)), b2=zeros((1, D)),
                        ln1_g=ones((1, D)), ln1_b=zeros((1, D)),
                        ln2_g=ones((1, D)), ln2_b=zeros((1, D)),
                        ln3_g=ones((1, D)), ln3_b=zeros((1, D))))

    n_in_vocab = cfg["n_input_tokens"] + 2   # +EOS, +SOS (encoder_sos=True)
    n_out_vocab = cfg["n_out_tokens"] + 1    # +SOS/EOS

    return dict(
        input_embedding=jax.random.normal(next(keys), (n_in_vocab, D), jnp.float32),
        output_embedding=jax.random.normal(next(keys), (n_out_vocab, D), jnp.float32),
        out_map_w=xavier((D, n_out_vocab)),
        out_map_b=zeros((n_out_vocab,)),
        pe=make_pos_encoding(cfg["max_len"], D),
        enc=enc, dec=dec)


# ---------------------------------------------------------------------------
if __name__ == "__main__":
    cfg = dict(
        n_input_tokens=10, n_out_tokens=10,
        state_size=32, n_heads=4, ff=128,
        n_enc_layers=2, n_dec_layers=2,
        max_len=64,
        encoder_sos_token=10 + 1,      # n_input_tokens + 1
        decoder_sos_eos=10,            # n_out_tokens
    )

    key = jax.random.PRNGKey(0)
    pkey, skey, tkey = jax.random.split(key, 3)
    params = init_params(pkey, cfg)

    B, S, T = 2, 8, 8
    src = jax.random.randint(skey, (B, S), 0, cfg["n_input_tokens"], dtype=jnp.int32)
    target = jax.random.randint(tkey, (B, T), 0, cfg["n_out_tokens"], dtype=jnp.int32)
    src_len = jnp.array([8, 5], dtype=jnp.int32)
    target_len = jnp.array([8, 6], dtype=jnp.int32)

    fwd = jax.jit(functools.partial(transformer_enc_dec_forward, cfg=cfg))
    out = fwd(params, src, src_len, target, target_len)
    jax.block_until_ready(out)

    assert out["data"].shape == (B, T, cfg["n_out_tokens"] + 1)
    assert out["length"].shape == (B,)
    assert bool(jnp.all(jnp.isfinite(out["data"])))
    print("KERNEL_OK")
</pallas_src>

<mosaic_0001>
module attributes {stable_mosaic.version = 11 : i64} {
  func.func @_enc_layer_kernel(%arg0: i32, %arg1: memref<2xi32, #tpu.memory_space<smem>>, %arg2: memref<1x9x32xf32, #tpu.memory_space<vmem>>, %arg3: memref<32x96xf32, #tpu.memory_space<vmem>>, %arg4: memref<1x96xf32, #tpu.memory_space<vmem>>, %arg5: memref<32x32xf32, #tpu.memory_space<vmem>>, %arg6: memref<1x32xf32, #tpu.memory_space<vmem>>, %arg7: memref<1x32xf32, #tpu.memory_space<vmem>>, %arg8: memref<1x32xf32, #tpu.memory_space<vmem>>, %arg9: memref<32x128xf32, #tpu.memory_space<vmem>>, %arg10: memref<1x128xf32, #tpu.memory_space<vmem>>, %arg11: memref<128x32xf32, #tpu.memory_space<vmem>>, %arg12: memref<1x32xf32, #tpu.memory_space<vmem>>, %arg13: memref<1x32xf32, #tpu.memory_space<vmem>>, %arg14: memref<1x32xf32, #tpu.memory_space<vmem>>, %arg15: memref<1x9x32xf32, #tpu.memory_space<vmem>>) attributes {dimension_semantics = [#tpu.dimension_semantics<parallel>], iteration_bounds = array<i64: 2>, scalar_prefetch = 1 : i64, scratch_operands = 0 : i64, tpu.core_type = #tpu.core_type<tc>, window_params = [{transform_indices = @transform_0, window_bounds = array<i64: 1, 9, 32>}, {pipeline_mode = #tpu.pipeline_mode<synchronous>, transform_indices = @transform_1, window_bounds = array<i64: 32, 96>}, {pipeline_mode = #tpu.pipeline_mode<synchronous>, transform_indices = @transform_2, window_bounds = array<i64: 1, 96>}, {pipeline_mode = #tpu.pipeline_mode<synchronous>, transform_indices = @transform_3, window_bounds = array<i64: 32, 32>}, {pipeline_mode = #tpu.pipeline_mode<synchronous>, transform_indices = @transform_4, window_bounds = array<i64: 1, 32>}, {pipeline_mode = #tpu.pipeline_mode<synchronous>, transform_indices = @transform_5, window_bounds = array<i64: 1, 32>}, {pipeline_mode = #tpu.pipeline_mode<synchronous>, transform_indices = @transform_6, window_bounds = array<i64: 1, 32>}, {pipeline_mode = #tpu.pipeline_mode<synchronous>, transform_indices = @transform_7, window_bounds = array<i64: 32, 128>}, {pipeline_mode = #tpu.pipeline_mode<synchronous>, transform_indices = @transform_8, window_bounds = array<i64: 1, 128>}, {pipeline_mode = #tpu.pipeline_mode<synchronous>, transform_indices = @transform_9, window_bounds = array<i64: 128, 32>}, {pipeline_mode = #tpu.pipeline_mode<synchronous>, transform_indices = @transform_10, window_bounds = array<i64: 1, 32>}, {pipeline_mode = #tpu.pipeline_mode<synchronous>, transform_indices = @transform_11, window_bounds = array<i64: 1, 32>}, {pipeline_mode = #tpu.pipeline_mode<synchronous>, transform_indices = @transform_12, window_bounds = array<i64: 1, 32>}, {transform_indices = @transform_13, window_bounds = array<i64: 1, 9, 32>}]} {
    %c0 = arith.constant 0 : index
    %c0_0 = arith.constant 0 : index
    %c0_1 = arith.constant 0 : index
    %0 = vector.load %arg2[%c0, %c0_0, %c0_1] : memref<1x9x32xf32, #tpu.memory_space<vmem>>, vector<1x9x32xf32>
    %1 = vector.shape_cast %0 : vector<1x9x32xf32> to vector<9x32xf32>
    %2 = arith.index_cast %arg0 : i32 to index
    %3 = memref.load %arg1[%2] : memref<2xi32, #tpu.memory_space<smem>>
    %4 = tpu.iota {dimensions = array<i32: 1>} : vector<9x9xi32>
    %5 = vector.broadcast %3 : i32 to vector<9x9xi32>
    %6 = arith.cmpi sge, %4, %5 : vector<9x9xi32>
    %cst = arith.constant -1.000000e+30 : f32
    %cst_2 = arith.constant 0.000000e+00 : f32
    %7 = vector.broadcast %cst : f32 to vector<9x9xf32>
    %8 = vector.broadcast %cst_2 : f32 to vector<9x9xf32>
    %9 = arith.select %6, %7, %8 : vector<9x9xi1>, vector<9x9xf32>
    %c0_3 = arith.constant 0 : index
    %c0_4 = arith.constant 0 : index
    %10 = vector.load %arg3[%c0_3, %c0_4] : memref<32x96xf32, #tpu.memory_space<vmem>>, vector<32x96xf32>
    %cst_5 = arith.constant dense<0.000000e+00> : vector<9x96xf32>
    %11 = tpu.matmul %1, %10, %cst_5 {dimension_numbers = #tpu.dot_dimension_numbers<[1], [0], [0], [1], [0, 0, 1, 1], [], []>} : vector<9x32xf32>, vector<32x96xf32>, vector<9x96xf32> -> vector<9x96xf32>
    %c0_6 = arith.constant 0 : index
    %c0_7 = arith.constant 0 : index
    %12 = vector.load %arg4[%c0_6, %c0_7] : memref<1x96xf32, #tpu.memory_space<vmem>>, vector<1x96xf32>
    %13 = vector.broadcast %12 : vector<1x96xf32> to vector<9x96xf32>
    %14 = arith.addf %11, %13 : vector<9x96xf32>
    %15 = vector.extract_strided_slice %14 {offsets = [0, 0], sizes = [9, 32], strides = [1, 1]} : vector<9x96xf32> to vector<9x32xf32>
    %16 = vector.extract_strided_slice %14 {offsets = [0, 32], sizes = [9, 32], strides = [1, 1]} : vector<9x96xf32> to vector<9x32xf32>
    %17 = vector.extract_strided_slice %14 {offsets = [0, 64], sizes = [9, 32], strides = [1, 1]} : vector<9x96xf32> to vector<9x32xf32>
    %c0_8 = arith.constant 0 : index
    %c0_9 = arith.constant 0 : index
    %18 = vector.load %arg5[%c0_8, %c0_9] : memref<32x32xf32, #tpu.memory_space<vmem>>, vector<32x32xf32>
    %c0_10 = arith.constant 0 : index
    %c0_11 = arith.constant 0 : index
    %19 = vector.load %arg6[%c0_10, %c0_11] : memref<1x32xf32, #tpu.memory_space<vmem>>, vector<1x32xf32>
    %20 = vector.extract_strided_slice %15 {offsets = [0, 0], sizes = [9, 8], strides = [1, 1]} : vector<9x32xf32> to vector<9x8xf32>
    %21 = vector.extract_strided_slice %16 {offsets = [0, 0], sizes = [9, 8], strides = [1, 1]} : vector<9x32xf32> to vector<9x8xf32>
    %22 = vector.extract_strided_slice %17 {offsets = [0, 0], sizes = [9, 8], strides = [1, 1]} : vector<9x32xf32> to vector<9x8xf32>
    %23 = tpu.transpose %21, [1, 0] : vector<9x8xf32> -> vector<8x9xf32>
    %cst_12 = arith.constant dense<0.000000e+00> : vector<9x9xf32>
    %24 = tpu.matmul %20, %23, %cst_12 {dimension_numbers = #tpu.dot_dimension_numbers<[1], [0], [0], [1], [0, 0, 1, 1], [], []>} : vector<9x8xf32>, vector<8x9xf32>, vector<9x9xf32> -> vector<9x9xf32>
    %cst_13 = arith.constant 0.353553385 : f32
    %25 = vector.broadcast %cst_13 : f32 to vector<9x9xf32>
    %26 = arith.mulf %24, %25 : vector<9x9xf32>
    %27 = arith.addf %26, %9 : vector<9x9xf32>
    %cst_14 = arith.constant dense<0xFF800000> : vector<9xf32>
    %28 = vector.multi_reduction <maximumf>, %27, %cst_14 [1] : vector<9x9xf32> to vector<9xf32>
    %29 = vector.shape_cast %28 : vector<9xf32> to vector<9x1xf32>
    %30 = vector.broadcast %29 : vector<9x1xf32> to vector<9x9xf32>
    %31 = arith.subf %27, %30 : vector<9x9xf32>
    %32 = math.exp %31 : vector<9x9xf32>
    %cst_15 = arith.constant dense<0.000000e+00> : vector<9xf32>
    %33 = vector.multi_reduction <add>, %32, %cst_15 [1] : vector<9x9xf32> to vector<9xf32>
    %34 = vector.shape_cast %33 : vector<9xf32> to vector<9x1xf32>
    %35 = tpu.reciprocal %34 {approx = true} : vector<9x1xf32> -> vector<9x1xf32>
    %36 = vector.broadcast %35 : vector<9x1xf32> to vector<9x9xf32>
    %37 = arith.mulf %32, %36 : vector<9x9xf32>
    %cst_16 = arith.constant dense<0.000000e+00> : vector<9x8xf32>
    %38 = tpu.matmul %37, %22, %cst_16 {dimension_numbers = #tpu.dot_dimension_numbers<[1], [0], [0], [1], [0, 0, 1, 1], [], []>} : vector<9x9xf32>, vector<9x8xf32>, vector<9x8xf32> -> vector<9x8xf32>
    %39 = vector.extract_strided_slice %18 {offsets = [0, 0], sizes = [8, 32], strides = [1, 1]} : vector<32x32xf32> to vector<8x32xf32>
    %cst_17 = arith.constant dense<0.000000e+00> : vector<9x32xf32>
    %40 = tpu.matmul %38, %39, %cst_17 {dimension_numbers = #tpu.dot_dimension_numbers<[1], [0], [0], [1], [0, 0, 1, 1], [], []>} : vector<9x8xf32>, vector<8x32xf32>, vector<9x32xf32> -> vector<9x32xf32>
    %41 = vector.extract_strided_slice %15 {offsets = [0, 8], sizes = [9, 8], strides = [1, 1]} : vector<9x32xf32> to vector<9x8xf32>
    %42 = vector.extract_strided_slice %16 {offsets = [0, 8], sizes = [9, 8], strides = [1, 1]} : vector<9x32xf32> to vector<9x8xf32>
    %43 = vector.extract_strided_slice %17 {offsets = [0, 8], sizes = [9, 8], strides = [1, 1]} : vector<9x32xf32> to vector<9x8xf32>
    %44 = tpu.transpose %42, [1, 0] : vector<9x8xf32> -> vector<8x9xf32>
    %cst_18 = arith.constant dense<0.000000e+00> : vector<9x9xf32>
    %45 = tpu.matmul %41, %44, %cst_18 {dimension_numbers = #tpu.dot_dimension_numbers<[1], [0], [0], [1], [0, 0, 1, 1], [], []>} : vector<9x8xf32>, vector<8x9xf32>, vector<9x9xf32> -> vector<9x9xf32>
    %cst_19 = arith.constant 0.353553385 : f32
    %46 = vector.broadcast %cst_19 : f32 to vector<9x9xf32>
    %47 = arith.mulf %45, %46 : vector<9x9xf32>
    %48 = arith.addf %47, %9 : vector<9x9xf32>
    %cst_20 = arith.constant dense<0xFF800000> : vector<9xf32>
    %49 = vector.multi_reduction <maximumf>, %48, %cst_20 [1] : vector<9x9xf32> to vector<9xf32>
    %50 = vector.shape_cast %49 : vector<9xf32> to vector<9x1xf32>
    %51 = vector.broadcast %50 : vector<9x1xf32> to vector<9x9xf32>
    %52 = arith.subf %48, %51 : vector<9x9xf32>
    %53 = math.exp %52 : vector<9x9xf32>
    %cst_21 = arith.constant dense<0.000000e+00> : vector<9xf32>
    %54 = vector.multi_reduction <add>, %53, %cst_21 [1] : vector<9x9xf32> to vector<9xf32>
    %55 = vector.shape_cast %54 : vector<9xf32> to vector<9x1xf32>
    %56 = tpu.reciprocal %55 {approx = true} : vector<9x1xf32> -> vector<9x1xf32>
    %57 = vector.broadcast %56 : vector<9x1xf32> to vector<9x9xf32>
    %58 = arith.mulf %53, %57 : vector<9x9xf32>
    %cst_22 = arith.constant dense<0.000000e+00> : vector<9x8xf32>
    %59 = tpu.matmul %58, %43, %cst_22 {dimension_numbers = #tpu.dot_dimension_numbers<[1], [0], [0], [1], [0, 0, 1, 1], [], []>} : vector<9x9xf32>, vector<9x8xf32>, vector<9x8xf32> -> vector<9x8xf32>
    %60 = vector.extract_strided_slice %18 {offsets = [8, 0], sizes = [8, 32], strides = [1, 1]} : vector<32x32xf32> to vector<8x32xf32>
    %cst_23 = arith.constant dense<0.000000e+00> : vector<9x32xf32>
    %61 = tpu.matmul %59, %60, %cst_23 {dimension_numbers = #tpu.dot_dimension_numbers<[1], [0], [0], [1], [0, 0, 1, 1], [], []>} : vector<9x8xf32>, vector<8x32xf32>, vector<9x32xf32> -> vector<9x32xf32>
    %62 = arith.addf %40, %61 : vector<9x32xf32>
    %63 = vector.extract_strided_slice %15 {offsets = [0, 16], sizes = [9, 8], strides = [1, 1]} : vector<9x32xf32> to vector<9x8xf32>
    %64 = vector.extract_strided_slice %16 {offsets = [0, 16], sizes = [9, 8], strides = [1, 1]} : vector<9x32xf32> to vector<9x8xf32>
    %65 = vector.extract_strided_slice %17 {offsets = [0, 16], sizes = [9, 8], strides = [1, 1]} : vector<9x32xf32> to vector<9x8xf32>
    %66 = tpu.transpose %64, [1, 0] : vector<9x8xf32> -> vector<8x9xf32>
    %cst_24 = arith.constant dense<0.000000e+00> : vector<9x9xf32>
    %67 = tpu.matmul %63, %66, %cst_24 {dimension_numbers = #tpu.dot_dimension_numbers<[1], [0], [0], [1], [0, 0, 1, 1], [], []>} : vector<9x8xf32>, vector<8x9xf32>, vector<9x9xf32> -> vector<9x9xf32>
    %cst_25 = arith.constant 0.353553385 : f32
    %68 = vector.broadcast %cst_25 : f32 to vector<9x9xf32>
    %69 = arith.mulf %67, %68 : vector<9x9xf32>
    %70 = arith.addf %69, %9 : vector<9x9xf32>
    %cst_26 = arith.constant dense<0xFF800000> : vector<9xf32>
    %71 = vector.multi_reduction <maximumf>, %70, %cst_26 [1] : vector<9x9xf32> to vector<9xf32>
    %72 = vector.shape_cast %71 : vector<9xf32> to vector<9x1xf32>
    %73 = vector.broadcast %72 : vector<9x1xf32> to vector<9x9xf32>
    %74 = arith.subf %70, %73 : vector<9x9xf32>
    %75 = math.exp %74 : vector<9x9xf32>
    %cst_27 = arith.constant dense<0.000000e+00> : vector<9xf32>
    %76 = vector.multi_reduction <add>, %75, %cst_27 [1] : vector<9x9xf32> to vector<9xf32>
    %77 = vector.shape_cast %76 : vector<9xf32> to vector<9x1xf32>
    %78 = tpu.reciprocal %77 {approx = true} : vector<9x1xf32> -> vector<9x1xf32>
    %79 = vector.broadcast %78 : vector<9x1xf32> to vector<9x9xf32>
    %80 = arith.mulf %75, %79 : vector<9x9xf32>
    %cst_28 = arith.constant dense<0.000000e+00> : vector<9x8xf32>
    %81 = tpu.matmul %80, %65, %cst_28 {dimension_numbers = #tpu.dot_dimension_numbers<[1], [0], [0], [1], [0, 0, 1, 1], [], []>} : vector<9x9xf32>, vector<9x8xf32>, vector<9x8xf32> -> vector<9x8xf32>
    %82 = vector.extract_strided_slice %18 {offsets = [16, 0], sizes = [8, 32], strides = [1, 1]} : vector<32x32xf32> to vector<8x32xf32>
    %cst_29 = arith.constant dense<0.000000e+00> : vector<9x32xf32>
    %83 = tpu.matmul %81, %82, %cst_29 {dimension_numbers = #tpu.dot_dimension_numbers<[1], [0], [0], [1], [0, 0, 1, 1], [], []>} : vector<9x8xf32>, vector<8x32xf32>, vector<9x32xf32> -> vector<9x32xf32>
    %84 = arith.addf %62, %83 : vector<9x32xf32>
    %85 = vector.extract_strided_slice %15 {offsets = [0, 24], sizes = [9, 8], strides = [1, 1]} : vector<9x32xf32> to vector<9x8xf32>
    %86 = vector.extract_strided_slice %16 {offsets = [0, 24], sizes = [9, 8], strides = [1, 1]} : vector<9x32xf32> to vector<9x8xf32>
    %87 = vector.extract_strided_slice %17 {offsets = [0, 24], sizes = [9, 8], strides = [1, 1]} : vector<9x32xf32> to vector<9x8xf32>
    %88 = tpu.transpose %86, [1, 0] : vector<9x8xf32> -> vector<8x9xf32>
    %cst_30 = arith.constant dense<0.000000e+00> : vector<9x9xf32>
    %89 = tpu.matmul %85, %88, %cst_30 {dimension_numbers = #tpu.dot_dimension_numbers<[1], [0], [0], [1], [0, 0, 1, 1], [], []>} : vector<9x8xf32>, vector<8x9xf32>, vector<9x9xf32> -> vector<9x9xf32>
    %cst_31 = arith.constant 0.353553385 : f32
    %90 = vector.broadcast %cst_31 : f32 to vector<9x9xf32>
    %91 = arith.mulf %89, %90 : vector<9x9xf32>
    %92 = arith.addf %91, %9 : vector<9x9xf32>
    %cst_32 = arith.constant dense<0xFF800000> : vector<9xf32>
    %93 = vector.multi_reduction <maximumf>, %92, %cst_32 [1] : vector<9x9xf32> to vector<9xf32>
    %94 = vector.shape_cast %93 : vector<9xf32> to vector<9x1xf32>
    %95 = vector.broadcast %94 : vector<9x1xf32> to vector<9x9xf32>
    %96 = arith.subf %92, %95 : vector<9x9xf32>
    %97 = math.exp %96 : vector<9x9xf32>
    %cst_33 = arith.constant dense<0.000000e+00> : vector<9xf32>
    %98 = vector.multi_reduction <add>, %97, %cst_33 [1] : vector<9x9xf32> to vector<9xf32>
    %99 = vector.shape_cast %98 : vector<9xf32> to vector<9x1xf32>
    %100 = tpu.reciprocal %99 {approx = true} : vector<9x1xf32> -> vector<9x1xf32>
    %101 = vector.broadcast %100 : vector<9x1xf32> to vector<9x9xf32>
    %102 = arith.mulf %97, %101 : vector<9x9xf32>
    %cst_34 = arith.constant dense<0.000000e+00> : vector<9x8xf32>
    %103 = tpu.matmul %102, %87, %cst_34 {dimension_numbers = #tpu.dot_dimension_numbers<[1], [0], [0], [1], [0, 0, 1, 1], [], []>} : vector<9x9xf32>, vector<9x8xf32>, vector<9x8xf32> -> vector<9x8xf32>
    %104 = vector.extract_strided_slice %18 {offsets = [24, 0], sizes = [8, 32], strides = [1, 1]} : vector<32x32xf32> to vector<8x32xf32>
    %cst_35 = arith.constant dense<0.000000e+00> : vector<9x32xf32>
    %105 = tpu.matmul %103, %104, %cst_35 {dimension_numbers = #tpu.dot_dimension_numbers<[1], [0], [0], [1], [0, 0, 1, 1], [], []>} : vector<9x8xf32>, vector<8x32xf32>, vector<9x32xf32> -> vector<9x32xf32>
    %106 = arith.addf %84, %105 : vector<9x32xf32>
    %107 = vector.broadcast %19 : vector<1x32xf32> to vector<9x32xf32>
    %108 = arith.addf %106, %107 : vector<9x32xf32>
    %109 = arith.addf %1, %108 : vector<9x32xf32>
    %c0_36 = arith.constant 0 : index
    %c0_37 = arith.constant 0 : index
    %110 = vector.load %arg7[%c0_36, %c0_37] : memref<1x32xf32, #tpu.memory_space<vmem>>, vector<1x32xf32>
    %c0_38 = arith.constant 0 : index
    %c0_39 = arith.constant 0 : index
    %111 = vector.load %arg8[%c0_38, %c0_39] : memref<1x32xf32, #tpu.memory_space<vmem>>, vector<1x32xf32>
    %cst_40 = arith.constant dense<0.000000e+00> : vector<9xf32>
    %112 = vector.multi_reduction <add>, %109, %cst_40 [1] : vector<9x32xf32> to vector<9xf32>
    %113 = vector.shape_cast %112 : vector<9xf32> to vector<9x1xf32>
    %cst_41 = arith.constant 3.200000e+01 : f32
    %114 = vector.broadcast %cst_41 : f32 to vector<9x1xf32>
    %115 = arith.divf %113, %114 : vector<9x1xf32>
    %116 = vector.broadcast %115 : vector<9x1xf32> to vector<9x32xf32>
    %117 = arith.subf %109, %116 : vector<9x32xf32>
    %118 = arith.mulf %117, %117 : vector<9x32xf32>
    %cst_42 = arith.constant dense<0.000000e+00> : vector<9xf32>
    %119 = vector.multi_reduction <add>, %118, %cst_42 [1] : vector<9x32xf32> to vector<9xf32>
    %120 = vector.shape_cast %119 : vector<9xf32> to vector<9x1xf32>
    %cst_43 = arith.constant 3.200000e+01 : f32
    %121 = vector.broadcast %cst_43 : f32 to vector<9x1xf32>
    %122 = arith.divf %120, %121 : vector<9x1xf32>
    %cst_44 = arith.constant 9.99999974E-6 : f32
    %123 = vector.broadcast %cst_44 : f32 to vector<9x1xf32>
    %124 = arith.addf %122, %123 : vector<9x1xf32>
    %125 = math.rsqrt %124 : vector<9x1xf32>
    %126 = vector.broadcast %125 : vector<9x1xf32> to vector<9x32xf32>
    %127 = arith.mulf %117, %126 : vector<9x32xf32>
    %128 = vector.broadcast %110 : vector<1x32xf32> to vector<9x32xf32>
    %129 = arith.mulf %127, %128 : vector<9x32xf32>
    %130 = vector.broadcast %111 : vector<1x32xf32> to vector<9x32xf32>
    %131 = arith.addf %129, %130 : vector<9x32xf32>
    %c0_45 = arith.constant 0 : index
    %c0_46 = arith.constant 0 : index
    %132 = vector.load %arg9[%c0_45, %c0_46] : memref<32x128xf32, #tpu.memory_space<vmem>>, vector<32x128xf32>
    %cst_47 = arith.constant dense<0.000000e+00> : vector<9x128xf32>
    %133 = tpu.matmul %131, %132, %cst_47 {dimension_numbers = #tpu.dot_dimension_numbers<[1], [0], [0], [1], [0, 0, 1, 1], [], []>} : vector<9x32xf32>, vector<32x128xf32>, vector<9x128xf32> -> vector<9x128xf32>
    %c0_48 = arith.constant 0 : index
    %c0_49 = arith.constant 0 : index
    %134 = vector.load %arg10[%c0_48, %c0_49] : memref<1x128xf32, #tpu.memory_space<vmem>>, vector<1x128xf32>
    %135 = vector.broadcast %134 : vector<1x128xf32> to vector<9x128xf32>
    %136 = arith.addf %133, %135 : vector<9x128xf32>
    %cst_50 = arith.constant 0.000000e+00 : f32
    %137 = vector.broadcast %cst_50 : f32 to vector<9x128xf32>
    %138 = arith.maximumf %136, %137 : vector<9x128xf32>
    %c0_51 = arith.constant 0 : index
    %c0_52 = arith.constant 0 : index
    %139 = vector.load %arg11[%c0_51, %c0_52] : memref<128x32xf32, #tpu.memory_space<vmem>>, vector<128x32xf32>
    %cst_53 = arith.constant dense<0.000000e+00> : vector<9x32xf32>
    %140 = tpu.matmul %138, %139, %cst_53 {dimension_numbers = #tpu.dot_dimension_numbers<[1], [0], [0], [1], [0, 0, 1, 1], [], []>} : vector<9x128xf32>, vector<128x32xf32>, vector<9x32xf32> -> vector<9x32xf32>
    %c0_54 = arith.constant 0 : index
    %c0_55 = arith.constant 0 : index
    %141 = vector.load %arg12[%c0_54, %c0_55] : memref<1x32xf32, #tpu.memory_space<vmem>>, vector<1x32xf32>
    %142 = vector.broadcast %141 : vector<1x32xf32> to vector<9x32xf32>
    %143 = arith.addf %140, %142 : vector<9x32xf32>
    %144 = arith.addf %131, %143 : vector<9x32xf32>
    %c0_56 = arith.constant 0 : index
    %c0_57 = arith.constant 0 : index
    %145 = vector.load %arg13[%c0_56, %c0_57] : memref<1x32xf32, #tpu.memory_space<vmem>>, vector<1x32xf32>
    %c0_58 = arith.constant 0 : index
    %c0_59 = arith.constant 0 : index
    %146 = vector.load %arg14[%c0_58, %c0_59] : memref<1x32xf32, #tpu.memory_space<vmem>>, vector<1x32xf32>
    %cst_60 = arith.constant dense<0.000000e+00> : vector<9xf32>
    %147 = vector.multi_reduction <add>, %144, %cst_60 [1] : vector<9x32xf32> to vector<9xf32>
    %148 = vector.shape_cast %147 : vector<9xf32> to vector<9x1xf32>
    %cst_61 = arith.constant 3.200000e+01 : f32
    %149 = vector.broadcast %cst_61 : f32 to vector<9x1xf32>
    %150 = arith.divf %148, %149 : vector<9x1xf32>
    %151 = vector.broadcast %150 : vector<9x1xf32> to vector<9x32xf32>
    %152 = arith.subf %144, %151 : vector<9x32xf32>
    %153 = arith.mulf %152, %152 : vector<9x32xf32>
    %cst_62 = arith.constant dense<0.000000e+00> : vector<9xf32>
    %154 = vector.multi_reduction <add>, %153, %cst_62 [1] : vector<9x32xf32> to vector<9xf32>
    %155 = vector.shape_cast %154 : vector<9xf32> to vector<9x1xf32>
    %cst_63 = arith.constant 3.200000e+01 : f32
    %156 = vector.broadcast %cst_63 : f32 to vector<9x1xf32>
    %157 = arith.divf %155, %156 : vector<9x1xf32>
    %cst_64 = arith.constant 9.99999974E-6 : f32
    %158 = vector.broadcast %cst_64 : f32 to vector<9x1xf32>
    %159 = arith.addf %157, %158 : vector<9x1xf32>
    %160 = math.rsqrt %159 : vector<9x1xf32>
    %161 = vector.broadcast %160 : vector<9x1xf32> to vector<9x32xf32>
    %162 = arith.mulf %152, %161 : vector<9x32xf32>
    %163 = vector.broadcast %145 : vector<1x32xf32> to vector<9x32xf32>
    %164 = arith.mulf %162, %163 : vector<9x32xf32>
    %165 = vector.broadcast %146 : vector<1x32xf32> to vector<9x32xf32>
    %166 = arith.addf %164, %165 : vector<9x32xf32>
    %c0_65 = arith.constant 0 : index
    %c0_66 = arith.constant 0 : index
    %c0_67 = arith.constant 0 : index
    %167 = vector.load %arg15[%c0_65, %c0_66, %c0_67] : memref<1x9x32xf32, #tpu.memory_space<vmem>>, vector<1x9x32xf32>
    %168 = vector.shape_cast %167 : vector<1x9x32xf32> to vector<9x32xf32>
    %169 = vector.shape_cast %166 : vector<9x32xf32> to vector<1x9x32xf32>
    tpu.vector_store %arg15[%c0_65, %c0_66, %c0_67], %169 {strides = array<i32>} : memref<1x9x32xf32, #tpu.memory_space<vmem>>, vector<1x9x32xf32>,
    return
  }
  func.func @transform_0(%arg0: i32, %arg1: memref<2xi32, #tpu.memory_space<smem>>) -> (i32, i32, i32) {
    %c0_i32 = arith.constant 0 : i32
    %c0_i32_0 = arith.constant 0 : i32
    %c0_i32_1 = arith.constant 0 : i32
    return %arg0, %c0_i32, %c0_i32_0 : i32, i32, i32
  }
  func.func @transform_1(%arg0: i32, %arg1: memref<2xi32, #tpu.memory_space<smem>>) -> (i32, i32) {
    %c0_i32 = arith.constant 0 : i32
    %c0_i32_0 = arith.constant 0 : i32
    %c0_i32_1 = arith.constant 0 : i32
    return %c0_i32, %c0_i32_0 : i32, i32
  }
  func.func @transform_2(%arg0: i32, %arg1: memref<2xi32, #tpu.memory_space<smem>>) -> (i32, i32) {
    %c0_i32 = arith.constant 0 : i32
    %c0_i32_0 = arith.constant 0 : i32
    %c0_i32_1 = arith.constant 0 : i32
    return %c0_i32, %c0_i32_0 : i32, i32
  }
  func.func @transform_3(%arg0: i32, %arg1: memref<2xi32, #tpu.memory_space<smem>>) -> (i32, i32) {
    %c0_i32 = arith.constant 0 : i32
    %c0_i32_0 = arith.constant 0 : i32
    %c0_i32_1 = arith.constant 0 : i32
    return %c0_i32, %c0_i32_0 : i32, i32
  }
  func.func @transform_4(%arg0: i32, %arg1: memref<2xi32, #tpu.memory_space<smem>>) -> (i32, i32) {
    %c0_i32 = arith.constant 0 : i32
    %c0_i32_0 = arith.constant 0 : i32
    %c0_i32_1 = arith.constant 0 : i32
    return %c0_i32, %c0_i32_0 : i32, i32
  }
  func.func @transform_5(%arg0: i32, %arg1: memref<2xi32, #tpu.memory_space<smem>>) -> (i32, i32) {
    %c0_i32 = arith.constant 0 : i32
    %c0_i32_0 = arith.constant 0 : i32
    %c0_i32_1 = arith.constant 0 : i32
    return %c0_i32, %c0_i32_0 : i32, i32
  }
  func.func @transform_6(%arg0: i32, %arg1: memref<2xi32, #tpu.memory_space<smem>>) -> (i32, i32) {
    %c0_i32 = arith.constant 0 : i32
    %c0_i32_0 = arith.constant 0 : i32
    %c0_i32_1 = arith.constant 0 : i32
    return %c0_i32, %c0_i32_0 : i32, i32
  }
  func.func @transform_7(%arg0: i32, %arg1: memref<2xi32, #tpu.memory_space<smem>>) -> (i32, i32) {
    %c0_i32 = arith.constant 0 : i32
    %c0_i32_0 = arith.constant 0 : i32
    %c0_i32_1 = arith.constant 0 : i32
    return %c0_i32, %c0_i32_0 : i32, i32
  }
  func.func @transform_8(%arg0: i32, %arg1: memref<2xi32, #tpu.memory_space<smem>>) -> (i32, i32) {
    %c0_i32 = arith.constant 0 : i32
    %c0_i32_0 = arith.constant 0 : i32
    %c0_i32_1 = arith.constant 0 : i32
    return %c0_i32, %c0_i32_0 : i32, i32
  }
  func.func @transform_9(%arg0: i32, %arg1: memref<2xi32, #tpu.memory_space<smem>>) -> (i32, i32) {
    %c0_i32 = arith.constant 0 : i32
    %c0_i32_0 = arith.constant 0 : i32
    %c0_i32_1 = arith.constant 0 : i32
    return %c0_i32, %c0_i32_0 : i32, i32
  }
  func.func @transform_10(%arg0: i32, %arg1: memref<2xi32, #tpu.memory_space<smem>>) -> (i32, i32) {
    %c0_i32 = arith.constant 0 : i32
    %c0_i32_0 = arith.constant 0 : i32
    %c0_i32_1 = arith.constant 0 : i32
    return %c0_i32, %c0_i32_0 : i32, i32
  }
  func.func @transform_11(%arg0: i32, %arg1: memref<2xi32, #tpu.memory_space<smem>>) -> (i32, i32) {
    %c0_i32 = arith.constant 0 : i32
    %c0_i32_0 = arith.constant 0 : i32
    %c0_i32_1 = arith.constant 0 : i32
    return %c0_i32, %c0_i32_0 : i32, i32
  }
  func.func @transform_12(%arg0: i32, %arg1: memref<2xi32, #tpu.memory_space<smem>>) -> (i32, i32) {
    %c0_i32 = arith.constant 0 : i32
    %c0_i32_0 = arith.constant 0 : i32
    %c0_i32_1 = arith.constant 0 : i32
    return %c0_i32, %c0_i32_0 : i32, i32
  }
  func.func @transform_13(%arg0: i32, %arg1: memref<2xi32, #tpu.memory_space<smem>>) -> (i32, i32, i32) {
    %c0_i32 = arith.constant 0 : i32
    %c0_i32_0 = arith.constant 0 : i32
    %c0_i32_1 = arith.constant 0 : i32
    return %arg0, %c0_i32, %c0_i32_0 : i32, i32, i32
  }
}

module attributes {stable_mosaic.version = 11 : i64} {
  func.func @_linear_kernel(%arg0: i32, %arg1: i32, %arg2: i32, %arg3: memref<16x128xf32, #tpu.memory_space<vmem>>, %arg4: memref<128x128xf32, #tpu.memory_space<vmem>>, %arg5: memref<1x128xf32, #tpu.memory_space<vmem>>, %arg6: memref<16x128xf32, #tpu.memory_space<vmem>>, %arg7: memref<16x128xf32, #tpu.memory_space<vmem>>) attributes {dimension_semantics = [#tpu.dimension_semantics<parallel>, #tpu.dimension_semantics<parallel>, #tpu.dimension_semantics<arbitrary>], iteration_bounds = array<i64: 1, 1, 1>, scalar_prefetch = 0 : i64, scratch_operands = 1 : i64, tpu.core_type = #tpu.core_type<tc>, window_params = [{transform_indices = @transform_0, window_bounds = array<i64: 16, 128>}, {transform_indices = @transform_1, window_bounds = array<i64: 128, 128>}, {transform_indices = @transform_2, window_bounds = array<i64: 1, 128>}, {transform_indices = @transform_3, window_bounds = array<i64: 16, 128>}]} {
    %c0_i32 = arith.constant 0 : i32
    %0 = arith.cmpi eq, %arg2, %c0_i32 : i32
    %1 = arith.extui %0 : i1 to i32
    %c0_i32_0 = arith.constant 0 : i32
    %2 = arith.cmpi ne, %1, %c0_i32_0 : i32
    scf.if %2 {
      %cst_10 = arith.constant 0.000000e+00 : f32
      %12 = vector.broadcast %cst_10 : f32 to vector<16x128xf32>
      %c0_11 = arith.constant 0 : index
      %c0_12 = arith.constant 0 : index
      %13 = vector.load %arg7[%c0_11, %c0_12] : memref<16x128xf32, #tpu.memory_space<vmem>>, vector<16x128xf32>
      tpu.vector_store %arg7[%c0_11, %c0_12], %12 {strides = array<i32>} : memref<16x128xf32, #tpu.memory_space<vmem>>, vector<16x128xf32>,
    } else {
    }
    %c0 = arith.constant 0 : index
    %c0_1 = arith.constant 0 : index
    %3 = vector.load %arg7[%c0, %c0_1] : memref<16x128xf32, #tpu.memory_space<vmem>>, vector<16x128xf32>
    %c0_2 = arith.constant 0 : index
    %c0_3 = arith.constant 0 : index
    %4 = vector.load %arg3[%c0_2, %c0_3] : memref<16x128xf32, #tpu.memory_space<vmem>>, vector<16x128xf32>
    %c0_4 = arith.constant 0 : index
    %c0_5 = arith.constant 0 : index
    %5 = vector.load %arg4[%c0_4, %c0_5] : memref<128x128xf32, #tpu.memory_space<vmem>>, vector<128x128xf32>
    %cst = arith.constant dense<0.000000e+00> : vector<16x128xf32>
    %6 = tpu.matmul %4, %5, %cst {dimension_numbers = #tpu.dot_dimension_numbers<[1], [0], [0], [1], [0, 0, 1, 1], [], []>} : vector<16x128xf32>, vector<128x128xf32>, vector<16x128xf32> -> vector<16x128xf32>
    %7 = arith.addf %3, %6 : vector<16x128xf32>
    %c0_6 = arith.constant 0 : index
    %c0_7 = arith.constant 0 : index
    %8 = vector.load %arg7[%c0_6, %c0_7] : memref<16x128xf32, #tpu.memory_space<vmem>>, vector<16x128xf32>
    tpu.vector_store %arg7[%c0_6, %c0_7], %7 {strides = array<i32>} : memref<16x128xf32, #tpu.memory_space<vmem>>, vector<16x128xf32>,
    %c0_i32_8 = arith.constant 0 : i32
    %9 = arith.cmpi eq, %arg2, %c0_i32_8 : i32
    %10 = arith.extui %9 : i1 to i32
    %c0_i32_9 = arith.constant 0 : i32
    %11 = arith.cmpi ne, %10, %c0_i32_9 : i32
    scf.if %11 {
      %c0_10 = arith.constant 0 : index
      %c0_11 = arith.constant 0 : index
      %12 = vector.load %arg7[%c0_10, %c0_11] : memref<16x128xf32, #tpu.memory_space<vmem>>, vector<16x128xf32>
      %c0_12 = arith.constant 0 : index
      %c0_13 = arith.constant 0 : index
      %13 = vector.load %arg5[%c0_12, %c0_13] : memref<1x128xf32, #tpu.memory_space<vmem>>, vector<1x128xf32>
      %14 = vector.broadcast %13 : vector<1x128xf32> to vector<16x128xf32>
      %15 = arith.addf %12, %14 : vector<16x128xf32>
      %c0_14 = arith.constant 0 : index
      %c0_15 = arith.constant 0 : index
      %16 = vector.load %arg6[%c0_14, %c0_15] : memref<16x128xf32, #tpu.memory_space<vmem>>, vector<16x128xf32>
      tpu.vector_store %arg6[%c0_14, %c0_15], %15 {strides = array<i32>} : memref<16x128xf32, #tpu.memory_space<vmem>>, vector<16x128xf32>,
    } else {
    }
    return
  }
  func.func @transform_0(%arg0: i32, %arg1: i32, %arg2: i32) -> (i32, i32) {
    %c0_i32 = arith.constant 0 : i32
    return %arg0, %arg2 : i32, i32
  }
  func.func @transform_1(%arg0: i32, %arg1: i32, %arg2: i32) -> (i32, i32) {
    %c0_i32 = arith.constant 0 : i32
    return %arg2, %arg1 : i32, i32
  }
  func.func @transform_2(%arg0: i32, %arg1: i32, %arg2: i32) -> (i32, i32) {
    %c0_i32 = arith.constant 0 : i32
    %c0_i32_0 = arith.constant 0 : i32
    return %c0_i32, %arg1 : i32, i32
  }
  func.func @transform_3(%arg0: i32, %arg1: i32, %arg2: i32) -> (i32, i32) {
    %c0_i32 = arith.constant 0 : i32
    return %arg0, %arg1 : i32, i32
  }
}

module attributes {stable_mosaic.version = 11 : i64} {
  func.func @_dec_layer_kernel(%arg0: i32, %arg1: memref<2xi32, #tpu.memory_space<smem>>, %arg2: memref<1x8x32xf32, #tpu.memory_space<vmem>>, %arg3: memref<1x9x32xf32, #tpu.memory_space<vmem>>, %arg4: memref<32x96xf32, #tpu.memory_space<vmem>>, %arg5: memref<1x96xf32, #tpu.memory_space<vmem>>, %arg6: memref<32x32xf32, #tpu.memory_space<vmem>>, %arg7: memref<1x32xf32, #tpu.memory_space<vmem>>, %arg8: memref<1x32xf32, #tpu.memory_space<vmem>>, %arg9: memref<1x32xf32, #tpu.memory_space<vmem>>, %arg10: memref<32x32xf32, #tpu.memory_space<vmem>>, %arg11: memref<1x32xf32, #tpu.memory_space<vmem>>, %arg12: memref<32x64xf32, #tpu.memory_space<vmem>>, %arg13: memref<1x64xf32, #tpu.memory_space<vmem>>, %arg14: memref<32x32xf32, #tpu.memory_space<vmem>>, %arg15: memref<1x32xf32, #tpu.memory_space<vmem>>, %arg16: memref<1x32xf32, #tpu.memory_space<vmem>>, %arg17: memref<1x32xf32, #tpu.memory_space<vmem>>, %arg18: memref<32x128xf32, #tpu.memory_space<vmem>>, %arg19: memref<1x128xf32, #tpu.memory_space<vmem>>, %arg20: memref<128x32xf32, #tpu.memory_space<vmem>>, %arg21: memref<1x32xf32, #tpu.memory_space<vmem>>, %arg22: memref<1x32xf32, #tpu.memory_space<vmem>>, %arg23: memref<1x32xf32, #tpu.memory_space<vmem>>, %arg24: memref<1x8x32xf32, #tpu.memory_space<vmem>>) attributes {dimension_semantics = [#tpu.dimension_semantics<parallel>], iteration_bounds = array<i64: 2>, scalar_prefetch = 1 : i64, scratch_operands = 0 : i64, tpu.core_type = #tpu.core_type<tc>, window_params = [{transform_indices = @transform_0, window_bounds = array<i64: 1, 8, 32>}, {transform_indices = @transform_1, window_bounds = array<i64: 1, 9, 32>}, {pipeline_mode = #tpu.pipeline_mode<synchronous>, transform_indices = @transform_2, window_bounds = array<i64: 32, 96>}, {pipeline_mode = #tpu.pipeline_mode<synchronous>, transform_indices = @transform_3, window_bounds = array<i64: 1, 96>}, {pipeline_mode = #tpu.pipeline_mode<synchronous>, transform_indices = @transform_4, window_bounds = array<i64: 32, 32>}, {pipeline_mode = #tpu.pipeline_mode<synchronous>, transform_indices = @transform_5, window_bounds = array<i64: 1, 32>}, {pipeline_mode = #tpu.pipeline_mode<synchronous>, transform_indices = @transform_6, window_bounds = array<i64: 1, 32>}, {pipeline_mode = #tpu.pipeline_mode<synchronous>, transform_indices = @transform_7, window_bounds = array<i64: 1, 32>}, {pipeline_mode = #tpu.pipeline_mode<synchronous>, transform_indices = @transform_8, window_bounds = array<i64: 32, 32>}, {pipeline_mode = #tpu.pipeline_mode<synchronous>, transform_indices = @transform_9, window_bounds = array<i64: 1, 32>}, {pipeline_mode = #tpu.pipeline_mode<synchronous>, transform_indices = @transform_10, window_bounds = array<i64: 32, 64>}, {pipeline_mode = #tpu.pipeline_mode<synchronous>, transform_indices = @transform_11, window_bounds = array<i64: 1, 64>}, {pipeline_mode = #tpu.pipeline_mode<synchronous>, transform_indices = @transform_12, window_bounds = array<i64: 32, 32>}, {pipeline_mode = #tpu.pipeline_mode<synchronous>, transform_indices = @transform_13, window_bounds = array<i64: 1, 32>}, {pipeline_mode = #tpu.pipeline_mode<synchronous>, transform_indices = @transform_14, window_bounds = array<i64: 1, 32>}, {pipeline_mode = #tpu.pipeline_mode<synchronous>, transform_indices = @transform_15, window_bounds = array<i64: 1, 32>}, {pipeline_mode = #tpu.pipeline_mode<synchronous>, transform_indices = @transform_16, window_bounds = array<i64: 32, 128>}, {pipeline_mode = #tpu.pipeline_mode<synchronous>, transform_indices = @transform_17, window_bounds = array<i64: 1, 128>}, {pipeline_mode = #tpu.pipeline_mode<synchronous>, transform_indices = @transform_18, window_bounds = array<i64: 128, 32>}, {pipeline_mode = #tpu.pipeline_mode<synchronous>, transform_indices = @transform_19, window_bounds = array<i64: 1, 32>}, {pipeline_mode = #tpu.pipeline_mode<synchronous>, transform_indices = @transform_20, window_bounds = array<i64: 1, 32>}, {pipeline_mode = #tpu.pipeline_mode<synchronous>, transform_indices = @transform_21, window_bounds = array<i64: 1, 32>}, {transform_indices = @transform_22, window_bounds = array<i64: 1, 8, 32>}]} {
    %c0 = arith.constant 0 : index
    %c0_0 = arith.constant 0 : index
    %c0_1 = arith.constant 0 : index
    %0 = vector.load %arg2[%c0, %c0_0, %c0_1] : memref<1x8x32xf32, #tpu.memory_space<vmem>>, vector<1x8x32xf32>
    %1 = vector.shape_cast %0 : vector<1x8x32xf32> to vector<8x32xf32>
    %c0_2 = arith.constant 0 : index
    %c0_3 = arith.constant 0 : index
    %c0_4 = arith.constant 0 : index
    %2 = vector.load %arg3[%c0_2, %c0_3, %c0_4] : memref<1x9x32xf32, #tpu.memory_space<vmem>>, vector<1x9x32xf32>
    %3 = vector.shape_cast %2 : vector<1x9x32xf32> to vector<9x32xf32>
    %4 = tpu.iota {dimensions = array<i32: 0>} : vector<8x8xi32>
    %5 = tpu.iota {dimensions = array<i32: 1>} : vector<8x8xi32>
    %6 = arith.cmpi sgt, %5, %4 : vector<8x8xi32>
    %cst = arith.constant -1.000000e+30 : f32
    %cst_5 = arith.constant 0.000000e+00 : f32
    %7 = vector.broadcast %cst : f32 to vector<8x8xf32>
    %8 = vector.broadcast %cst_5 : f32 to vector<8x8xf32>
    %9 = arith.select %6, %7, %8 : vector<8x8xi1>, vector<8x8xf32>
    %c0_6 = arith.constant 0 : index
    %c0_7 = arith.constant 0 : index
    %10 = vector.load %arg4[%c0_6, %c0_7] : memref<32x96xf32, #tpu.memory_space<vmem>>, vector<32x96xf32>
    %cst_8 = arith.constant dense<0.000000e+00> : vector<8x96xf32>
    %11 = tpu.matmul %1, %10, %cst_8 {dimension_numbers = #tpu.dot_dimension_numbers<[1], [0], [0], [1], [0, 0, 1, 1], [], []>} : vector<8x32xf32>, vector<32x96xf32>, vector<8x96xf32> -> vector<8x96xf32>
    %c0_9 = arith.constant 0 : index
    %c0_10 = arith.constant 0 : index
    %12 = vector.load %arg5[%c0_9, %c0_10] : memref<1x96xf32, #tpu.memory_space<vmem>>, vector<1x96xf32>
    %13 = vector.broadcast %12 : vector<1x96xf32> to vector<8x96xf32>
    %14 = arith.addf %11, %13 : vector<8x96xf32>
    %15 = vector.extract_strided_slice %14 {offsets = [0, 0], sizes = [8, 32], strides = [1, 1]} : vector<8x96xf32> to vector<8x32xf32>
    %16 = vector.extract_strided_slice %14 {offsets = [0, 32], sizes = [8, 32], strides = [1, 1]} : vector<8x96xf32> to vector<8x32xf32>
    %17 = vector.extract_strided_slice %14 {offsets = [0, 64], sizes = [8, 32], strides = [1, 1]} : vector<8x96xf32> to vector<8x32xf32>
    %c0_11 = arith.constant 0 : index
    %c0_12 = arith.constant 0 : index
    %18 = vector.load %arg6[%c0_11, %c0_12] : memref<32x32xf32, #tpu.memory_space<vmem>>, vector<32x32xf32>
    %c0_13 = arith.constant 0 : index
    %c0_14 = arith.constant 0 : index
    %19 = vector.load %arg7[%c0_13, %c0_14] : memref<1x32xf32, #tpu.memory_space<vmem>>, vector<1x32xf32>
    %20 = vector.extract_strided_slice %15 {offsets = [0, 0], sizes = [8, 8], strides = [1, 1]} : vector<8x32xf32> to vector<8x8xf32>
    %21 = vector.extract_strided_slice %16 {offsets = [0, 0], sizes = [8, 8], strides = [1, 1]} : vector<8x32xf32> to vector<8x8xf32>
    %22 = vector.extract_strided_slice %17 {offsets = [0, 0], sizes = [8, 8], strides = [1, 1]} : vector<8x32xf32> to vector<8x8xf32>
    %23 = tpu.transpose %21, [1, 0] : vector<8x8xf32> -> vector<8x8xf32>
    %cst_15 = arith.constant dense<0.000000e+00> : vector<8x8xf32>
    %24 = tpu.matmul %20, %23, %cst_15 {dimension_numbers = #tpu.dot_dimension_numbers<[1], [0], [0], [1], [0, 0, 1, 1], [], []>} : vector<8x8xf32>, vector<8x8xf32>, vector<8x8xf32> -> vector<8x8xf32>
    %cst_16 = arith.constant 0.353553385 : f32
    %25 = vector.broadcast %cst_16 : f32 to vector<8x8xf32>
    %26 = arith.mulf %24, %25 : vector<8x8xf32>
    %27 = arith.addf %26, %9 : vector<8x8xf32>
    %cst_17 = arith.constant dense<0xFF800000> : vector<8xf32>
    %28 = vector.multi_reduction <maximumf>, %27, %cst_17 [1] : vector<8x8xf32> to vector<8xf32>
    %29 = vector.shape_cast %28 : vector<8xf32> to vector<8x1xf32>
    %30 = vector.broadcast %29 : vector<8x1xf32> to vector<8x8xf32>
    %31 = arith.subf %27, %30 : vector<8x8xf32>
    %32 = math.exp %31 : vector<8x8xf32>
    %cst_18 = arith.constant dense<0.000000e+00> : vector<8xf32>
    %33 = vector.multi_reduction <add>, %32, %cst_18 [1] : vector<8x8xf32> to vector<8xf32>
    %34 = vector.shape_cast %33 : vector<8xf32> to vector<8x1xf32>
    %35 = tpu.reciprocal %34 {approx = true} : vector<8x1xf32> -> vector<8x1xf32>
    %36 = vector.broadcast %35 : vector<8x1xf32> to vector<8x8xf32>
    %37 = arith.mulf %32, %36 : vector<8x8xf32>
    %cst_19 = arith.constant dense<0.000000e+00> : vector<8x8xf32>
    %38 = tpu.matmul %37, %22, %cst_19 {dimension_numbers = #tpu.dot_dimension_numbers<[1], [0], [0], [1], [0, 0, 1, 1], [], []>} : vector<8x8xf32>, vector<8x8xf32>, vector<8x8xf32> -> vector<8x8xf32>
    %39 = vector.extract_strided_slice %18 {offsets = [0, 0], sizes = [8, 32], strides = [1, 1]} : vector<32x32xf32> to vector<8x32xf32>
    %cst_20 = arith.constant dense<0.000000e+00> : vector<8x32xf32>
    %40 = tpu.matmul %38, %39, %cst_20 {dimension_numbers = #tpu.dot_dimension_numbers<[1], [0], [0], [1], [0, 0, 1, 1], [], []>} : vector<8x8xf32>, vector<8x32xf32>, vector<8x32xf32> -> vector<8x32xf32>
    %41 = vector.extract_strided_slice %15 {offsets = [0, 8], sizes = [8, 8], strides = [1, 1]} : vector<8x32xf32> to vector<8x8xf32>
    %42 = vector.extract_strided_slice %16 {offsets = [0, 8], sizes = [8, 8], strides = [1, 1]} : vector<8x32xf32> to vector<8x8xf32>
    %43 = vector.extract_strided_slice %17 {offsets = [0, 8], sizes = [8, 8], strides = [1, 1]} : vector<8x32xf32> to vector<8x8xf32>
    %44 = tpu.transpose %42, [1, 0] : vector<8x8xf32> -> vector<8x8xf32>
    %cst_21 = arith.constant dense<0.000000e+00> : vector<8x8xf32>
    %45 = tpu.matmul %41, %44, %cst_21 {dimension_numbers = #tpu.dot_dimension_numbers<[1], [0], [0], [1], [0, 0, 1, 1], [], []>} : vector<8x8xf32>, vector<8x8xf32>, vector<8x8xf32> -> vector<8x8xf32>
    %cst_22 = arith.constant 0.353553385 : f32
    %46 = vector.broadcast %cst_22 : f32 to vector<8x8xf32>
    %47 = arith.mulf %45, %46 : vector<8x8xf32>
    %48 = arith.addf %47, %9 : vector<8x8xf32>
    %cst_23 = arith.constant dense<0xFF800000> : vector<8xf32>
    %49 = vector.multi_reduction <maximumf>, %48, %cst_23 [1] : vector<8x8xf32> to vector<8xf32>
    %50 = vector.shape_cast %49 : vector<8xf32> to vector<8x1xf32>
    %51 = vector.broadcast %50 : vector<8x1xf32> to vector<8x8xf32>
    %52 = arith.subf %48, %51 : vector<8x8xf32>
    %53 = math.exp %52 : vector<8x8xf32>
    %cst_24 = arith.constant dense<0.000000e+00> : vector<8xf32>
    %54 = vector.multi_reduction <add>, %53, %cst_24 [1] : vector<8x8xf32> to vector<8xf32>
    %55 = vector.shape_cast %54 : vector<8xf32> to vector<8x1xf32>
    %56 = tpu.reciprocal %55 {approx = true} : vector<8x1xf32> -> vector<8x1xf32>
    %57 = vector.broadcast %56 : vector<8x1xf32> to vector<8x8xf32>
    %58 = arith.mulf %53, %57 : vector<8x8xf32>
    %cst_25 = arith.constant dense<0.000000e+00> : vector<8x8xf32>
    %59 = tpu.matmul %58, %43, %cst_25 {dimension_numbers = #tpu.dot_dimension_numbers<[1], [0], [0], [1], [0, 0, 1, 1], [], []>} : vector<8x8xf32>, vector<8x8xf32>, vector<8x8xf32> -> vector<8x8xf32>
    %60 = vector.extract_strided_slice %18 {offsets = [8, 0], sizes = [8, 32], strides = [1, 1]} : vector<32x32xf32> to vector<8x32xf32>
    %cst_26 = arith.constant dense<0.000000e+00> : vector<8x32xf32>
    %61 = tpu.matmul %59, %60, %cst_26 {dimension_numbers = #tpu.dot_dimension_numbers<[1], [0], [0], [1], [0, 0, 1, 1], [], []>} : vector<8x8xf32>, vector<8x32xf32>, vector<8x32xf32> -> vector<8x32xf32>
    %62 = arith.addf %40, %61 : vector<8x32xf32>
    %63 = vector.extract_strided_slice %15 {offsets = [0, 16], sizes = [8, 8], strides = [1, 1]} : vector<8x32xf32> to vector<8x8xf32>
    %64 = vector.extract_strided_slice %16 {offsets = [0, 16], sizes = [8, 8], strides = [1, 1]} : vector<8x32xf32> to vector<8x8xf32>
    %65 = vector.extract_strided_slice %17 {offsets = [0, 16], sizes = [8, 8], strides = [1, 1]} : vector<8x32xf32> to vector<8x8xf32>
    %66 = tpu.transpose %64, [1, 0] : vector<8x8xf32> -> vector<8x8xf32>
    %cst_27 = arith.constant dense<0.000000e+00> : vector<8x8xf32>
    %67 = tpu.matmul %63, %66, %cst_27 {dimension_numbers = #tpu.dot_dimension_numbers<[1], [0], [0], [1], [0, 0, 1, 1], [], []>} : vector<8x8xf32>, vector<8x8xf32>, vector<8x8xf32> -> vector<8x8xf32>
    %cst_28 = arith.constant 0.353553385 : f32
    %68 = vector.broadcast %cst_28 : f32 to vector<8x8xf32>
    %69 = arith.mulf %67, %68 : vector<8x8xf32>
    %70 = arith.addf %69, %9 : vector<8x8xf32>
    %cst_29 = arith.constant dense<0xFF800000> : vector<8xf32>
    %71 = vector.multi_reduction <maximumf>, %70, %cst_29 [1] : vector<8x8xf32> to vector<8xf32>
    %72 = vector.shape_cast %71 : vector<8xf32> to vector<8x1xf32>
    %73 = vector.broadcast %72 : vector<8x1xf32> to vector<8x8xf32>
    %74 = arith.subf %70, %73 : vector<8x8xf32>
    %75 = math.exp %74 : vector<8x8xf32>
    %cst_30 = arith.constant dense<0.000000e+00> : vector<8xf32>
    %76 = vector.multi_reduction <add>, %75, %cst_30 [1] : vector<8x8xf32> to vector<8xf32>
    %77 = vector.shape_cast %76 : vector<8xf32> to vector<8x1xf32>
    %78 = tpu.reciprocal %77 {approx = true} : vector<8x1xf32> -> vector<8x1xf32>
    %79 = vector.broadcast %78 : vector<8x1xf32> to vector<8x8xf32>
    %80 = arith.mulf %75, %79 : vector<8x8xf32>
    %cst_31 = arith.constant dense<0.000000e+00> : vector<8x8xf32>
    %81 = tpu.matmul %80, %65, %cst_31 {dimension_numbers = #tpu.dot_dimension_numbers<[1], [0], [0], [1], [0, 0, 1, 1], [], []>} : vector<8x8xf32>, vector<8x8xf32>, vector<8x8xf32> -> vector<8x8xf32>
    %82 = vector.extract_strided_slice %18 {offsets = [16, 0], sizes = [8, 32], strides = [1, 1]} : vector<32x32xf32> to vector<8x32xf32>
    %cst_32 = arith.constant dense<0.000000e+00> : vector<8x32xf32>
    %83 = tpu.matmul %81, %82, %cst_32 {dimension_numbers = #tpu.dot_dimension_numbers<[1], [0], [0], [1], [0, 0, 1, 1], [], []>} : vector<8x8xf32>, vector<8x32xf32>, vector<8x32xf32> -> vector<8x32xf32>
    %84 = arith.addf %62, %83 : vector<8x32xf32>
    %85 = vector.extract_strided_slice %15 {offsets = [0, 24], sizes = [8, 8], strides = [1, 1]} : vector<8x32xf32> to vector<8x8xf32>
    %86 = vector.extract_strided_slice %16 {offsets = [0, 24], sizes = [8, 8], strides = [1, 1]} : vector<8x32xf32> to vector<8x8xf32>
    %87 = vector.extract_strided_slice %17 {offsets = [0, 24], sizes = [8, 8], strides = [1, 1]} : vector<8x32xf32> to vector<8x8xf32>
    %88 = tpu.transpose %86, [1, 0] : vector<8x8xf32> -> vector<8x8xf32>
    %cst_33 = arith.constant dense<0.000000e+00> : vector<8x8xf32>
    %89 = tpu.matmul %85, %88, %cst_33 {dimension_numbers = #tpu.dot_dimension_numbers<[1], [0], [0], [1], [0, 0, 1, 1], [], []>} : vector<8x8xf32>, vector<8x8xf32>, vector<8x8xf32> -> vector<8x8xf32>
    %cst_34 = arith.constant 0.353553385 : f32
    %90 = vector.broadcast %cst_34 : f32 to vector<8x8xf32>
    %91 = arith.mulf %89, %90 : vector<8x8xf32>
    %92 = arith.addf %91, %9 : vector<8x8xf32>
    %cst_35 = arith.constant dense<0xFF800000> : vector<8xf32>
    %93 = vector.multi_reduction <maximumf>, %92, %cst_35 [1] : vector<8x8xf32> to vector<8xf32>
    %94 = vector.shape_cast %93 : vector<8xf32> to vector<8x1xf32>
    %95 = vector.broadcast %94 : vector<8x1xf32> to vector<8x8xf32>
    %96 = arith.subf %92, %95 : vector<8x8xf32>
    %97 = math.exp %96 : vector<8x8xf32>
    %cst_36 = arith.constant dense<0.000000e+00> : vector<8xf32>
    %98 = vector.multi_reduction <add>, %97, %cst_36 [1] : vector<8x8xf32> to vector<8xf32>
    %99 = vector.shape_cast %98 : vector<8xf32> to vector<8x1xf32>
    %100 = tpu.reciprocal %99 {approx = true} : vector<8x1xf32> -> vector<8x1xf32>
    %101 = vector.broadcast %100 : vector<8x1xf32> to vector<8x8xf32>
    %102 = arith.mulf %97, %101 : vector<8x8xf32>
    %cst_37 = arith.constant dense<0.000000e+00> : vector<8x8xf32>
    %103 = tpu.matmul %102, %87, %cst_37 {dimension_numbers = #tpu.dot_dimension_numbers<[1], [0], [0], [1], [0, 0, 1, 1], [], []>} : vector<8x8xf32>, vector<8x8xf32>, vector<8x8xf32> -> vector<8x8xf32>
    %104 = vector.extract_strided_slice %18 {offsets = [24, 0], sizes = [8, 32], strides = [1, 1]} : vector<32x32xf32> to vector<8x32xf32>
    %cst_38 = arith.constant dense<0.000000e+00> : vector<8x32xf32>
    %105 = tpu.matmul %103, %104, %cst_38 {dimension_numbers = #tpu.dot_dimension_numbers<[1], [0], [0], [1], [0, 0, 1, 1], [], []>} : vector<8x8xf32>, vector<8x32xf32>, vector<8x32xf32> -> vector<8x32xf32>
    %106 = arith.addf %84, %105 : vector<8x32xf32>
    %107 = vector.broadcast %19 : vector<1x32xf32> to vector<8x32xf32>
    %108 = arith.addf %106, %107 : vector<8x32xf32>
    %109 = arith.addf %1, %108 : vector<8x32xf32>
    %c0_39 = arith.constant 0 : index
    %c0_40 = arith.constant 0 : index
    %110 = vector.load %arg8[%c0_39, %c0_40] : memref<1x32xf32, #tpu.memory_space<vmem>>, vector<1x32xf32>
    %c0_41 = arith.constant 0 : index
    %c0_42 = arith.constant 0 : index
    %111 = vector.load %arg9[%c0_41, %c0_42] : memref<1x32xf32, #tpu.memory_space<vmem>>, vector<1x32xf32>
    %cst_43 = arith.constant dense<0.000000e+00> : vector<8xf32>
    %112 = vector.multi_reduction <add>, %109, %cst_43 [1] : vector<8x32xf32> to vector<8xf32>
    %113 = vector.shape_cast %112 : vector<8xf32> to vector<8x1xf32>
    %cst_44 = arith.constant 3.200000e+01 : f32
    %114 = vector.broadcast %cst_44 : f32 to vector<8x1xf32>
    %115 = arith.divf %113, %114 : vector<8x1xf32>
    %116 = vector.broadcast %115 : vector<8x1xf32> to vector<8x32xf32>
    %117 = arith.subf %109, %116 : vector<8x32xf32>
    %118 = arith.mulf %117, %117 : vector<8x32xf32>
    %cst_45 = arith.constant dense<0.000000e+00> : vector<8xf32>
    %119 = vector.multi_reduction <add>, %118, %cst_45 [1] : vector<8x32xf32> to vector<8xf32>
    %120 = vector.shape_cast %119 : vector<8xf32> to vector<8x1xf32>
    %cst_46 = arith.constant 3.200000e+01 : f32
    %121 = vector.broadcast %cst_46 : f32 to vector<8x1xf32>
    %122 = arith.divf %120, %121 : vector<8x1xf32>
    %cst_47 = arith.constant 9.99999974E-6 : f32
    %123 = vector.broadcast %cst_47 : f32 to vector<8x1xf32>
    %124 = arith.addf %122, %123 : vector<8x1xf32>
    %125 = math.rsqrt %124 : vector<8x1xf32>
    %126 = vector.broadcast %125 : vector<8x1xf32> to vector<8x32xf32>
    %127 = arith.mulf %117, %126 : vector<8x32xf32>
    %128 = vector.broadcast %110 : vector<1x32xf32> to vector<8x32xf32>
    %129 = arith.mulf %127, %128 : vector<8x32xf32>
    %130 = vector.broadcast %111 : vector<1x32xf32> to vector<8x32xf32>
    %131 = arith.addf %129, %130 : vector<8x32xf32>
    %132 = arith.index_cast %arg0 : i32 to index
    %133 = memref.load %arg1[%132] : memref<2xi32, #tpu.memory_space<smem>>
    %134 = tpu.iota {dimensions = array<i32: 1>} : vector<8x9xi32>
    %135 = vector.broadcast %133 : i32 to vector<8x9xi32>
    %136 = arith.cmpi sge, %134, %135 : vector<8x9xi32>
    %cst_48 = arith.constant -1.000000e+30 : f32
    %cst_49 = arith.constant 0.000000e+00 : f32
    %137 = vector.broadcast %cst_48 : f32 to vector<8x9xf32>
    %138 = vector.broadcast %cst_49 : f32 to vector<8x9xf32>
    %139 = arith.select %136, %137, %138 : vector<8x9xi1>, vector<8x9xf32>
    %c0_50 = arith.constant 0 : index
    %c0_51 = arith.constant 0 : index
    %140 = vector.load %arg10[%c0_50, %c0_51] : memref<32x32xf32, #tpu.memory_space<vmem>>, vector<32x32xf32>
    %cst_52 = arith.constant dense<0.000000e+00> : vector<8x32xf32>
    %141 = tpu.matmul %131, %140, %cst_52 {dimension_numbers = #tpu.dot_dimension_numbers<[1], [0], [0], [1], [0, 0, 1, 1], [], []>} : vector<8x32xf32>, vector<32x32xf32>, vector<8x32xf32> -> vector<8x32xf32>
    %c0_53 = arith.constant 0 : index
    %c0_54 = arith.constant 0 : index
    %142 = vector.load %arg11[%c0_53, %c0_54] : memref<1x32xf32, #tpu.memory_space<vmem>>, vector<1x32xf32>
    %143 = vector.broadcast %142 : vector<1x32xf32> to vector<8x32xf32>
    %144 = arith.addf %141, %143 : vector<8x32xf32>
    %c0_55 = arith.constant 0 : index
    %c0_56 = arith.constant 0 : index
    %145 = vector.load %arg12[%c0_55, %c0_56] : memref<32x64xf32, #tpu.memory_space<vmem>>, vector<32x64xf32>
    %cst_57 = arith.constant dense<0.000000e+00> : vector<9x64xf32>
    %146 = tpu.matmul %3, %145, %cst_57 {dimension_numbers = #tpu.dot_dimension_numbers<[1], [0], [0], [1], [0, 0, 1, 1], [], []>} : vector<9x32xf32>, vector<32x64xf32>, vector<9x64xf32> -> vector<9x64xf32>
    %c0_58 = arith.constant 0 : index
    %c0_59 = arith.constant 0 : index
    %147 = vector.load %arg13[%c0_58, %c0_59] : memref<1x64xf32, #tpu.memory_space<vmem>>, vector<1x64xf32>
    %148 = vector.broadcast %147 : vector<1x64xf32> to vector<9x64xf32>
    %149 = arith.addf %146, %148 : vector<9x64xf32>
    %150 = vector.extract_strided_slice %149 {offsets = [0, 0], sizes = [9, 32], strides = [1, 1]} : vector<9x64xf32> to vector<9x32xf32>
    %151 = vector.extract_strided_slice %149 {offsets = [0, 32], sizes = [9, 32], strides = [1, 1]} : vector<9x64xf32> to vector<9x32xf32>
    %c0_60 = arith.constant 0 : index
    %c0_61 = arith.constant 0 : index
    %152 = vector.load %arg14[%c0_60, %c0_61] : memref<32x32xf32, #tpu.memory_space<vmem>>, vector<32x32xf32>
    %c0_62 = arith.constant 0 : index
    %c0_63 = arith.constant 0 : index
    %153 = vector.load %arg15[%c0_62, %c0_63] : memref<1x32xf32, #tpu.memory_space<vmem>>, vector<1x32xf32>
    %154 = vector.extract_strided_slice %144 {offsets = [0, 0], sizes = [8, 8], strides = [1, 1]} : vector<8x32xf32> to vector<8x8xf32>
    %155 = vector.extract_strided_slice %150 {offsets = [0, 0], sizes = [9, 8], strides = [1, 1]} : vector<9x32xf32> to vector<9x8xf32>
    %156 = vector.extract_strided_slice %151 {offsets = [0, 0], sizes = [9, 8], strides = [1, 1]} : vector<9x32xf32> to vector<9x8xf32>
    %157 = tpu.transpose %155, [1, 0] : vector<9x8xf32> -> vector<8x9xf32>
    %cst_64 = arith.constant dense<0.000000e+00> : vector<8x9xf32>
    %158 = tpu.matmul %154, %157, %cst_64 {dimension_numbers = #tpu.dot_dimension_numbers<[1], [0], [0], [1], [0, 0, 1, 1], [], []>} : vector<8x8xf32>, vector<8x9xf32>, vector<8x9xf32> -> vector<8x9xf32>
    %cst_65 = arith.constant 0.353553385 : f32
    %159 = vector.broadcast %cst_65 : f32 to vector<8x9xf32>
    %160 = arith.mulf %158, %159 : vector<8x9xf32>
    %161 = arith.addf %160, %139 : vector<8x9xf32>
    %cst_66 = arith.constant dense<0xFF800000> : vector<8xf32>
    %162 = vector.multi_reduction <maximumf>, %161, %cst_66 [1] : vector<8x9xf32> to vector<8xf32>
    %163 = vector.shape_cast %162 : vector<8xf32> to vector<8x1xf32>
    %164 = vector.broadcast %163 : vector<8x1xf32> to vector<8x9xf32>
    %165 = arith.subf %161, %164 : vector<8x9xf32>
    %166 = math.exp %165 : vector<8x9xf32>
    %cst_67 = arith.constant dense<0.000000e+00> : vector<8xf32>
    %167 = vector.multi_reduction <add>, %166, %cst_67 [1] : vector<8x9xf32> to vector<8xf32>
    %168 = vector.shape_cast %167 : vector<8xf32> to vector<8x1xf32>
    %169 = tpu.reciprocal %168 {approx = true} : vector<8x1xf32> -> vector<8x1xf32>
    %170 = vector.broadcast %169 : vector<8x1xf32> to vector<8x9xf32>
    %171 = arith.mulf %166, %170 : vector<8x9xf32>
    %cst_68 = arith.constant dense<0.000000e+00> : vector<8x8xf32>
    %172 = tpu.matmul %171, %156, %cst_68 {dimension_numbers = #tpu.dot_dimension_numbers<[1], [0], [0], [1], [0, 0, 1, 1], [], []>} : vector<8x9xf32>, vector<9x8xf32>, vector<8x8xf32> -> vector<8x8xf32>
    %173 = vector.extract_strided_slice %152 {offsets = [0, 0], sizes = [8, 32], strides = [1, 1]} : vector<32x32xf32> to vector<8x32xf32>
    %cst_69 = arith.constant dense<0.000000e+00> : vector<8x32xf32>
    %174 = tpu.matmul %172, %173, %cst_69 {dimension_numbers = #tpu.dot_dimension_numbers<[1], [0], [0], [1], [0, 0, 1, 1], [], []>} : vector<8x8xf32>, vector<8x32xf32>, vector<8x32xf32> -> vector<8x32xf32>
    %175 = vector.extract_strided_slice %144 {offsets = [0, 8], sizes = [8, 8], strides = [1, 1]} : vector<8x32xf32> to vector<8x8xf32>
    %176 = vector.extract_strided_slice %150 {offsets = [0, 8], sizes = [9, 8], strides = [1, 1]} : vector<9x32xf32> to vector<9x8xf32>
    %177 = vector.extract_strided_slice %151 {offsets = [0, 8], sizes = [9, 8], strides = [1, 1]} : vector<9x32xf32> to vector<9x8xf32>
    %178 = tpu.transpose %176, [1, 0] : vector<9x8xf32> -> vector<8x9xf32>
    %cst_70 = arith.constant dense<0.000000e+00> : vector<8x9xf32>
    %179 = tpu.matmul %175, %178, %cst_70 {dimension_numbers = #tpu.dot_dimension_numbers<[1], [0], [0], [1], [0, 0, 1, 1], [], []>} : vector<8x8xf32>, vector<8x9xf32>, vector<8x9xf32> -> vector<8x9xf32>
    %cst_71 = arith.constant 0.353553385 : f32
    %180 = vector.broadcast %cst_71 : f32 to vector<8x9xf32>
    %181 = arith.mulf %179, %180 : vector<8x9xf32>
    %182 = arith.addf %181, %139 : vector<8x9xf32>
    %cst_72 = arith.constant dense<0xFF800000> : vector<8xf32>
    %183 = vector.multi_reduction <maximumf>, %182, %cst_72 [1] : vector<8x9xf32> to vector<8xf32>
    %184 = vector.shape_cast %183 : vector<8xf32> to vector<8x1xf32>
    %185 = vector.broadcast %184 : vector<8x1xf32> to vector<8x9xf32>
    %186 = arith.subf %182, %185 : vector<8x9xf32>
    %187 = math.exp %186 : vector<8x9xf32>
    %cst_73 = arith.constant dense<0.000000e+00> : vector<8xf32>
    %188 = vector.multi_reduction <add>, %187, %cst_73 [1] : vector<8x9xf32> to vector<8xf32>
    %189 = vector.shape_cast %188 : vector<8xf32> to vector<8x1xf32>
    %190 = tpu.reciprocal %189 {approx = true} : vector<8x1xf32> -> vector<8x1xf32>
    %191 = vector.broadcast %190 : vector<8x1xf32> to vector<8x9xf32>
    %192 = arith.mulf %187, %191 : vector<8x9xf32>
    %cst_74 = arith.constant dense<0.000000e+00> : vector<8x8xf32>
    %193 = tpu.matmul %192, %177, %cst_74 {dimension_numbers = #tpu.dot_dimension_numbers<[1], [0], [0], [1], [0, 0, 1, 1], [], []>} : vector<8x9xf32>, vector<9x8xf32>, vector<8x8xf32> -> vector<8x8xf32>
    %194 = vector.extract_strided_slice %152 {offsets = [8, 0], sizes = [8, 32], strides = [1, 1]} : vector<32x32xf32> to vector<8x32xf32>
    %cst_75 = arith.constant dense<0.000000e+00> : vector<8x32xf32>
    %195 = tpu.matmul %193, %194, %cst_75 {dimension_numbers = #tpu.dot_dimension_numbers<[1], [0], [0], [1], [0, 0, 1, 1], [], []>} : vector<8x8xf32>, vector<8x32xf32>, vector<8x32xf32> -> vector<8x32xf32>
    %196 = arith.addf %174, %195 : vector<8x32xf32>
    %197 = vector.extract_strided_slice %144 {offsets = [0, 16], sizes = [8, 8], strides = [1, 1]} : vector<8x32xf32> to vector<8x8xf32>
    %198 = vector.extract_strided_slice %150 {offsets = [0, 16], sizes = [9, 8], strides = [1, 1]} : vector<9x32xf32> to vector<9x8xf32>
    %199 = vector.extract_strided_slice %151 {offsets = [0, 16], sizes = [9, 8], strides = [1, 1]} : vector<9x32xf32> to vector<9x8xf32>
    %200 = tpu.transpose %198, [1, 0] : vector<9x8xf32> -> vector<8x9xf32>
    %cst_76 = arith.constant dense<0.000000e+00> : vector<8x9xf32>
    %201 = tpu.matmul %197, %200, %cst_76 {dimension_numbers = #tpu.dot_dimension_numbers<[1], [0], [0], [1], [0, 0, 1, 1], [], []>} : vector<8x8xf32>, vector<8x9xf32>, vector<8x9xf32> -> vector<8x9xf32>
    %cst_77 = arith.constant 0.353553385 : f32
    %202 = vector.broadcast %cst_77 : f32 to vector<8x9xf32>
    %203 = arith.mulf %201, %202 : vector<8x9xf32>
    %204 = arith.addf %203, %139 : vector<8x9xf32>
    %cst_78 = arith.constant dense<0xFF800000> : vector<8xf32>
    %205 = vector.multi_reduction <maximumf>, %204, %cst_78 [1] : vector<8x9xf32> to vector<8xf32>
    %206 = vector.shape_cast %205 : vector<8xf32> to vector<8x1xf32>
    %207 = vector.broadcast %206 : vector<8x1xf32> to vector<8x9xf32>
    %208 = arith.subf %204, %207 : vector<8x9xf32>
    %209 = math.exp %208 : vector<8x9xf32>
    %cst_79 = arith.constant dense<0.000000e+00> : vector<8xf32>
    %210 = vector.multi_reduction <add>, %209, %cst_79 [1] : vector<8x9xf32> to vector<8xf32>
    %211 = vector.shape_cast %210 : vector<8xf32> to vector<8x1xf32>
    %212 = tpu.reciprocal %211 {approx = true} : vector<8x1xf32> -> vector<8x1xf32>
    %213 = vector.broadcast %212 : vector<8x1xf32> to vector<8x9xf32>
    %214 = arith.mulf %209, %213 : vector<8x9xf32>
    %cst_80 = arith.constant dense<0.000000e+00> : vector<8x8xf32>
    %215 = tpu.matmul %214, %199, %cst_80 {dimension_numbers = #tpu.dot_dimension_numbers<[1], [0], [0], [1], [0, 0, 1, 1], [], []>} : vector<8x9xf32>, vector<9x8xf32>, vector<8x8xf32> -> vector<8x8xf32>
    %216 = vector.extract_strided_slice %152 {offsets = [16, 0], sizes = [8, 32], strides = [1, 1]} : vector<32x32xf32> to vector<8x32xf32>
    %cst_81 = arith.constant dense<0.000000e+00> : vector<8x32xf32>
    %217 = tpu.matmul %215, %216, %cst_81 {dimension_numbers = #tpu.dot_dimension_numbers<[1], [0], [0], [1], [0, 0, 1, 1], [], []>} : vector<8x8xf32>, vector<8x32xf32>, vector<8x32xf32> -> vector<8x32xf32>
    %218 = arith.addf %196, %217 : vector<8x32xf32>
    %219 = vector.extract_strided_slice %144 {offsets = [0, 24], sizes = [8, 8], strides = [1, 1]} : vector<8x32xf32> to vector<8x8xf32>
    %220 = vector.extract_strided_slice %150 {offsets = [0, 24], sizes = [9, 8], strides = [1, 1]} : vector<9x32xf32> to vector<9x8xf32>
    %221 = vector.extract_strided_slice %151 {offsets = [0, 24], sizes = [9, 8], strides = [1, 1]} : vector<9x32xf32> to vector<9x8xf32>
    %222 = tpu.transpose %220, [1, 0] : vector<9x8xf32> -> vector<8x9xf32>
    %cst_82 = arith.constant dense<0.000000e+00> : vector<8x9xf32>
    %223 = tpu.matmul %219, %222, %cst_82 {dimension_numbers = #tpu.dot_dimension_numbers<[1], [0], [0], [1], [0, 0, 1, 1], [], []>} : vector<8x8xf32>, vector<8x9xf32>, vector<8x9xf32> -> vector<8x9xf32>
    %cst_83 = arith.constant 0.353553385 : f32
    %224 = vector.broadcast %cst_83 : f32 to vector<8x9xf32>
    %225 = arith.mulf %223, %224 : vector<8x9xf32>
    %226 = arith.addf %225, %139 : vector<8x9xf32>
    %cst_84 = arith.constant dense<0xFF800000> : vector<8xf32>
    %227 = vector.multi_reduction <maximumf>, %226, %cst_84 [1] : vector<8x9xf32> to vector<8xf32>
    %228 = vector.shape_cast %227 : vector<8xf32> to vector<8x1xf32>
    %229 = vector.broadcast %228 : vector<8x1xf32> to vector<8x9xf32>
    %230 = arith.subf %226, %229 : vector<8x9xf32>
    %231 = math.exp %230 : vector<8x9xf32>
    %cst_85 = arith.constant dense<0.000000e+00> : vector<8xf32>
    %232 = vector.multi_reduction <add>, %231, %cst_85 [1] : vector<8x9xf32> to vector<8xf32>
    %233 = vector.shape_cast %232 : vector<8xf32> to vector<8x1xf32>
    %234 = tpu.reciprocal %233 {approx = true} : vector<8x1xf32> -> vector<8x1xf32>
    %235 = vector.broadcast %234 : vector<8x1xf32> to vector<8x9xf32>
    %236 = arith.mulf %231, %235 : vector<8x9xf32>
    %cst_86 = arith.constant dense<0.000000e+00> : vector<8x8xf32>
    %237 = tpu.matmul %236, %221, %cst_86 {dimension_numbers = #tpu.dot_dimension_numbers<[1], [0], [0], [1], [0, 0, 1, 1], [], []>} : vector<8x9xf32>, vector<9x8xf32>, vector<8x8xf32> -> vector<8x8xf32>
    %238 = vector.extract_strided_slice %152 {offsets = [24, 0], sizes = [8, 32], strides = [1, 1]} : vector<32x32xf32> to vector<8x32xf32>
    %cst_87 = arith.constant dense<0.000000e+00> : vector<8x32xf32>
    %239 = tpu.matmul %237, %238, %cst_87 {dimension_numbers = #tpu.dot_dimension_numbers<[1], [0], [0], [1], [0, 0, 1, 1], [], []>} : vector<8x8xf32>, vector<8x32xf32>, vector<8x32xf32> -> vector<8x32xf32>
    %240 = arith.addf %218, %239 : vector<8x32xf32>
    %241 = vector.broadcast %153 : vector<1x32xf32> to vector<8x32xf32>
    %242 = arith.addf %240, %241 : vector<8x32xf32>
    %243 = arith.addf %131, %242 : vector<8x32xf32>
    %c0_88 = arith.constant 0 : index
    %c0_89 = arith.constant 0 : index
    %244 = vector.load %arg16[%c0_88, %c0_89] : memref<1x32xf32, #tpu.memory_space<vmem>>, vector<1x32xf32>
    %c0_90 = arith.constant 0 : index
    %c0_91 = arith.constant 0 : index
    %245 = vector.load %arg17[%c0_90, %c0_91] : memref<1x32xf32, #tpu.memory_space<vmem>>, vector<1x32xf32>
    %cst_92 = arith.constant dense<0.000000e+00> : vector<8xf32>
    %246 = vector.multi_reduction <add>, %243, %cst_92 [1] : vector<8x32xf32> to vector<8xf32>
    %247 = vector.shape_cast %246 : vector<8xf32> to vector<8x1xf32>
    %cst_93 = arith.constant 3.200000e+01 : f32
    %248 = vector.broadcast %cst_93 : f32 to vector<8x1xf32>
    %249 = arith.divf %247, %248 : vector<8x1xf32>
    %250 = vector.broadcast %249 : vector<8x1xf32> to vector<8x32xf32>
    %251 = arith.subf %243, %250 : vector<8x32xf32>
    %252 = arith.mulf %251, %251 : vector<8x32xf32>
    %cst_94 = arith.constant dense<0.000000e+00> : vector<8xf32>
    %253 = vector.multi_reduction <add>, %252, %cst_94 [1] : vector<8x32xf32> to vector<8xf32>
    %254 = vector.shape_cast %253 : vector<8xf32> to vector<8x1xf32>
    %cst_95 = arith.constant 3.200000e+01 : f32
    %255 = vector.broadcast %cst_95 : f32 to vector<8x1xf32>
    %256 = arith.divf %254, %255 : vector<8x1xf32>
    %cst_96 = arith.constant 9.99999974E-6 : f32
    %257 = vector.broadcast %cst_96 : f32 to vector<8x1xf32>
    %258 = arith.addf %256, %257 : vector<8x1xf32>
    %259 = math.rsqrt %258 : vector<8x1xf32>
    %260 = vector.broadcast %259 : vector<8x1xf32> to vector<8x32xf32>
    %261 = arith.mulf %251, %260 : vector<8x32xf32>
    %262 = vector.broadcast %244 : vector<1x32xf32> to vector<8x32xf32>
    %263 = arith.mulf %261, %262 : vector<8x32xf32>
    %264 = vector.broadcast %245 : vector<1x32xf32> to vector<8x32xf32>
    %265 = arith.addf %263, %264 : vector<8x32xf32>
    %c0_97 = arith.constant 0 : index
    %c0_98 = arith.constant 0 : index
    %266 = vector.load %arg18[%c0_97, %c0_98] : memref<32x128xf32, #tpu.memory_space<vmem>>, vector<32x128xf32>
    %cst_99 = arith.constant dense<0.000000e+00> : vector<8x128xf32>
    %267 = tpu.matmul %265, %266, %cst_99 {dimension_numbers = #tpu.dot_dimension_numbers<[1], [0], [0], [1], [0, 0, 1, 1], [], []>} : vector<8x32xf32>, vector<32x128xf32>, vector<8x128xf32> -> vector<8x128xf32>
    %c0_100 = arith.constant 0 : index
    %c0_101 = arith.constant 0 : index
    %268 = vector.load %arg19[%c0_100, %c0_101] : memref<1x128xf32, #tpu.memory_space<vmem>>, vector<1x128xf32>
    %269 = vector.broadcast %268 : vector<1x128xf32> to vector<8x128xf32>
    %270 = arith.addf %267, %269 : vector<8x128xf32>
    %cst_102 = arith.constant 0.000000e+00 : f32
    %271 = vector.broadcast %cst_102 : f32 to vector<8x128xf32>
    %272 = arith.maximumf %270, %271 : vector<8x128xf32>
    %c0_103 = arith.constant 0 : index
    %c0_104 = arith.constant 0 : index
    %273 = vector.load %arg20[%c0_103, %c0_104] : memref<128x32xf32, #tpu.memory_space<vmem>>, vector<128x32xf32>
    %cst_105 = arith.constant dense<0.000000e+00> : vector<8x32xf32>
    %274 = tpu.matmul %272, %273, %cst_105 {dimension_numbers = #tpu.dot_dimension_numbers<[1], [0], [0], [1], [0, 0, 1, 1], [], []>} : vector<8x128xf32>, vector<128x32xf32>, vector<8x32xf32> -> vector<8x32xf32>
    %c0_106 = arith.constant 0 : index
    %c0_107 = arith.constant 0 : index
    %275 = vector.load %arg21[%c0_106, %c0_107] : memref<1x32xf32, #tpu.memory_space<vmem>>, vector<1x32xf32>
    %276 = vector.broadcast %275 : vector<1x32xf32> to vector<8x32xf32>
    %277 = arith.addf %274, %276 : vector<8x32xf32>
    %278 = arith.addf %265, %277 : vector<8x32xf32>
    %c0_108 = arith.constant 0 : index
    %c0_109 = arith.constant 0 : index
    %279 = vector.load %arg22[%c0_108, %c0_109] : memref<1x32xf32, #tpu.memory_space<vmem>>, vector<1x32xf32>
    %c0_110 = arith.constant 0 : index
    %c0_111 = arith.constant 0 : index
    %280 = vector.load %arg23[%c0_110, %c0_111] : memref<1x32xf32, #tpu.memory_space<vmem>>, vector<1x32xf32>
    %cst_112 = arith.constant dense<0.000000e+00> : vector<8xf32>
    %281 = vector.multi_reduction <add>, %278, %cst_112 [1] : vector<8x32xf32> to vector<8xf32>
    %282 = vector.shape_cast %281 : vector<8xf32> to vector<8x1xf32>
    %cst_113 = arith.constant 3.200000e+01 : f32
    %283 = vector.broadcast %cst_113 : f32 to vector<8x1xf32>
    %284 = arith.divf %282, %283 : vector<8x1xf32>
    %285 = vector.broadcast %284 : vector<8x1xf32> to vector<8x32xf32>
    %286 = arith.subf %278, %285 : vector<8x32xf32>
    %287 = arith.mulf %286, %286 : vector<8x32xf32>
    %cst_114 = arith.constant dense<0.000000e+00> : vector<8xf32>
    %288 = vector.multi_reduction <add>, %287, %cst_114 [1] : vector<8x32xf32> to vector<8xf32>
    %289 = vector.shape_cast %288 : vector<8xf32> to vector<8x1xf32>
    %cst_115 = arith.constant 3.200000e+01 : f32
    %290 = vector.broadcast %cst_115 : f32 to vector<8x1xf32>
    %291 = arith.divf %289, %290 : vector<8x1xf32>
    %cst_116 = arith.constant 9.99999974E-6 : f32
    %292 = vector.broadcast %cst_116 : f32 to vector<8x1xf32>
    %293 = arith.addf %291, %292 : vector<8x1xf32>
    %294 = math.rsqrt %293 : vector<8x1xf32>
    %295 = vector.broadcast %294 : vector<8x1xf32> to vector<8x32xf32>
    %296 = arith.mulf %286, %295 : vector<8x32xf32>
    %297 = vector.broadcast %279 : vector<1x32xf32> to vector<8x32xf32>
    %298 = arith.mulf %296, %297 : vector<8x32xf32>
    %299 = vector.broadcast %280 : vector<1x32xf32> to vector<8x32xf32>
    %300 = arith.addf %298, %299 : vector<8x32xf32>
    %c0_117 = arith.constant 0 : index
    %c0_118 = arith.constant 0 : index
    %c0_119 = arith.constant 0 : index
    %301 = vector.load %arg24[%c0_117, %c0_118, %c0_119] : memref<1x8x32xf32, #tpu.memory_space<vmem>>, vector<1x8x32xf32>
    %302 = vector.shape_cast %301 : vector<1x8x32xf32> to vector<8x32xf32>
    %303 = vector.shape_cast %300 : vector<8x32xf32> to vector<1x8x32xf32>
    tpu.vector_store %arg24[%c0_117, %c0_118, %c0_119], %303 {strides = array<i32>} : memref<1x8x32xf32, #tpu.memory_space<vmem>>, vector<1x8x32xf32>,
    return
  }
  func.func @transform_0(%arg0: i32, %arg1: memref<2xi32, #tpu.memory_space<smem>>) -> (i32, i32, i32) {
    %c0_i32 = arith.constant 0 : i32
    %c0_i32_0 = arith.constant 0 : i32
    %c0_i32_1 = arith.constant 0 : i32
    return %arg0, %c0_i32, %c0_i32_0 : i32, i32, i32
  }
  func.func @transform_1(%arg0: i32, %arg1: memref<2xi32, #tpu.memory_space<smem>>) -> (i32, i32, i32) {
    %c0_i32 = arith.constant 0 : i32
    %c0_i32_0 = arith.constant 0 : i32
    %c0_i32_1 = arith.constant 0 : i32
    return %arg0, %c0_i32, %c0_i32_0 : i32, i32, i32
  }
  func.func @transform_2(%arg0: i32, %arg1: memref<2xi32, #tpu.memory_space<smem>>) -> (i32, i32) {
    %c0_i32 = arith.constant 0 : i32
    %c0_i32_0 = arith.constant 0 : i32
    %c0_i32_1 = arith.constant 0 : i32
    return %c0_i32, %c0_i32_0 : i32, i32
  }
  func.func @transform_3(%arg0: i32, %arg1: memref<2xi32, #tpu.memory_space<smem>>) -> (i32, i32) {
    %c0_i32 = arith.constant 0 : i32
    %c0_i32_0 = arith.constant 0 : i32
    %c0_i32_1 = arith.constant 0 : i32
    return %c0_i32, %c0_i32_0 : i32, i32
  }
  func.func @transform_4(%arg0: i32, %arg1: memref<2xi32, #tpu.memory_space<smem>>) -> (i32, i32) {
    %c0_i32 = arith.constant 0 : i32
    %c0_i32_0 = arith.constant 0 : i32
    %c0_i32_1 = arith.constant 0 : i32
    return %c0_i32, %c0_i32_0 : i32, i32
  }
  func.func @transform_5(%arg0: i32, %arg1: memref<2xi32, #tpu.memory_space<smem>>) -> (i32, i32) {
    %c0_i32 = arith.constant 0 : i32
    %c0_i32_0 = arith.constant 0 : i32
    %c0_i32_1 = arith.constant 0 : i32
    return %c0_i32, %c0_i32_0 : i32, i32
  }
  func.func @transform_6(%arg0: i32, %arg1: memref<2xi32, #tpu.memory_space<smem>>) -> (i32, i32) {
    %c0_i32 = arith.constant 0 : i32
    %c0_i32_0 = arith.constant 0 : i32
    %c0_i32_1 = arith.constant 0 : i32
    return %c0_i32, %c0_i32_0 : i32, i32
  }
  func.func @transform_7(%arg0: i32, %arg1: memref<2xi32, #tpu.memory_space<smem>>) -> (i32, i32) {
    %c0_i32 = arith.constant 0 : i32
    %c0_i32_0 = arith.constant 0 : i32
    %c0_i32_1 = arith.constant 0 : i32
    return %c0_i32, %c0_i32_0 : i32, i32
  }
  func.func @transform_8(%arg0: i32, %arg1: memref<2xi32, #tpu.memory_space<smem>>) -> (i32, i32) {
    %c0_i32 = arith.constant 0 : i32
    %c0_i32_0 = arith.constant 0 : i32
    %c0_i32_1 = arith.constant 0 : i32
    return %c0_i32, %c0_i32_0 : i32, i32
  }
  func.func @transform_9(%arg0: i32, %arg1: memref<2xi32, #tpu.memory_space<smem>>) -> (i32, i32) {
    %c0_i32 = arith.constant 0 : i32
    %c0_i32_0 = arith.constant 0 : i32
    %c0_i32_1 = arith.constant 0 : i32
    return %c0_i32, %c0_i32_0 : i32, i32
  }
  func.func @transform_10(%arg0: i32, %arg1: memref<2xi32, #tpu.memory_space<smem>>) -> (i32, i32) {
    %c0_i32 = arith.constant 0 : i32
    %c0_i32_0 = arith.constant 0 : i32
    %c0_i32_1 = arith.constant 0 : i32
    return %c0_i32, %c0_i32_0 : i32, i32
  }
  func.func @transform_11(%arg0: i32, %arg1: memref<2xi32, #tpu.memory_space<smem>>) -> (i32, i32) {
    %c0_i32 = arith.constant 0 : i32
    %c0_i32_0 = arith.constant 0 : i32
    %c0_i32_1 = arith.constant 0 : i32
    return %c0_i32, %c0_i32_0 : i32, i32
  }
  func.func @transform_12(%arg0: i32, %arg1: memref<2xi32, #tpu.memory_space<smem>>) -> (i32, i32) {
    %c0_i32 = arith.constant 0 : i32
    %c0_i32_0 = arith.constant 0 : i32
    %c0_i32_1 = arith.constant 0 : i32
    return %c0_i32, %c0_i32_0 : i32, i32
  }
  func.func @transform_13(%arg0: i32, %arg1: memref<2xi32, #tpu.memory_space<smem>>) -> (i32, i32) {
    %c0_i32 = arith.constant 0 : i32
    %c0_i32_0 = arith.constant 0 : i32
    %c0_i32_1 = arith.constant 0 : i32
    return %c0_i32, %c0_i32_0 : i32, i32
  }
  func.func @transform_14(%arg0: i32, %arg1: memref<2xi32, #tpu.memory_space<smem>>) -> (i32, i32) {
    %c0_i32 = arith.constant 0 : i32
    %c0_i32_0 = arith.constant 0 : i32
    %c0_i32_1 = arith.constant 0 : i32
    return %c0_i32, %c0_i32_0 : i32, i32
  }
  func.func @transform_15(%arg0: i32, %arg1: memref<2xi32, #tpu.memory_space<smem>>) -> (i32, i32) {
    %c0_i32 = arith.constant 0 : i32
    %c0_i32_0 = arith.constant 0 : i32
    %c0_i32_1 = arith.constant 0 : i32
    return %c0_i32, %c0_i32_0 : i32, i32
  }
  func.func @transform_16(%arg0: i32, %arg1: memref<2xi32, #tpu.memory_space<smem>>) -> (i32, i32) {
    %c0_i32 = arith.constant 0 : i32
    %c0_i32_0 = arith.constant 0 : i32
    %c0_i32_1 = arith.constant 0 : i32
    return %c0_i32, %c0_i32_0 : i32, i32
  }
  func.func @transform_17(%arg0: i32, %arg1: memref<2xi32, #tpu.memory_space<smem>>) -> (i32, i32) {
    %c0_i32 = arith.constant 0 : i32
    %c0_i32_0 = arith.constant 0 : i32
    %c0_i32_1 = arith.constant 0 : i32
    return %c0_i32, %c0_i32_0 : i32, i32
  }
  func.func @transform_18(%arg0: i32, %arg1: memref<2xi32, #tpu.memory_space<smem>>) -> (i32, i32) {
    %c0_i32 = arith.constant 0 : i32
    %c0_i32_0 = arith.constant 0 : i32
    %c0_i32_1 = arith.constant 0 : i32
    return %c0_i32, %c0_i32_0 : i32, i32
  }
  func.func @transform_19(%arg0: i32, %arg1: memref<2xi32, #tpu.memory_space<smem>>) -> (i32, i32) {
    %c0_i32 = arith.constant 0 : i32
    %c0_i32_0 = arith.constant 0 : i32
    %c0_i32_1 = arith.constant 0 : i32
    return %c0_i32, %c0_i32_0 : i32, i32
  }
  func.func @transform_20(%arg0: i32, %arg1: memref<2xi32, #tpu.memory_space<smem>>) -> (i32, i32) {
    %c0_i32 = arith.constant 0 : i32
    %c0_i32_0 = arith.constant 0 : i32
    %c0_i32_1 = arith.constant 0 : i32
    return %c0_i32, %c0_i32_0 : i32, i32
  }
  func.func @transform_21(%arg0: i32, %arg1: memref<2xi32, #tpu.memory_space<smem>>) -> (i32, i32) {
    %c0_i32 = arith.constant 0 : i32
    %c0_i32_0 = arith.constant 0 : i32
    %c0_i32_1 = arith.constant 0 : i32
    return %c0_i32, %c0_i32_0 : i32, i32
  }
  func.func @transform_22(%arg0: i32, %arg1: memref<2xi32, #tpu.memory_space<smem>>) -> (i32, i32, i32) {
    %c0_i32 = arith.constant 0 : i32
    %c0_i32_0 = arith.constant 0 : i32
    %c0_i32_1 = arith.constant 0 : i32
    return %arg0, %c0_i32, %c0_i32_0 : i32, i32, i32
  }
}

</mosaic_0001>

<bundles_post_ra>
// kernel: transformer_enc_dec_forward.9
= control target key start
LH: loop header
LB: loop body
LE: loop exit
PB: predicated region body
PF: predicated region fallthrough
CT: control target
= control target key end

     0   :  { %s308_s1 = inlined_call_operand.vmem [shape: f32[128,128], index: 1, kind: input, shape index: {}]   ;;  %s309_s0 = inlined_call_operand.vmem [shape: f32[16,128], index: 0, kind: input, shape index: {}]   ;;  %s310_s2 = inlined_call_operand.vmem [shape: f32[1,128], index: 2, kind: input, shape index: {}]   ;;  %s311_s3 = inlined_call_operand.vmem [shape: f32[16,128], index: 3, kind: output, shape index: {}]  }
   0x1   :  { %v24_v0 = vld [vmem:[%s308_s1] sm:$0xff]  ;;  %v25_v1 = vld [vmem:[%s308_s1 + $0x8] sm:$0xff]  ;;  %v26_v2 = vld [vmem:[%s308_s1 + $0x10] sm:$0xff] }
   0x2   :  { %v193_v3 = vpack.c.bf16 %v25_v1, %v24_v0  ;;  %v27_v4 = vld [vmem:[%s308_s1 + $0x18] sm:$0xff]  ;;  %v28_v6 = vld [vmem:[%s308_s1 + $0x20] sm:$0xff]  ;;  %v29_v7 = vld [vmem:[%s308_s1 + $0x28] sm:$0xff] }
   0x3   :  { %v197_v5 = vpack.c.bf16 %v27_v4, %v26_v2  ;;  %v201_v8 = vpack.c.bf16 %v29_v7, %v28_v6  ;;  %v22_v9 = vld [vmem:[%s309_s0] sm:$0xff]  ;;  %v30_v10 = vld [vmem:[%s308_s1 + $0x30] sm:$0xff]  ;;  %v31_v11 = vld [vmem:[%s308_s1 + $0x38] sm:$0xff] }
   0x4   :  { %194 = vmatprep.subr.bf16.mxu0 %v193_v3  ;;  %190 = vmatprep.mubr.f32.mxu0 %v22_v9  ;;  %v205_v12 = vpack.c.bf16 %v31_v11, %v30_v10  ;;  %v32_v13 = vld [vmem:[%s308_s1 + $0x40] sm:$0xff]  ;;  %v33_v14 = vld [vmem:[%s308_s1 + $0x48] sm:$0xff]  ;;  %v34_v16 = vld [vmem:[%s308_s1 + $0x50] sm:$0xff] }
   0x5   :  { %196 = vmatpush3.bf16.msra.mxu0 %v193_v3  ;;  %v209_v15 = vpack.c.bf16 %v33_v14, %v32_v13  ;;  %v35_v17 = vld [vmem:[%s308_s1 + $0x58] sm:$0xff]  ;;  %v36_v19 = vld [vmem:[%s308_s1 + $0x60] sm:$0xff]  ;;  %v37_v20 = vld [vmem:[%s308_s1 + $0x68] sm:$0xff] }
   0x6   :  { %198 = vmatprep.subr.bf16.mxu0 %v197_v5  ;;  %v213_v18 = vpack.c.bf16 %v35_v17, %v34_v16  ;;  %v217_v21 = vpack.c.bf16 %v37_v20, %v36_v19  ;;  %v38_v22 = vld [vmem:[%s308_s1 + $0x70] sm:$0xff]  ;;  %v39_v23 = vld [vmem:[%s308_s1 + $0x78] sm:$0xff]  ;;  %v23_v25 = vld [vmem:[%s309_s0 + $0x8] sm:$0xff] }
   0x7   :  { %v221_v24 = vpack.c.bf16 %v39_v23, %v38_v22  ;;  %v139_v26 = vld [vmem:[%s310_s2] ss:$0 sm:$0xff] }
   0x9   :  { %200 = vmatpush3.bf16.msra.mxu0 %v197_v5 }
   0xa   :  { %202 = vmatprep.subr.bf16.mxu0 %v201_v8 }
   0xd   :  { %204 = vmatpush3.bf16.msra.mxu0 %v201_v8 }
   0xe   :  { %206 = vmatprep.subr.bf16.mxu0 %v205_v12 }
  0x11   :  { %208 = vmatpush3.bf16.msra.mxu0 %v205_v12 }
  0x12   :  { %210 = vmatprep.subr.bf16.mxu0 %v209_v15 }
  0x15   :  { %212 = vmatpush3.bf16.msra.mxu0 %v209_v15 }
  0x16   :  { %214 = vmatprep.subr.bf16.mxu0 %v213_v18 }
  0x19   :  { %216 = vmatpush3.bf16.msra.mxu0 %v213_v18 }
  0x1a   :  { %218 = vmatprep.subr.bf16.mxu0 %v217_v21 }
  0x1d   :  { %220 = vmatpush3.bf16.msra.mxu0 %v217_v21 }
  0x1e   :  { %222 = vmatprep.subr.bf16.mxu0 %v221_v24 }
  0x21   :  { %224 = vmatpush3.bf16.msra.mxu0 %v221_v24 }
  0x24   :  { %191 = vmatmul.mubr.f32.vlgmr.msra.gmra.mrb[0].mxu0 %v23_v25 }
  0xf7   :  { %v192_v27 = vpop.f32.mrb[0].mxu0 }
  0xf8   :  { %v132_v28 = vadd.f32 %v192_v27, %v139_v26  ;;  %v106_v29 = vpop.f32.mrb[1].mxu0 }
  0xf9   :  { %v131_v30 = vadd.f32 %v139_v26, %v106_v29 }
  0xfa   :  { %134 = vst [vmem:[%s311_s3 + $0x8] sm:$0xff] %v132_v28 }
  0xfb   :  { %133 = vst [vmem:[%s311_s3] sm:$0xff] %v131_v30 }

// kernel: transformer_enc_dec_forward.5
= control target key start
LH: loop header
LB: loop body
LE: loop exit
PB: predicated region body
PF: predicated region fallthrough
CT: control target
= control target key end

     0   :  { %s2929_s0 = inlined_call_operand.vmem [shape: s32[2], index: 0, kind: input, shape index: {}]   ;;  %s2930_s1 = inlined_call_operand.vmem [shape: f32[2,9,32], index: 1, kind: input, shape index: {}]   ;;  %s2931_s2 = inlined_call_operand.vmem [shape: f32[32,96], index: 2, kind: input, shape index: {}]   ;;  %s2932_s3 = inlined_call_operand.vmem [shape: f32[1,96], index: 3, kind: input, shape index: {}]   ;;  %s2933_s4 = inlined_call_operand.vmem [shape: f32[32,32], index: 4, kind: input, shape index: {}]   ;;  %s2934_s5 = inlined_call_operand.vmem [shape: f32[1,32], index: 5, kind: input, shape index: {}]   ;;  %s2935_s6 = inlined_call_operand.vmem [shape: f32[1,32], index: 6, kind: input, shape index: {}]   ;;  %s2936_s7 = inlined_call_operand.vmem [shape: f32[1,32], index: 7, kind: input, shape index: {}]   ;;  %s2937_s8 = inlined_call_operand.vmem [shape: f32[32,128], index: 8, kind: input, shape index: {}]   ;;  %s2938_s9 = inlined_call_operand.vmem [shape: f32[1,128], index: 9, kind: input, shape index: {}]   ;;  %s2939_s10 = inlined_call_operand.vmem [shape: f32[128,32], index: 10, kind: input, shape index: {}]   ;;  %s2940_s11 = inlined_call_operand.vmem [shape: f32[1,32], index: 11, kind: input, shape index: {}]   ;;  %s2941_s12 = inlined_call_operand.vmem [shape: f32[1,32], index: 12, kind: input, shape index: {}]   ;;  %s2942_s13 = inlined_call_operand.vmem [shape: f32[1,32], index: 13, kind: input, shape index: {}]   ;;  %s2943_s14 = inlined_call_operand.vmem [shape: f32[2,9,32], index: 14, kind: output, shape index: {}]  }
   0x1   :  { %s19_s15 = sshll.u32 %s2929_s0, 4  ;;  %s20_s15 = int_to_ptr.vmem [resolvable:$true] %s19_s15 }
   0x2   :  { %s2527_s16 = scalar_lea.vmem %s20_s15, 16  ;;  %p2532_p1 = scmp.lt.s32.totalorder %s20_s15, %s20_s15 }
   0x3   :  { %p2528_p0 = scmp.ne.s32.totalorder %s20_s15, %s2527_s16  ;;  %p2533_p2 = scmp.lt.s32.totalorder %s2527_s16, %s2527_s16 }
   0x5   :  { %p2534_p3 = por %p2533_p2, %p2532_p1 }
   0x7   :  { %p2535_p4 = pnand %p2534_p3, %p2528_p0 }
   0x9   :  { %2538 = shalt.err (!%p2535_p4)  }
   0xa   :  { %s2549_s17 = smov [#allocation3]  }
   0xb   :  { %22 = dma.vmem_to_smem %s20_s15, 16, %s2549_s17, [#allocation2] }
   0xc   :  { %2543 = dma.done.wait [#allocation2], 16 }
   0xd   :  { %2544 = vsyncadd [#allocation2], 4294967280 }
   0xe   :  { %24 = sfence }
   0xf   :  { %s2641_s18 = smov 0  }
  0x10 LB: > { %s2647_s0 = sadd.s32 4294967295, %s2547_s18   ;;  %p2059_p5 = scmp.ge.s32.totalorder %s2547_s18, 1  ;;  %s2547_s18 = sphi %s2641_s18, %s30_s18  }
  0x11   : > { %p394_p6 = scmp.lt.s32.totalorder %s2547_s18, 3 }
  0x13   : > { %p395_p7 = pnand %p2059_p5, %p394_p6 }
  0x14   : > { %v456_v0 = vld [vmem:[%s2931_s2] sm:$0xff] (!%p395_p7)  ;;  %v457_v1 = vld [vmem:[%s2931_s2 + $0x8] sm:$0xff] (!%p395_p7)  ;;  %v458_v2 = vld [vmem:[%s2931_s2 + $0x10] sm:$0xff] (!%p395_p7)  ;;  %p438_p8 = scmp.lt.s32.totalorder (!%p395_p7), %s2647_s0, 1  ;;  %vm467_vm0 = vcmask (!%p395_p7), 261120   ;;  %vm560_vm1 = vcmask (!%p395_p7), 64512   ;;  %v451_v19 = vlaneseq (!%p395_p7) }
  0x15   : > { %398 = sbr.rel (%p395_p7) target bundleno = 3718 (0xe86), region = 72  ;;  %v2323_v3 = vpack.c.bf16 (!%p395_p7), %v457_v1, %v456_v0  ;;  %v459_v4 = vld [vmem:[%s2931_s2 + $0x18] sm:$0xff] (!%p395_p7)  ;;  %v2064_v8 = vld [vmem:[%s2932_s3] ss:$0 sm:$0xff] (!%p395_p7)  ;;  %s2550_s19 = smov (!%p395_p7), 96   ;;  %vm2697_vm2 = vmpackc.low (!%p395_p7), %vm560_vm1, %vm560_vm1  ;;  %v2551_v23 = vmov (!%p395_p7), 0.0  }
  0x16   : > { %v2327_v5 = vpack.c.bf16 (!%p395_p7), %v459_v4, %v458_v2  ;;  %s450_s20 = sld [smem:[#allocation3 + %s2647_s0]] (!%p395_p7)  ;;  %v452_v20 = vand.u32 (!%p395_p7), 127, %v451_v19  ;;  %vm652_vm4 = vcmask (!%p395_p7), 65536   ;;  %vm648_vm5 = vcmask (!%p395_p7), 72704   ;;  %s2553_s21 = smov (!%p395_p7), 88  }
  0x17   : > { %2324 = vmatprep.subr.bf16.mxu1 (!%p395_p7), %v2323_v3  ;;  %s2554_s22 = smov (!%p395_p7), 120   ;;  %vm683_vm6 = vcmask (!%p395_p7), 1040384   ;;  %vm2555_vm7 = vmmov (!%p395_p7), 1   ;;  %s2556_s23 = smov (!%p395_p7), 56   ;;  %vm1719_vm9 = vcmask (!%p395_p7), 253952  }
  0x18   : > { %2326 = vmatpush3.bf16.msra.mxu1 (!%p395_p7), %v2323_v3  ;;  %vm2717_vm8 = vmpackc.low (!%p395_p7), %vm683_vm6, %vm2555_vm7  ;;  %s2557_s24 = smov (!%p395_p7), 80   ;;  %s2558_s25 = smov (!%p395_p7), 112  }
  0x19   : > { %2328 = vmatprep.subr.bf16.mxu1 (!%p395_p7), %v2327_v5  ;;  %s2559_s26 = smov (!%p395_p7), 104   ;;  %s2560_s29 = smov (!%p395_p7), 72  }
  0x1c   : > { %s2665_s27 = scalar_select %p438_p8, %s2647_s0, 1  ;;  %2330 = vmatpush3.bf16.msra.mxu1 %v2327_v5  ;;  %v453_v21 = vstv %s450_s20 }
  0x1d   : > { %vm454_vm3 = vcmp.ge.s32.totalorder %v452_v20, %v453_v21  ;;  %s2552_s0 = smov 64   ;;  %s2562_s20 = smov 40  }
  0x1e   : > { %s2114_s28 = sshll.u32 %s2665_s27, 4  ;;  %v2708_v24 = vsel %vm454_vm3, -1e+30, %v2551_v23 }
  0x1f   : > { %s442_s15 = scalar_lea.vmem %s2930_s1, %s2114_s28 }
  0x20   : > { %v2673_v6 = vld [vmem:[%s442_s15] sm:$0xff]  ;;  %v2677_v7 = vld [vmem:[%s442_s15 + $0x8] sm:$0x1] }
  0x21   : > { %2198 = vmatprep.mubr.msk.f32.mxu1 %vm467_vm0, %v2673_v6 }
  0x22   : > { %2199 = vmatmul.mubr.msk.f32.vlgmr.msra.gmra.mrb[0].mxu1 %vm467_vm0, %v2677_v7 }
  0xf5   : > { %v2200_v9 = vpop.f32.mrb[0].mxu1 }
  0xf6   : > { %v2684_v10 = vadd.f32 %v2200_v9, %v2064_v8  ;;  %v540_v11 = vpop.f32.mrb[1].mxu1 }
  0xf7   : > { %v2686_v12 = vadd.f32 %v2064_v8, %v540_v11 }
  0xf9   : > { %2205 = vmatprep.mubr.msk.f32.mxu1 %vm560_vm1, %v2686_v12  ;;  %v2692_v13 = vpack.i.bf16 %v2684_v10, %v2686_v12 }
  0xfb   : > { %2448 = vrot.lane.b32.xlu0 %v2692_v13, %s2550_s19  ;;  %s2561_s19 = smov 48  }
 0x16d   : > { %v2449_v14 = vpop.permute.xlu0 %2448 }
 0x16e   : > { %v2451_v15 = vunpack.i.h.bf16 %v2449_v14  ;;  %v2450_v16 = vunpack.i.l.bf16 %v2449_v14 }
 0x170   : > { %v2331_v18 = vpack.c.bf16 %v2451_v15, %v2450_v16 }
 0x172   : > { %2333 = vmatprep.subr.msk.bf16.mxu1 %vm2697_vm2, %v2331_v18 }
 0x173   : > { %2336 = vmatpush3.bf16.xpose.msk.msra.mxu1 %vm2697_vm2, %v2331_v18 }
 0x17a   : > { %2206 = vmatmul.mubr.msk.f32.vlgmr.msra.gmra.mrb[2].mxu1 %vm560_vm1, %v2684_v10 }
 0x24d   : > { %v2207_v22 = vpop.f32.mrb[2].mxu1 }
 0x24e   : > { %v645_v25 = vmul.f32 0.35355338, %v2207_v22  ;;  %v635_v26 = vpop.f32.mrb[3].mxu1 }
 0x24f   : > { %v644_v27 = vmul.f32 0.35355338, %v635_v26 }
 0x250   : > { %v647_v28 = vadd.f32 %v645_v25, %v2708_v24 }
 0x251   : > { %v646_v29 = vadd.f32 %v644_v27, %v2708_v24 }
 0x252   : > { %v653_v30 = vsel %vm652_vm4, %v647_v28, -inf }
 0x253   : > { %654 = vmax.xlane.f32.xlu1 %v653_v30  ;;  %v649_v31 = vsel %vm648_vm5, %v646_v29, -inf }
 0x254   : > { %650 = vmax.xlane.f32.xlu0 %v649_v31 }
 0x264   : > { %2453 = vrot.lane.b32.xlu1 %v2692_v13, %s2552_s0 }
 0x268   : > { %2458 = vrot.lane.b32.xlu1 %v2692_v13, %s2553_s21 }
 0x26a   : > { %763 = vrot.lane.b32.xlu0 %v2684_v10, %s2554_s22 }
 0x2e0   : > { %v655_v32 = vpop.xlane.xlu1 %654 }
 0x2e1   : > { %v657_v33 = vsub.f32 %v647_v28, %v655_v32  ;;  %v651_v34 = vpop.xlane.xlu0 %650 }
 0x2e2   : > { %v656_v35 = vsub.f32 %v646_v29, %v651_v34 }
 0x2e3   : > { %v660_v36 = vmul.f32 1.442695, %v657_v33 }
 0x2e4   : > { %v658_v37 = vmul.f32 1.442695, %v656_v35  ;;  %v2454_v38 = vpop.permute.xlu1 %2453 }
 0x2e5   : > { %2487 = vpow2.f32 %v660_v36  ;;  %v2456_v39 = vunpack.i.h.bf16 %v2454_v38  ;;  %v2455_v40 = vunpack.i.l.bf16 %v2454_v38  ;;  %v764_v58 = vpop.permute.xlu0 %763 }
 0x2e6   : > { %2489 = vpow2.f32 %v658_v37 }
 0x2e7   : > { %v2337_v42 = vpack.c.bf16 %v2456_v39, %v2455_v40 }
 0x2e8   : > { %v2459_v43 = vpop.permute.xlu1 %2458 }
 0x2e9   : > { %v2461_v44 = vunpack.i.h.bf16 %v2459_v43  ;;  %v2460_v45 = vunpack.i.l.bf16 %v2459_v43  ;;  %2339 = vmatprep.subr.msk.bf16.mxu1 %vm2717_vm8, %v2337_v42  ;;  %v550_v43 = vld [vmem:[%s2933_s4 + $0x8] sm:$0xff] }
 0x2ea   : > { %2342 = vmatpush3.bf16.msk.msra.mxu1 %vm2717_vm8, %v2337_v42  ;;  %2229 = vmatprep.subr.mxu0 %v550_v43 }
 0x2eb   : > { %v2343_v46 = vpack.c.bf16 %v2461_v44, %v2460_v45  ;;  %2230 = vmatpush3.msra.mxu0 %v550_v43  ;;  %v549_v44 = vld [vmem:[%s2933_s4] sm:$0xff] }
 0x2ec   : > { %2234 = vmatprep.subr.mxu0 %v549_v44 }
 0x2ed   : > { %2345 = vmatprep.subr.msk.bf16.mxu1 %vm2697_vm2, %v2343_v46 }
 0x2ef   : > { %v2488_v47 = vpop.eup %2487 }
 0x2f0   : > { %v665_v48 = vsel %vm652_vm4, %v2488_v47, 0.0  ;;  %v2490_v49 = vpop.eup %2489 }
 0x2f1   : > { %666 = vadd.xlane.f32.xlu1 %v665_v48  ;;  %v662_v50 = vsel %vm648_vm5, %v2490_v49, 0.0 }
 0x2f5   : > { %663 = vadd.xlane.f32.xlu1 %v662_v50 }
 0x306   : > { %761 = vrot.lane.b32.xlu1 %v2686_v12, %s2554_s22 }
 0x37e   : > { %v667_v51 = vpop.xlane.xlu1 %666 }
 0x37f   : > { %2491 = vrcp.f32 %v667_v51 }
 0x382   : > { %v664_v52 = vpop.xlane.xlu1 %663 }
 0x383   : > { %2493 = vrcp.f32 %v664_v52 }
 0x386   : > { %v762_v57 = vpop.permute.xlu1 %761 }
 0x389   : > { %v2492_v53 = vpop.eup %2491 }
 0x38a   : > { %v671_v56 = vmul.f32 %v2492_v53, %v2488_v47 }
 0x38d   : > { %v2494_v54 = vpop.eup %2493 }
 0x38e   : > { %v670_v55 = vmul.f32 %v2494_v54, %v2490_v49 }
 0x390   : > { %2212 = vmatprep.mubr.msk.f32.mxu1 %vm648_vm5, %v670_v55 }
 0x391   : > { %2213 = vmatmul.mubr.msk.f32.vlgmr.msra.gmra.mrb[4].mxu1 %vm648_vm5, %v671_v56 }
 0x392   : > { %2348 = vmatpush3.bf16.xpose.msk.msra.mxu1 %vm2697_vm2, %v2343_v46  ;;  %2219 = vmatprep.mubr.msk.f32.mxu1 %vm560_vm1, %v762_v57 }
 0x399   : > { %2220 = vmatmul.mubr.msk.f32.vlgmr.msra.gmra.mrb[6].mxu1 %vm560_vm1, %v764_v58 }
 0x464   : > { %v2736_v59 = vpop.f32.mrb[4].mxu1 }
 0x465   : > { %v2738_v60 = vpop.f32.mrb[5].mxu1 }
 0x46c   : > { %v2221_v61 = vpop.f32.mrb[6].mxu1 }
 0x46d   : > { %v853_v62 = vmul.f32 0.35355338, %v2221_v61  ;;  %v843_v63 = vpop.f32.mrb[7].mxu1 }
 0x46e   : > { %v852_v0 = vmul.f32 0.35355338, %v843_v63 }
 0x46f   : > { %v855_v1 = vadd.f32 %v853_v62, %v2708_v24 }
 0x470   : > { %v854_v2 = vadd.f32 %v852_v0, %v2708_v24 }
 0x471   : > { %v859_v3 = vsel %vm652_vm4, %v855_v1, -inf }
 0x472   : > { %860 = vmax.xlane.f32.xlu0 %v859_v3  ;;  %v856_v4 = vsel %vm648_vm5, %v854_v2, -inf }
 0x473   : > { %857 = vmax.xlane.f32.xlu1 %v856_v4 }
 0x484   : > { %2463 = vrot.lane.b32.xlu1 %v2692_v13, %s2556_s23 }
 0x488   : > { %2468 = vrot.lane.b32.xlu0 %v2692_v13, %s2557_s24  ;;  %1128 = vrot.lane.b32.xlu1 %v2686_v12, %s2558_s25  ;;  %s447_s24 = scalar_lea.vmem %s2943_s14, %s2114_s28 }
 0x48c   : > { %1416 = vrot.lane.b32.xlu0 %v2686_v12, %s2559_s26 }
 0x4ff   : > { %v861_v5 = vpop.xlane.xlu0 %860 }
 0x500   : > { %v863_v8 = vsub.f32 %v855_v1, %v861_v5  ;;  %v858_v9 = vpop.xlane.xlu1 %857 }
 0x501   : > { %v862_v11 = vsub.f32 %v854_v2, %v858_v9 }
 0x502   : > { %v866_v14 = vmul.f32 1.442695, %v863_v8 }
 0x503   : > { %v864_v15 = vmul.f32 1.442695, %v862_v11  ;;  %v2469_v16 = vpop.permute.xlu0 %2468 }
 0x504   : > { %2495 = vpow2.f32 %v866_v14  ;;  %v2464_v18 = vpop.permute.xlu1 %2463  ;;  %v2471_v19 = vunpack.i.h.bf16 %v2469_v16  ;;  %v2470_v20 = vunpack.i.l.bf16 %v2469_v16  ;;  %v551_v16 = vld [vmem:[%s2933_s4 + $0x10] sm:$0xff] }
 0x505   : > { %v2466_v21 = vunpack.i.h.bf16 %v2464_v18  ;;  %v2465_v22 = vunpack.i.l.bf16 %v2464_v18  ;;  %2497 = vpow2.f32 %v864_v15 }
 0x506   : > { %v2355_v25 = vpack.c.bf16 %v2471_v19, %v2470_v20 }
 0x507   : > { %v2349_v23 = vpack.c.bf16 %v2466_v21, %v2465_v22 }
 0x508   : > { %v1129_v29 = vpop.permute.xlu1 %1128 }
 0x509   : > { %2351 = vmatprep.subr.msk.bf16.mxu1 %vm2717_vm8, %v2349_v23 }
 0x50a   : > { %2354 = vmatpush3.bf16.msk.msra.mxu1 %vm2717_vm8, %v2349_v23 }
 0x50b   : > { %2357 = vmatprep.subr.msk.bf16.mxu1 %vm2697_vm2, %v2355_v25 }
 0x50e   : > { %v2496_v12 = vpop.eup %2495 }
 0x50f   : > { %v871_v26 = vsel %vm652_vm4, %v2496_v12, 0.0  ;;  %v2498_v27 = vpop.eup %2497 }
 0x510   : > { %872 = vadd.xlane.f32.xlu1 %v871_v26  ;;  %v868_v28 = vsel %vm648_vm5, %v2498_v27, 0.0 }
 0x514   : > { %869 = vadd.xlane.f32.xlu1 %v868_v28 }
 0x525   : > { %1130 = vrot.lane.b32.xlu1 %v2684_v10, %s2558_s25 }
 0x529   : > { %2473 = vrot.lane.b32.xlu1 %v2692_v13, %s2560_s29 }
 0x52d   : > { %1418 = vrot.lane.b32.xlu1 %v2684_v10, %s2559_s26  ;;  %v1417_v10 = vpop.permute.xlu0 %1416 }
 0x59d   : > { %v873_v30 = vpop.xlane.xlu1 %872 }
 0x59e   : > { %2499 = vrcp.f32 %v873_v30 }
 0x5a1   : > { %v870_v31 = vpop.xlane.xlu1 %869 }
 0x5a2   : > { %2501 = vrcp.f32 %v870_v31 }
 0x5a5   : > { %v1131_v32 = vpop.permute.xlu1 %1130 }
 0x5a8   : > { %v2500_v34 = vpop.eup %2499 }
 0x5a9   : > { %v2474_v33 = vpop.permute.xlu1 %2473  ;;  %v877_v39 = vmul.f32 %v2500_v34, %v2496_v12 }
 0x5aa   : > { %v2476_v36 = vunpack.i.h.bf16 %v2474_v33  ;;  %v2475_v37 = vunpack.i.l.bf16 %v2474_v33 }
 0x5ac   : > { %v2502_v35 = vpop.eup %2501  ;;  %v2367_v40 = vpack.c.bf16 %v2476_v36, %v2475_v37 }
 0x5ad   : > { %v876_v38 = vmul.f32 %v2502_v35, %v2498_v27  ;;  %v1419_v42 = vpop.permute.xlu1 %1418 }
 0x5af   : > { %2226 = vmatprep.mubr.msk.f32.mxu1 %vm648_vm5, %v876_v38 }
 0x5b0   : > { %2227 = vmatmul.mubr.msk.f32.vlgmr.msra.gmra.mrb[8].mxu1 %vm648_vm5, %v877_v39 }
 0x5b1   : > { %2360 = vmatpush3.bf16.xpose.msk.msra.mxu1 %vm2697_vm2, %v2355_v25  ;;  %2243 = vmatprep.mubr.msk.f32.mxu1 %vm560_vm1, %v1129_v29 }
 0x5b2   : > { %2369 = vmatprep.subr.msk.bf16.mxu1 %vm2697_vm2, %v2367_v40 }
 0x5b8   : > { %2244 = vmatmul.mubr.msk.f32.vlgmr.msra.gmra.mrb[10].mxu1 %vm560_vm1, %v1131_v32 }
 0x5b9   : > { %2372 = vmatpush3.bf16.xpose.msk.msra.mxu1 %vm2697_vm2, %v2367_v40  ;;  %2262 = vmatprep.mubr.msk.f32.mxu1 %vm560_vm1, %v1417_v10 }
 0x5c0   : > { %2263 = vmatmul.mubr.msk.f32.vlgmr.msra.gmra.mrb[12].mxu1 %vm560_vm1, %v1419_v42 }
 0x683   : > { %v2228_v45 = vpop.f32.mrb[8].mxu1 }
 0x684   : > { %v957_v46 = vpop.f32.mrb[9].mxu1 }
 0x685   : > { %2231 = vmatprep.mubr.msk.f32.mxu0 %vm560_vm1, %v957_v46 }
 0x686   : > { %2232 = vmatmul.mubr.msk.f32.vlgmr.msra.gmra.mrb[0].mxu0 %vm560_vm1, %v2228_v45 }
 0x687   : > { %2236 = vmatprep.mubr.msk.f32.mxu0 %vm560_vm1, %v2738_v60  ;;  %2235 = vmatpush3.msra.mxu0 %v549_v44  ;;  %v552_v44 = vld [vmem:[%s2933_s4 + $0x18] sm:$0xff] }
 0x68b   : > { %v2245_v17 = vpop.f32.mrb[10].mxu1 }
 0x68c   : > { %v1220_v47 = vmul.f32 0.35355338, %v2245_v17  ;;  %v1210_v48 = vpop.f32.mrb[11].mxu1 }
 0x68d   : > { %v1219_v49 = vmul.f32 0.35355338, %v1210_v48 }
 0x68e   : > { %2237 = vmatmul.mubr.msk.f32.vlgmr.msra.gmra.mrb[0].mxu0 %vm560_vm1, %v2736_v59  ;;  %v1222_v50 = vadd.f32 %v1220_v47, %v2708_v24  ;;  %v2103_v47 = vld [vmem:[%s2934_s5] ss:$0 sm:$0xff] }
 0x68f   : > { %v1221_v51 = vadd.f32 %v1219_v49, %v2708_v24 }
 0x690   : > { %v1226_v52 = vsel %vm652_vm4, %v1222_v50, -inf }
 0x691   : > { %1227 = vmax.xlane.f32.xlu1 %v1226_v52  ;;  %v1223_v53 = vsel %vm648_vm5, %v1221_v51, -inf }
 0x692   : > { %1224 = vmax.xlane.f32.xlu0 %v1223_v53 }
 0x693   : > { %v2264_v54 = vpop.f32.mrb[12].mxu1 }
 0x694   : > { %v1498_v55 = vpop.f32.mrb[13].mxu1  ;;  %v1508_v5 = vmul.f32 0.35355338, %v2264_v54 }
 0x696   : > { %v1510_v14 = vadd.f32 %v1508_v5, %v2708_v24  ;;  %v1855_v5 = vld [vmem:[%s2939_s10 + $0x8] sm:$0xff] }
 0x698   : > { %v1514_v15 = vsel %vm652_vm4, %v1510_v14, -inf }
 0x6a2   : > { %2478 = vrot.lane.b32.xlu1 %v2692_v13, %s2561_s19 }
 0x6a6   : > { %2483 = vrot.lane.b32.xlu1 %v2692_v13, %s2562_s20  ;;  %v1507_v13 = vmul.f32 0.35355338, %v1498_v55 }
 0x6a8   : > { %v1509_v9 = vadd.f32 %v1507_v13, %v2708_v24  ;;  %v1763_v13 = vld [vmem:[%s2937_s8 + $0x18] sm:$0xff] }
 0x6aa   : > { %v1511_v11 = vsel %vm648_vm5, %v1509_v9, -inf }
 0x71e   : > { %v1228_v56 = vpop.xlane.xlu1 %1227 }
 0x71f   : > { %v1230_v57 = vsub.f32 %v1222_v50, %v1228_v56  ;;  %v1225_v58 = vpop.xlane.xlu0 %1224 }
 0x720   : > { %v1229_v59 = vsub.f32 %v1221_v51, %v1225_v58 }
 0x721   : > { %v1233_v60 = vmul.f32 1.442695, %v1230_v57 }
 0x722   : > { %v1231_v61 = vmul.f32 1.442695, %v1229_v59  ;;  %v2479_v62 = vpop.permute.xlu1 %2478 }
 0x723   : > { %v2481_v63 = vunpack.i.h.bf16 %v2479_v62  ;;  %v2480_v0 = vunpack.i.l.bf16 %v2479_v62 }
 0x724   : > { %2503 = vpow2.f32 %v1231_v61 }
 0x725   : > { %v2361_v1 = vpack.c.bf16 %v2481_v63, %v2480_v0  ;;  %2505 = vpow2.f32 %v1233_v60  ;;  %v1760_v63 = vld [vmem:[%s2937_s8] sm:$0xff]  ;;  %v1761_v0 = vld [vmem:[%s2937_s8 + $0x8] sm:$0xff] }
 0x726   : > { %v2484_v23 = vpop.permute.xlu1 %2483 }
 0x727   : > { %2363 = vmatprep.subr.msk.bf16.mxu0 %vm2717_vm8, %v2361_v1  ;;  %v2486_v27 = vunpack.i.h.bf16 %v2484_v23  ;;  %v2485_v28 = vunpack.i.l.bf16 %v2484_v23  ;;  %v1863_v23 = vld [vmem:[%s2939_s10 + $0x48] sm:$0xff] }
 0x728   : > { %2366 = vmatpush3.bf16.msk.msra.mxu0 %vm2717_vm8, %v2361_v1  ;;  %v2379_v1 = vpack.c.bf16 %v1761_v0, %v1760_v63 }
 0x729   : > { %2253 = vmatprep.subr.mxu0 %v551_v16  ;;  %v2373_v32 = vpack.c.bf16 %v2486_v27, %v2485_v28  ;;  %v1866_v27 = vld [vmem:[%s2939_s10 + $0x60] sm:$0xff]  ;;  %v1867_v28 = vld [vmem:[%s2939_s10 + $0x68] sm:$0xff] }
 0x72a   : > { %2380 = vmatprep.subr.bf16.mxu1 %v2379_v1 }
 0x72b   : > { %2382 = vmatpush3.bf16.msra.mxu1 %v2379_v1 }
 0x72e   : > { %v2504_v2 = vpop.eup %2503 }
 0x72f   : > { %v1235_v3 = vsel %vm648_vm5, %v2504_v2, 0.0  ;;  %v2506_v4 = vpop.eup %2505 }
 0x730   : > { %1236 = vadd.xlane.f32.xlu0 %v1235_v3  ;;  %v1238_v8 = vsel %vm652_vm4, %v2506_v4, 0.0 }
 0x734   : > { %1239 = vadd.xlane.f32.xlu0 %v1238_v8  ;;  %v1856_v8 = vld [vmem:[%s2939_s10 + $0x10] sm:$0xff] }
 0x738   : > { %1512 = vmax.xlane.f32.xlu0 %v1511_v11  ;;  %v1857_v11 = vld [vmem:[%s2939_s10 + $0x18] sm:$0xff] }
 0x73c   : > { %1515 = vmax.xlane.f32.xlu0 %v1514_v15  ;;  %v1858_v15 = vld [vmem:[%s2939_s10 + $0x20] sm:$0xff] }
 0x7bd   : > { %v1237_v18 = vpop.xlane.xlu0 %1236 }
 0x7be   : > { %2507 = vrcp.f32 %v1237_v18 }
 0x7c1   : > { %v1240_v19 = vpop.xlane.xlu0 %1239 }
 0x7c2   : > { %2509 = vrcp.f32 %v1240_v19  ;;  %v1860_v19 = vld [vmem:[%s2939_s10 + $0x30] sm:$0xff] }
 0x7c5   : > { %v1513_v20 = vpop.xlane.xlu0 %1512 }
 0x7c6   : > { %v1517_v21 = vsub.f32 %v1509_v9, %v1513_v20  ;;  %v1861_v20 = vld [vmem:[%s2939_s10 + $0x38] sm:$0xff] }
 0x7c8   : > { %v2508_v22 = vpop.eup %2507  ;;  %v1519_v25 = vmul.f32 1.442695, %v1517_v21  ;;  %v2399_v21 = vpack.c.bf16 %v1861_v20, %v1860_v19  ;;  %v2110_v19 = vld [vmem:[%s2941_s12] ss:$0 sm:$0xff] }
 0x7c9   : > { %v1516_v12 = vpop.xlane.xlu0 %1515  ;;  %v1243_v24 = vmul.f32 %v2508_v22, %v2504_v2  ;;  %v1762_v2 = vld [vmem:[%s2937_s8 + $0x10] sm:$0xff]  ;;  %v1862_v22 = vld [vmem:[%s2939_s10 + $0x40] sm:$0xff] }
 0x7ca   : > { %2511 = vpow2.f32 %v1519_v25  ;;  %v1518_v26 = vsub.f32 %v1510_v14, %v1516_v12  ;;  %v2383_v3 = vpack.c.bf16 %v1763_v13, %v1762_v2  ;;  %v2391_v14 = vpack.c.bf16 %v1857_v11, %v1856_v8  ;;  %v1864_v12 = vld [vmem:[%s2939_s10 + $0x50] sm:$0xff] }
 0x7cb   : > { %2250 = vmatprep.mubr.msk.f32.mxu0 %vm648_vm5, %v1243_v24  ;;  %v2403_v25 = vpack.c.bf16 %v1863_v23, %v1862_v22  ;;  %v1865_v24 = vld [vmem:[%s2939_s10 + $0x58] sm:$0xff] }
 0x7cc   : > { %v2510_v29 = vpop.eup %2509  ;;  %v1521_v30 = vmul.f32 1.442695, %v1518_v26  ;;  %2384 = vmatprep.subr.bf16.mxu1 %v2383_v3  ;;  %v2407_v26 = vpack.c.bf16 %v1865_v24, %v1864_v12 }
 0x7cd   : > { %v1244_v31 = vmul.f32 %v2510_v29, %v2506_v4  ;;  %2386 = vmatpush3.bf16.msra.mxu1 %v2383_v3  ;;  %v1854_v4 = vld [vmem:[%s2939_s10] sm:$0xff]  ;;  %v2411_v29 = vpack.c.bf16 %v1867_v28, %v1866_v27 }
 0x7ce   : > { %2513 = vpow2.f32 %v1521_v30  ;;  %v2387_v9 = vpack.c.bf16 %v1855_v5, %v1854_v4 }
 0x7cf   : > { %2251 = vmatmul.mubr.msk.f32.vlgmr.msra.gmra.mrb[2].mxu0 %vm648_vm5, %v1244_v31 }
 0x7d0   : > { %2254 = vmatpush3.msra.mxu0 %v551_v16  ;;  %v1859_v16 = vld [vmem:[%s2939_s10 + $0x28] sm:$0xff] }
 0x7d1   : > { %2375 = vmatprep.subr.msk.bf16.mxu0 %vm2717_vm8, %v2373_v32  ;;  %v2395_v18 = vpack.c.bf16 %v1859_v16, %v1858_v15 }
 0x7d4   : > { %v2512_v33 = vpop.eup %2511 }
 0x7d5   : > { %v1523_v34 = vsel %vm648_vm5, %v2512_v33, 0.0 }
 0x7d6   : > { %1524 = vadd.xlane.f32.xlu0 %v1523_v34 }
 0x7d8   : > { %v2514_v35 = vpop.eup %2513 }
 0x7d9   : > { %v1526_v36 = vsel %vm652_vm4, %v2514_v35, 0.0 }
 0x7da   : > { %1527 = vadd.xlane.f32.xlu0 %v1526_v36 }
 0x863   : > { %v1525_v37 = vpop.xlane.xlu0 %1524 }
 0x864   : > { %2515 = vrcp.f32 %v1525_v37  ;;  %v2104_v37 = vld [vmem:[%s2935_s6] ss:$0 sm:$0xff] }
 0x867   : > { %v1528_v38 = vpop.xlane.xlu0 %1527 }
 0x868   : > { %2517 = vrcp.f32 %v1528_v38 }
 0x86e   : > { %v2516_v39 = vpop.eup %2515 }
 0x86f   : > { %v1531_v43 = vmul.f32 %v2516_v39, %v2512_v33  ;;  %v2105_v39 = vld [vmem:[%s2936_s7] ss:$0 sm:$0xff] }
 0x872   : > { %v2518_v42 = vpop.eup %2517 }
 0x873   : > { %v1532_v45 = vmul.f32 %v2518_v42, %v2514_v35 }
 0x8a2   : > { %v2252_v40 = vpop.f32.mrb[2].mxu0 }
 0x8a3   : > { %v1324_v10 = vpop.f32.mrb[3].mxu0 }
 0x8a4   : > { %2255 = vmatprep.mubr.msk.f32.mxu0 %vm560_vm1, %v1324_v10 }
 0x8a5   : > { %2256 = vmatmul.mubr.msk.f32.vlgmr.msra.gmra.mrb[0].mxu0 %vm560_vm1, %v2252_v40 }
 0x8a6   : > { %2378 = vmatpush3.bf16.msk.msra.mxu0 %vm2717_vm8, %v2373_v32  ;;  %2269 = vmatprep.mubr.msk.f32.mxu0 %vm648_vm5, %v1531_v43 }
 0x8a7   : > { %2272 = vmatprep.subr.mxu0 %v552_v44 }
 0x8a9   : > { %2270 = vmatmul.mubr.msk.f32.vlgmr.msra.gmra.mrb[4].mxu0 %vm648_vm5, %v1532_v45 }
 0x8aa   : > { %2273 = vmatpush3.msra.mxu0 %v552_v44 }
 0x8ab   : > { %2388 = vmatprep.subr.bf16.mxu0 %v2387_v9 }
 0x97c   : > { %v2271_v46 = vpop.f32.mrb[4].mxu0 }
 0x97d   : > { %v1612_v17 = vpop.f32.mrb[5].mxu0 }
 0x97e   : > { %2274 = vmatprep.mubr.msk.f32.mxu0 %vm560_vm1, %v1612_v17  ;;  %v1869_v17 = vld [vmem:[%s2939_s10 + $0x78] sm:$0xff] }
 0x97f   : > { %2275 = vmatmul.mubr.msk.f32.vlgmr.msra.gmra.mrb[0].mxu0 %vm560_vm1, %v2271_v46  ;;  %v1868_v46 = vld [vmem:[%s2939_s10 + $0x70] sm:$0xff] }
 0x980   : > { %2390 = vmatpush3.bf16.msra.mxu0 %v2387_v9 }
 0x981   : > { %2392 = vmatprep.subr.bf16.mxu0 %v2391_v14 }
 0x984   : > { %2394 = vmatpush3.bf16.msra.mxu0 %v2391_v14 }
 0x985   : > { %2396 = vmatprep.subr.bf16.mxu0 %v2395_v18 }
 0x988   : > { %2398 = vmatpush3.bf16.msra.mxu0 %v2395_v18 }
 0x989   : > { %2400 = vmatprep.subr.bf16.mxu0 %v2399_v21 }
 0x98c   : > { %2402 = vmatpush3.bf16.msra.mxu0 %v2399_v21  ;;  %v2111_v21 = vld [vmem:[%s2942_s13] ss:$0 sm:$0xff] }
 0x98d   : > { %2404 = vmatprep.subr.bf16.mxu0 %v2403_v25 }
 0x990   : > { %2406 = vmatpush3.bf16.msra.mxu0 %v2403_v25 }
 0x991   : > { %2408 = vmatprep.subr.bf16.mxu0 %v2407_v26 }
 0x994   : > { %2410 = vmatpush3.bf16.msra.mxu0 %v2407_v26 }
 0x995   : > { %2412 = vmatprep.subr.bf16.mxu0 %v2411_v29 }
 0x998   : > { %2414 = vmatpush3.bf16.msra.mxu0 %v2411_v29 }
 0xa52   : > { %v2276_v48 = vpop.f32.mrb[0].mxu0 }
 0xa53   : > { %v1711_v41 = vadd.f32 %v2276_v48, %v2103_v47  ;;  %v1693_v49 = vpop.f32.mrb[1].mxu0  ;;  %v2106_v48 = vld [vmem:[%s2938_s9] ss:$0 sm:$0xff] }
 0xa54   : > { %v1710_v50 = vadd.f32 %v2103_v47, %v1693_v49  ;;  %v2415_v47 = vpack.c.bf16 %v1869_v17, %v1868_v46 }
 0xa55   : > { %v1713_v51 = vadd.f32 %v1711_v41, %v2677_v7 }
 0xa56   : > { %v1712_v52 = vadd.f32 %v1710_v50, %v2673_v6  ;;  %2416 = vmatprep.subr.bf16.mxu0 %v2415_v47 }
 0xa57   : > { %v1720_v53 = vsel %vm1719_vm9, %v1713_v51, 0.0  ;;  %2418 = vmatpush3.bf16.msra.mxu0 %v2415_v47 }
 0xa58   : > { %1721 = vadd.xlane.f32.xlu1 %v1720_v53  ;;  %v1716_v54 = vsel %vm467_vm0, %v1712_v52, 0.0 }
 0xa59   : > { %1717 = vadd.xlane.f32.xlu0 %v1716_v54  ;;  %v2109_v54 = vld [vmem:[%s2940_s11] ss:$0 sm:$0xff] }
 0xae5   : > { %v1722_v55 = vpop.xlane.xlu1 %1721 }
 0xae6   : > { %v1725_v56 = vmul.f32 0.03125, %v1722_v55  ;;  %v1718_v57 = vpop.xlane.xlu0 %1717 }
 0xae7   : > { %v1724_v58 = vmul.f32 0.03125, %v1718_v57 }
 0xae8   : > { %v2828_v59 = vsub.f32 %v1713_v51, %v1725_v56 }
 0xae9   : > { %v1726_v60 = vsub.f32 %v1712_v52, %v1724_v58 }
 0xaea   : > { %v1729_v7 = vmul.f32 %v2828_v59, %v2828_v59 }
 0xaeb   : > { %v1728_v61 = vmul.f32 %v1726_v60, %v1726_v60 }
 0xaec   : > { %v1733_v6 = vsel %vm1719_vm9, %v1729_v7, 0.0 }
 0xaed   : > { %v1730_v62 = vsel %vm467_vm0, %v1728_v61, 0.0 }
 0xaee   : > { %1731 = vadd.xlane.f32.xlu0 %v1730_v62 }
 0xaf2   : > { %1734 = vadd.xlane.f32.xlu0 %v1733_v6 }
 0xb7b   : > { %v1732_v30 = vpop.xlane.xlu0 %1731 }
 0xb7c   : > { %v1736_v31 = vmul.f32 0.03125, %v1732_v30 }
 0xb7e   : > { %v1738_v32 = vadd.f32 1e-05, %v1736_v31 }
 0xb7f   : > { %v1735_v33 = vpop.xlane.xlu0 %1734 }
 0xb80   : > { %2519 = vrsqrt.f32 %v1738_v32  ;;  %v1737_v34 = vmul.f32 0.03125, %v1735_v33 }
 0xb82   : > { %v1739_v35 = vadd.f32 1e-05, %v1737_v34 }
 0xb84   : > { %2521 = vrsqrt.f32 %v1739_v35 }
 0xb8a   : > { %v2520_v36 = vpop.eup %2519 }
 0xb8b   : > { %v1742_v38 = vmul.f32 %v2520_v36, %v1726_v60 }
 0xb8d   : > { %v1750_v40 = vmul.f32 %v2104_v37, %v1742_v38 }
 0xb8e   : > { %v2522_v10 = vpop.eup %2521 }
 0xb8f   : > { %v1743_v42 = vmul.f32 %v2522_v10, %v2828_v59  ;;  %v1758_v43 = vadd.f32 %v2105_v39, %v1750_v40 }
 0xb91   : > { %v1751_v44 = vmul.f32 %v2104_v37, %v1743_v42  ;;  %2285 = vmatprep.mubr.msk.f32.mxu1 %vm467_vm0, %v1758_v43 }
 0xb93   : > { %v1759_v45 = vadd.f32 %v2105_v39, %v1751_v44 }
 0xb95   : > { %2286 = vmatmul.mubr.msk.f32.vlgmr.msra.gmra.mrb[14].mxu1 %vm467_vm0, %v1759_v45 }
 0xc68   : > { %v2287_v41 = vpop.f32.mrb[14].mxu1 }
 0xc69   : > { %v1849_v49 = vadd.f32 %v2287_v41, %v2106_v48  ;;  %v1843_v50 = vpop.f32.mrb[15].mxu1 }
 0xc6a   : > { %v1844_v51 = vadd.f32 %v2106_v48, %v1843_v50 }
 0xc6b   : > { %v1853_v53 = vmax.f32 %v1849_v49, 0.0 }
 0xc6c   : > { %v1852_v52 = vmax.f32 %v1844_v51, 0.0 }
 0xc6e   : > { %2320 = vmatprep.mubr.f32.mxu0 %v1852_v52 }
 0xc6f   : > { %2321 = vmatmul.mubr.f32.vlgmr.msra.gmra.mrb[6].mxu0 %v1853_v53 }
 0xd42   : > { %v2322_v55 = vpop.f32.mrb[6].mxu0 }
 0xd43   : > { %v1943_v56 = vpop.f32.mrb[7].mxu0  ;;  %v1949_v57 = vadd.f32 %v2322_v55, %v2109_v54 }
 0xd44   : > { %v1944_v58 = vadd.f32 %v2109_v54, %v1943_v56 }
 0xd45   : > { %v1953_v61 = vadd.f32 %v1949_v57, %v1759_v45 }
 0xd46   : > { %v1952_v59 = vadd.f32 %v1944_v58, %v1758_v43 }
 0xd47   : > { %v1959_v62 = vsel %vm1719_vm9, %v1953_v61, 0.0 }
 0xd48   : > { %v1956_v60 = vsel %vm467_vm0, %v1952_v59, 0.0 }
 0xd49   : > { %1957 = vadd.xlane.f32.xlu0 %v1956_v60 }
 0xd4d   : > { %1960 = vadd.xlane.f32.xlu0 %v1959_v62 }
 0xdd6   : > { %v1958_v7 = vpop.xlane.xlu0 %1957 }
 0xdd7   : > { %v1962_v6 = vmul.f32 0.03125, %v1958_v7 }
 0xdd9   : > { %v1964_v63 = vsub.f32 %v1952_v59, %v1962_v6 }
 0xdda   : > { %v1961_v0 = vpop.xlane.xlu0 %1960 }
 0xddb   : > { %v1963_v1 = vmul.f32 0.03125, %v1961_v0  ;;  %v1966_v2 = vmul.f32 %v1964_v63, %v1964_v63 }
 0xddd   : > { %v1965_v13 = vsub.f32 %v1953_v61, %v1963_v1  ;;  %v1968_v3 = vsel %vm467_vm0, %v1966_v2, 0.0 }
 0xdde   : > { %1969 = vadd.xlane.f32.xlu0 %v1968_v3 }
 0xddf   : > { %v1967_v4 = vmul.f32 %v1965_v13, %v1965_v13 }
 0xde1   : > { %v1971_v5 = vsel %vm1719_vm9, %v1967_v4, 0.0 }
 0xde2   : > { %1972 = vadd.xlane.f32.xlu0 %v1971_v5 }
 0xe6b   : > { %v1970_v8 = vpop.xlane.xlu0 %1969 }
 0xe6c   : > { %v1974_v9 = vmul.f32 0.03125, %v1970_v8 }
 0xe6e   : > { %v1976_v11 = vadd.f32 1e-05, %v1974_v9 }
 0xe6f   : > { %v1973_v14 = vpop.xlane.xlu0 %1972 }
 0xe70   : > { %2523 = vrsqrt.f32 %v1976_v11  ;;  %v1975_v15 = vmul.f32 0.03125, %v1973_v14 }
 0xe72   : > { %v1977_v16 = vadd.f32 1e-05, %v1975_v15 }
 0xe74   : > { %2525 = vrsqrt.f32 %v1977_v16 }
 0xe7a   : > { %v2524_v18 = vpop.eup %2523 }
 0xe7b   : > { %v1980_v20 = vmul.f32 %v2524_v18, %v1964_v63 }
 0xe7d   : > { %v1988_v22 = vmul.f32 %v2110_v19, %v1980_v20 }
 0xe7e   : > { %v2526_v23 = vpop.eup %2525 }
 0xe7f   : > { %v1996_v25 = vadd.f32 %v2111_v21, %v1988_v22  ;;  %v1981_v12 = vmul.f32 %v2526_v23, %v1965_v13 }
 0xe81   : > { %1998 = vst.msk [vmem:[%s447_s24] sm:$0xff] %vm467_vm0, %v1996_v25  ;;  %v1989_v24 = vmul.f32 %v2110_v19, %v1981_v12 }
 0xe83   : > { %v1997_v26 = vadd.f32 %v2111_v21, %v1989_v24 }
 0xe85   : > { %1999 = vst.msk [vmem:[%s447_s24 + $0x8] sm:$0x1] %vm1719_vm9, %v1997_v26 }
 0xe86 PF: > { %s30_s18 = sadd.s32 1, %s2547_s18  }
 0xe87   : > { %p27_p9 = scmp.ge.s32.totalorder %s30_s18, 4  }
 0xe89   :  { %29 = sbr.rel (!%p27_p9) target bundleno = 16 (0x10), region = 102 }

// kernel: transformer_enc_dec_forward.7
= control target key start
LH: loop header
LB: loop body
LE: loop exit
PB: predicated region body
PF: predicated region fallthrough
CT: control target
= control target key end

     0   :  { %s4453_s0 = inlined_call_operand.vmem [shape: s32[2], index: 0, kind: input, shape index: {}]   ;;  %s4454_s1 = inlined_call_operand.vmem [shape: f32[2,8,32], index: 1, kind: input, shape index: {}]   ;;  %s4455_s2 = inlined_call_operand.vmem [shape: f32[2,9,32], index: 2, kind: input, shape index: {}]   ;;  %s4456_s3 = inlined_call_operand.vmem [shape: f32[32,96], index: 3, kind: input, shape index: {}]   ;;  %s4457_s4 = inlined_call_operand.vmem [shape: f32[1,96], index: 4, kind: input, shape index: {}]   ;;  %s4458_s5 = inlined_call_operand.vmem [shape: f32[32,32], index: 5, kind: input, shape index: {}]   ;;  %s4459_s6 = inlined_call_operand.vmem [shape: f32[1,32], index: 6, kind: input, shape index: {}]   ;;  %s4460_s7 = inlined_call_operand.vmem [shape: f32[1,32], index: 7, kind: input, shape index: {}]   ;;  %s4461_s8 = inlined_call_operand.vmem [shape: f32[1,32], index: 8, kind: input, shape index: {}]   ;;  %s4462_s9 = inlined_call_operand.vmem [shape: f32[32,32], index: 9, kind: input, shape index: {}]   ;;  %s4463_s10 = inlined_call_operand.vmem [shape: f32[1,32], index: 10, kind: input, shape index: {}]   ;;  %s4464_s11 = inlined_call_operand.vmem [shape: f32[32,64], index: 11, kind: input, shape index: {}]   ;;  %s4465_s12 = inlined_call_operand.vmem [shape: f32[1,64], index: 12, kind: input, shape index: {}]   ;;  %s4466_s13 = inlined_call_operand.vmem [shape: f32[32,32], index: 13, kind: input, shape index: {}]   ;;  %s4467_s14 = inlined_call_operand.vmem [shape: f32[1,32], index: 14, kind: input, shape index: {}]   ;;  %s4468_s15 = inlined_call_operand.vmem [shape: f32[1,32], index: 15, kind: input, shape index: {}]   ;;  %s4469_s16 = inlined_call_operand.vmem [shape: f32[1,32], index: 16, kind: input, shape index: {}]   ;;  %s4470_s17 = inlined_call_operand.vmem [shape: f32[32,128], index: 17, kind: input, shape index: {}]   ;;  %s4471_s18 = inlined_call_operand.vmem [shape: f32[1,128], index: 18, kind: input, shape index: {}]   ;;  %s4472_s19 = inlined_call_operand.vmem [shape: f32[128,32], index: 19, kind: input, shape index: {}]   ;;  %s4473_s20 = inlined_call_operand.vmem [shape: f32[1,32], index: 20, kind: input, shape index: {}]   ;;  %s4474_s21 = inlined_call_operand.vmem [shape: f32[1,32], index: 21, kind: input, shape index: {}]   ;;  %s4475_s22 = inlined_call_operand.vmem [shape: f32[1,32], index: 22, kind: input, shape index: {}]   ;;  %s4476_s23 = inlined_call_operand.vmem [shape: f32[2,8,32], index: 23, kind: output, shape index: {}]  }
   0x1   :  { %4492 = sst [smem:[#allocation5_spill]] %s4453_s0 }
   0x2   :  { %4493 = sst [smem:[#allocation6_spill]] %s4454_s1  ;;  %s4502_s24 = sld [smem:[#allocation5_spill]] }
   0x3   :  { %4494 = sst [smem:[#allocation7_spill]] %s4455_s2 }
   0x4   :  { %4495 = sst [smem:[#allocation8_spill]] %s4456_s3 }
   0x5   :  { %4496 = sst [smem:[#allocation9_spill]] %s4457_s4 }
   0x6   :  { %4497 = sst [smem:[#allocation10_spill]] %s4458_s5 }
   0x7   :  { %4498 = sst [smem:[#allocation11_spill]] %s4459_s6 }
   0x8   :  { %4499 = sst [smem:[#allocation12_spill]] %s4460_s7 }
   0x9   :  { %4500 = sst [smem:[#allocation13_spill]] %s4462_s9 }
   0xa   :  { %4501 = sst [smem:[#allocation14_spill]] %s4469_s16  ;;  %s28_s16 = sshll.u32 %s4502_s24, 4  ;;  %s29_s16 = int_to_ptr.vmem [resolvable:$true] %s28_s16 }
   0xb   :  { %s3852_s25 = scalar_lea.vmem %s29_s16, 16  ;;  %p3857_p1 = scmp.lt.s32.totalorder %s29_s16, %s29_s16 }
   0xc   :  { %p3853_p0 = scmp.ne.s32.totalorder %s29_s16, %s3852_s25  ;;  %p3858_p2 = scmp.lt.s32.totalorder %s3852_s25, %s3852_s25 }
   0xe   :  { %p3859_p3 = por %p3858_p2, %p3857_p1 }
  0x10   :  { %p3860_p4 = pnand %p3859_p3, %p3853_p0 }
  0x12   :  { %3863 = shalt.err (!%p3860_p4)  }
  0x13   :  { %s3874_s5 = smov [#allocation3]  }
  0x14   :  { %31 = dma.vmem_to_smem %s29_s16, 16, %s3874_s5, [#allocation2] }
  0x15   :  { %3868 = dma.done.wait [#allocation2], 16 }
  0x16   :  { %3869 = vsyncadd [#allocation2], 4294967280 }
  0x17   :  { %33 = sfence }
  0x18   :  { %s4013_s1 = smov 0  }
  0x19 LB: > { %s4019_s26 = sadd.s32 4294967295, %s3872_s1   ;;  %p3298_p5 = scmp.ge.s32.totalorder %s3872_s1, 1  ;;  %s3872_s1 = sphi %s4013_s1, %s39_s1  }
  0x1a   : > { %p628_p6 = scmp.lt.s32.totalorder %s3872_s1, 3 }
  0x1c   : > { %p629_p7 = pnand %p3298_p5, %p628_p6 }
  0x1d   : > { %s4503_s6 = sld [smem:[#allocation8_spill]] (!%p629_p7)  ;;  %v3875_v3 = vmov (!%p629_p7), 0.0|0.0   ;;  %vm3876_vm0 = vmmov (!%p629_p7), 0   ;;  %v3877_v6 = vmov (!%p629_p7), 0.0   ;;  %p693_p8 = scmp.lt.s32.totalorder (!%p629_p7), %s4019_s26, 1  ;;  %vm726_vm1 = vcmask (!%p629_p7), 261120  }
  0x1e   : > { %632 = sbr.rel (%p629_p7) target bundleno = 6692 (0x1a24), region = 108  ;;  %3673 = vmatprep.subr.bf16.mxu0 (!%p629_p7), %v3875_v3  ;;  %3466 = vmatprep.mubr.msk.f32.mxu0 (!%p629_p7), %vm3876_vm0, %v3877_v6  ;;  %s4504_s5 = sld [smem:[#allocation6_spill]] (!%p629_p7)  ;;  %vm808_vm2 = vcmask (!%p629_p7), 64512   ;;  %v709_v16 = vlaneseq (!%p629_p7)  ;;  %vm2071_vm6 = vcmask (!%p629_p7), 72704   ;;  %vm2091_vm7 = vcmask (!%p629_p7), 1040384  }
  0x1f   : > { %3474 = vmatprep.subr.mxu1 (!%p629_p7), %v3877_v6  ;;  %3476 = vmatprep.mubr.msk.f32.mxu1 (!%p629_p7), %vm3876_vm0, %v3877_v6  ;;  %s4505_s7 = sld [smem:[#allocation9_spill]] (!%p629_p7)  ;;  %s4488_s28 = smov (!%p629_p7), 120   ;;  %vm4223_vm4 = vmpackc.low (!%p629_p7), %vm808_vm2, %vm808_vm2  ;;  %vm3889_vm8 = vmmov (!%p629_p7), 1  }
  0x20   : > { %s4487_s29 = smov (!%p629_p7), 96   ;;  %s4486_s3 = smov (!%p629_p7), 88   ;;  %v710_v17 = vshrl.u32 (!%p629_p7), %v709_v16, 7  ;;  %v4081_v18 = vand.u32 (!%p629_p7), 127, %v709_v16  ;;  %vm4251_vm9 = vmpackc.low (!%p629_p7), %vm2091_vm7, %vm3889_vm8 }
  0x21   : > { %s3881_s0 = smov (!%p629_p7), 56   ;;  %s3882_s24 = smov (!%p629_p7), 64  }
  0x22   : > { %vm713_vm3 = vcmp.gt.s32.totalorder (!%p629_p7), %v4081_v18, %v710_v17  ;;  %s4481_s25 = smov (!%p629_p7), 80   ;;  %s4506_s27 = sld [smem:[#allocation10_spill]] (!%p629_p7) }
  0x23   : > { %v715_v0 = vld [vmem:[%s4503_s6] sm:$0xff] (!%p629_p7)  ;;  %v716_v1 = vld [vmem:[%s4503_s6 + $0x8] sm:$0xff] (!%p629_p7)  ;;  %v717_v2 = vld [vmem:[%s4503_s6 + $0x10] sm:$0xff] (!%p629_p7)  ;;  %v4085_v20 = vsel (!%p629_p7), %vm713_vm3, -1e+30, %v3877_v6  ;;  %s3887_s2 = smov (!%p629_p7), 48  }
  0x24   : > { %v3674_v4 = vpack.c.bf16 (!%p629_p7), %v716_v1, %v715_v0  ;;  %v718_v5 = vld [vmem:[%s4503_s6 + $0x18] sm:$0xff] (!%p629_p7)  ;;  %s4508_s9 = sld [smem:[#allocation13_spill]] (!%p629_p7) }
  0x25   : > { %v3677_v7 = vpack.c.bf16 %v718_v5, %v717_v2  ;;  %s4043_s4 = scalar_select %p693_p8, %s4019_s26, 1  ;;  %v3303_v9 = vld [vmem:[%s4505_s7] ss:$0 sm:$0xff] }
  0x26   : > { %3675 = vmatpush3.bf16.msra.mxu0 %v3674_v4  ;;  %s4509_s7 = sld [smem:[#allocation12_spill]] }
  0x27   : > { %3676 = vmatprep.subr.bf16.mxu0 %v3875_v3  ;;  %s4479_s30 = sshll.u32 %s4043_s4, 3 }
  0x28   : > { %s696_s16 = scalar_lea.vmem %s4504_s5, %s4479_s30  ;;  %s4484_s5 = smov 112   ;;  %v801_v40 = vld [vmem:[%s4506_s27 + $0x8] sm:$0xff]  ;;  %v800_v49 = vld [vmem:[%s4506_s27] sm:$0xff]  ;;  %v802_v17 = vld [vmem:[%s4506_s27 + $0x10] sm:$0xff] }
  0x29   : > { %v4052_v8 = vld [vmem:[%s696_s16] sm:$0xff]  ;;  %s4482_s16 = smov 104  }
  0x2a   : > { %3678 = vmatpush3.bf16.msra.mxu0 %v3677_v7 }
  0x2b   : > { %3469 = vmatprep.subr.mxu0 %v3877_v6 }
  0x2d   : > { %3467 = vmatmul.mubr.msk.f32.vlgmr.msra.gmra.mrb[0].mxu0 %vm726_vm1, %v4052_v8 }
  0x2e   : > { %3471 = vmatprep.mubr.msk.f32.mxu0 %vm3876_vm0, %v3877_v6 }
 0x100   : > { %v796_v10 = vpop.f32.mrb[0].mxu0 }
 0x101   : > { %v4062_v11 = vadd.f32 %v3303_v9, %v796_v10  ;;  %v3468_v12 = vpop.f32.mrb[1].mxu0 }
 0x103   : > { %972 = vrot.lane.b32.xlu1 %v4062_v11, %s4488_s28  ;;  %806 = vrot.lane.b32.xlu0 %v4062_v11, %s4487_s29  ;;  %s4522_s28 = sld [smem:[#allocation14_spill]] }
 0x107   : > { %974 = vrot.lane.b32.xlu0 %v4062_v11, %s4486_s3  ;;  %s4518_s3 = smov 112  }
 0x175   : > { %v807_v13 = vpop.permute.xlu0 %806  ;;  %v973_v15 = vpop.permute.xlu1 %972 }
 0x176   : > { %3470 = vmatpush3.xpose.msk.msra.mxu0 %vm808_vm2, %v807_v13 }
 0x177   : > { %3479 = vmatprep.subr.mxu0 %v3877_v6 }
 0x179   : > { %3472 = vmatmul.mubr.msk.f32.vlgmr.msra.gmra.mrb[2].mxu0 %vm808_vm2, %v4062_v11  ;;  %v975_v14 = vpop.permute.xlu0 %974 }
 0x17a   : > { %3480 = vmatpush3.xpose.msk.msra.mxu0 %vm808_vm2, %v975_v14  ;;  %3481 = vmatprep.mubr.msk.f32.mxu0 %vm3876_vm0, %v3877_v6 }
 0x17b   : > { %3489 = vmatprep.subr.mxu0 %v3877_v6 }
 0x17d   : > { %3482 = vmatmul.mubr.msk.f32.vlgmr.msra.gmra.mrb[4].mxu0 %vm808_vm2, %v973_v15 }
 0x17e   : > { %3491 = vmatprep.mubr.msk.f32.mxu0 %vm3876_vm0, %v3877_v6  ;;  %3490 = vmatpush3.msra.mxu0 %v801_v40 }
 0x17f   : > { %3499 = vmatprep.subr.mxu0 %v3877_v6 }
 0x24c   : > { %v879_v19 = vpop.f32.mrb[2].mxu0 }
 0x24d   : > { %v883_v21 = vmul.f32 0.35355338, %v879_v19  ;;  %v3473_v22 = vpop.f32.mrb[3].mxu0 }
 0x24f   : > { %v884_v23 = vadd.f32 %v883_v21, %v4085_v20 }
 0x250   : > { %v1046_v24 = vpop.f32.mrb[4].mxu0 }
 0x251   : > { %v1050_v25 = vmul.f32 0.35355338, %v1046_v24  ;;  %v3483_v26 = vpop.f32.mrb[5].mxu0  ;;  %v885_v27 = vsel %vm808_vm2, %v884_v23, -inf }
 0x252   : > { %886 = vmax.xlane.f32.xlu1 %v885_v27 }
 0x253   : > { %v1051_v28 = vadd.f32 %v1050_v25, %v4085_v20 }
 0x255   : > { %v1052_v29 = vsel %vm808_vm2, %v1051_v28, -inf }
 0x256   : > { %1053 = vmax.xlane.f32.xlu0 %v1052_v29 }
 0x2df   : > { %v887_v30 = vpop.xlane.xlu1 %886 }
 0x2e0   : > { %v888_v31 = vsub.f32 %v884_v23, %v887_v30 }
 0x2e2   : > { %v889_v32 = vmul.f32 1.442695, %v888_v31 }
 0x2e3   : > { %v1054_v33 = vpop.xlane.xlu0 %1053 }
 0x2e4   : > { %3814 = vpow2.f32 %v889_v32  ;;  %v1055_v34 = vsub.f32 %v1051_v28, %v1054_v33 }
 0x2e6   : > { %v1056_v35 = vmul.f32 1.442695, %v1055_v34 }
 0x2e8   : > { %3816 = vpow2.f32 %v1056_v35 }
 0x2ee   : > { %v3815_v36 = vpop.eup %3814 }
 0x2ef   : > { %v891_v37 = vsel %vm808_vm2, %v3815_v36, 0.0 }
 0x2f0   : > { %892 = vadd.xlane.f32.xlu0 %v891_v37 }
 0x2f2   : > { %v3817_v38 = vpop.eup %3816 }
 0x2f3   : > { %v1058_v39 = vsel %vm808_vm2, %v3817_v38, 0.0 }
 0x2f4   : > { %1059 = vadd.xlane.f32.xlu1 %v1058_v39 }
 0x305   : > { %1063 = vrot.lane.b32.xlu1 %v4062_v11, %s3881_s0  ;;  %s4507_s0 = sld [smem:[#allocation11_spill]] }
 0x306   : > { %896 = vrot.lane.b32.xlu0 %v4062_v11, %s3882_s24  ;;  %s4480_s24 = smov 72  }
 0x309   : > { %1287 = vrot.lane.b32.xlu1 %v4062_v11, %s4481_s25  ;;  %s3363_s25 = sshll.u32 %s4043_s4, 4 }
 0x30a   : > { %1285 = vrot.lane.b32.xlu0 %v4062_v11, %s4484_s5 }
 0x30b   : > { %v3321_v40 = vld [vmem:[%s4507_s0] ss:$0 sm:$0xff]  ;;  %s4519_s0 = smov 104  }
 0x37d   : > { %v893_v41 = vpop.xlane.xlu0 %892 }
 0x37e   : > { %3818 = vrcp.f32 %v893_v41 }
 0x381   : > { %v1060_v42 = vpop.xlane.xlu1 %1059  ;;  %v897_v43 = vpop.permute.xlu0 %896 }
 0x382   : > { %3820 = vrcp.f32 %v1060_v42  ;;  %3475 = vmatpush3.msra.mxu1 %v897_v43 }
 0x383   : > { %3484 = vmatprep.subr.mxu1 %v3877_v6 }
 0x385   : > { %v1064_v46 = vpop.permute.xlu1 %1063  ;;  %v1286_v55 = vpop.permute.xlu0 %1285 }
 0x388   : > { %v3819_v44 = vpop.eup %3818 }
 0x389   : > { %v895_v45 = vmul.f32 %v3819_v44, %v3815_v36  ;;  %v1288_v53 = vpop.permute.xlu1 %1287 }
 0x38b   : > { %3477 = vmatmul.mubr.msk.f32.vlgmr.msra.gmra.mrb[0].mxu1 %vm808_vm2, %v895_v45 }
 0x38c   : > { %v3821_v47 = vpop.eup %3820  ;;  %3485 = vmatpush3.msra.mxu1 %v1064_v46  ;;  %3486 = vmatprep.mubr.msk.f32.mxu1 %vm3876_vm0, %v3877_v6 }
 0x38d   : > { %v1062_v48 = vmul.f32 %v3821_v47, %v3817_v38  ;;  %3494 = vmatprep.subr.mxu1 %v3877_v6 }
 0x38f   : > { %3487 = vmatmul.mubr.msk.f32.vlgmr.msra.gmra.mrb[2].mxu1 %vm808_vm2, %v1062_v48 }
 0x390   : > { %3496 = vmatprep.mubr.msk.f32.mxu1 %vm3876_vm0, %v3877_v6  ;;  %3495 = vmatpush3.msra.mxu1 %v800_v49 }
 0x391   : > { %3504 = vmatprep.subr.mxu1 %v3877_v6 }
 0x45e   : > { %v968_v50 = vpop.f32.mrb[0].mxu1 }
 0x45f   : > { %v3478_v51 = vpop.f32.mrb[1].mxu1  ;;  %3497 = vmatmul.mubr.msk.f32.vlgmr.msra.gmra.mrb[4].mxu1 %vm808_vm2, %v968_v50 }
 0x460   : > { %3506 = vmatprep.mubr.msk.f32.mxu1 %vm3876_vm0, %v3877_v6 }
 0x462   : > { %v1135_v52 = vpop.f32.mrb[2].mxu1 }
 0x463   : > { %v3488_v54 = vpop.f32.mrb[3].mxu1  ;;  %3492 = vmatmul.mubr.msk.f32.vlgmr.msra.gmra.mrb[6].mxu0 %vm808_vm2, %v1135_v52  ;;  %v1809_v52 = vld [vmem:[%s4508_s9] sm:$0xff] }
 0x464   : > { %3500 = vmatpush3.xpose.msk.msra.mxu0 %vm808_vm2, %v1288_v53  ;;  %3501 = vmatprep.mubr.msk.f32.mxu0 %vm3876_vm0, %v3877_v6  ;;  %v1810_v53 = vld [vmem:[%s4508_s9 + $0x8] sm:$0xff]  ;;  %v1811_v54 = vld [vmem:[%s4508_s9 + $0x10] sm:$0xff] }
 0x465   : > { %3509 = vmatprep.subr.mxu0 %v3877_v6 }
 0x467   : > { %3502 = vmatmul.mubr.msk.f32.vlgmr.msra.gmra.mrb[8].mxu0 %vm808_vm2, %v1286_v55  ;;  %v1812_v55 = vld [vmem:[%s4508_s9 + $0x18] sm:$0xff]  ;;  %s4510_s9 = sld [smem:[#allocation7_spill]] }
 0x468   : > { %3511 = vmatprep.mubr.msk.f32.mxu0 %vm3876_vm0, %v3877_v6  ;;  %3510 = vmatpush3.msra.mxu0 %v802_v17 }
 0x469   : > { %3519 = vmatprep.subr.mxu0 %v3877_v6 }
 0x532   : > { %v1281_v56 = vpop.f32.mrb[4].mxu1 }
 0x533   : > { %v3498_v57 = vpop.f32.mrb[5].mxu1 }
 0x534   : > { %v3683_v57 = vpack.c.bf16 %v1812_v55, %v1811_v54 }
 0x536   : > { %v1208_v58 = vpop.f32.mrb[6].mxu0 }
 0x537   : > { %v4126_v59 = vadd.f32 %v1281_v56, %v1208_v58  ;;  %v3493_v60 = vpop.f32.mrb[7].mxu0  ;;  %v1893_v56 = vld [vmem:[%s4464_s11] sm:$0xff]  ;;  %v1894_v58 = vld [vmem:[%s4464_s11 + $0x8] sm:$0xff] }
 0x53a   : > { %v1359_v61 = vpop.f32.mrb[8].mxu0 }
 0x53b   : > { %v1363_v62 = vmul.f32 0.35355338, %v1359_v61  ;;  %v3503_v63 = vpop.f32.mrb[9].mxu0 }
 0x53d   : > { %v1364_v0 = vadd.f32 %v1363_v62, %v4085_v20 }
 0x53f   : > { %v1365_v1 = vsel %vm808_vm2, %v1364_v0, -inf }
 0x540   : > { %1366 = vmax.xlane.f32.xlu1 %v1365_v1 }
 0x551   : > { %1528 = vrot.lane.b32.xlu1 %v4062_v11, %s4480_s24 }
 0x555   : > { %1526 = vrot.lane.b32.xlu1 %v4062_v11, %s4482_s16 }
 0x5cd   : > { %v1367_v2 = vpop.xlane.xlu1 %1366 }
 0x5ce   : > { %v1368_v4 = vsub.f32 %v1364_v0, %v1367_v2  ;;  %v3322_v0 = vld [vmem:[%s4509_s7] ss:$0 sm:$0xff]  ;;  %s4517_s7 = smov 88  }
 0x5cf   : > { %v3323_v2 = vld [vmem:[%s4461_s8] ss:$0 sm:$0xff] }
 0x5d0   : > { %v1369_v5 = vmul.f32 1.442695, %v1368_v4  ;;  %v1895_v4 = vld [vmem:[%s4464_s11 + $0x10] sm:$0xff] }
 0x5d1   : > { %v1529_v14 = vpop.permute.xlu1 %1528 }
 0x5d2   : > { %3822 = vpow2.f32 %v1369_v5  ;;  %v1896_v5 = vld [vmem:[%s4464_s11 + $0x18] sm:$0xff] }
 0x5d5   : > { %v1527_v16 = vpop.permute.xlu1 %1526 }
 0x5dc   : > { %v3823_v7 = vpop.eup %3822 }
 0x5dd   : > { %v1371_v9 = vsel %vm808_vm2, %v3823_v7, 0.0 }
 0x5de   : > { %1372 = vadd.xlane.f32.xlu0 %v1371_v9 }
 0x5f4   : > { %1376 = vrot.lane.b32.xlu0 %v4062_v11, %s3887_s2  ;;  %s3888_s2 = smov 40  }
 0x66b   : > { %v1373_v10 = vpop.xlane.xlu0 %1372 }
 0x66c   : > { %3824 = vrcp.f32 %v1373_v10  ;;  %v3689_v10 = vpack.c.bf16 %v1896_v5, %v1895_v4 }
 0x66f   : > { %v1377_v12 = vpop.permute.xlu0 %1376 }
 0x670   : > { %3505 = vmatpush3.msra.mxu1 %v1377_v12 }
 0x671   : > { %3514 = vmatprep.subr.mxu1 %v3877_v6 }
 0x676   : > { %v3825_v13 = vpop.eup %3824 }
 0x677   : > { %v1375_v15 = vmul.f32 %v3825_v13, %v3823_v7 }
 0x679   : > { %3507 = vmatmul.mubr.msk.f32.vlgmr.msra.gmra.mrb[6].mxu1 %vm808_vm2, %v1375_v15 }
 0x67a   : > { %3515 = vmatpush3.xpose.msk.msra.mxu1 %vm808_vm2, %v1529_v14  ;;  %3516 = vmatprep.mubr.msk.f32.mxu1 %vm3876_vm0, %v3877_v6 }
 0x67b   : > { %3524 = vmatprep.subr.mxu1 %v3877_v6 }
 0x67d   : > { %3517 = vmatmul.mubr.msk.f32.vlgmr.msra.gmra.mrb[8].mxu1 %vm808_vm2, %v1527_v16  ;;  %v3326_v16 = vld [vmem:[%s4465_s12] ss:$0 sm:$0xff] }
 0x67e   : > { %3526 = vmatprep.mubr.msk.f32.mxu1 %vm3876_vm0, %v3877_v6 }
 0x74c   : > { %v1448_v19 = vpop.f32.mrb[6].mxu1 }
 0x74d   : > { %v3508_v21 = vpop.f32.mrb[7].mxu1  ;;  %3512 = vmatmul.mubr.msk.f32.vlgmr.msra.gmra.mrb[10].mxu0 %vm808_vm2, %v1448_v19 }
 0x74e   : > { %3521 = vmatprep.mubr.msk.f32.mxu0 %vm3876_vm0, %v3877_v6 }
 0x750   : > { %v1600_v22 = vpop.f32.mrb[8].mxu1 }
 0x751   : > { %v1604_v23 = vmul.f32 0.35355338, %v1600_v22  ;;  %v3518_v24 = vpop.f32.mrb[9].mxu1 }
 0x753   : > { %v1605_v25 = vadd.f32 %v1604_v23, %v4085_v20  ;;  %v803_v20 = vld [vmem:[%s4506_s27 + $0x18] sm:$0xff]  ;;  %s701_s27 = scalar_lea.vmem %s4510_s9, %s3363_s25  ;;  %s1805_s25 = sld [smem:[#allocation3 + %s4019_s26]] }
 0x754   : > { %3525 = vmatpush3.msra.mxu1 %v803_v20  ;;  %v707_v12 = vld [vmem:[%s701_s27] sm:$0xff]  ;;  %v708_v13 = vld [vmem:[%s701_s27 + $0x8] sm:$0x1]  ;;  %s4513_s27 = smov 120   ;;  %s4514_s26 = smov 96  }
 0x755   : > { %v1606_v26 = vsel %vm808_vm2, %v1605_v25, -inf  ;;  %3697 = vmatprep.subr.bf16.mxu1 %v3875_v3  ;;  %s4521_s9 = smov 72  }
 0x756   : > { %1607 = vmax.xlane.f32.xlu0 %v1606_v26  ;;  %v3324_v26 = vld [vmem:[%s4463_s10] ss:$0 sm:$0xff] }
 0x76c   : > { %1617 = vrot.lane.b32.xlu0 %v4062_v11, %s3888_s2  ;;  %s4520_s2 = smov 80  }
 0x7e3   : > { %v1608_v27 = vpop.xlane.xlu0 %1607 }
 0x7e4   : > { %v1609_v28 = vsub.f32 %v1605_v25, %v1608_v27 }
 0x7e6   : > { %v1610_v29 = vmul.f32 1.442695, %v1609_v28  ;;  %v1806_v28 = vstv %s1805_s25 }
 0x7e7   : > { %v1618_v30 = vpop.permute.xlu0 %1617  ;;  %vm1807_vm5 = vcmp.ge.s32.totalorder %v4081_v18, %v1806_v28 }
 0x7e8   : > { %3826 = vpow2.f32 %v1610_v29  ;;  %3520 = vmatpush3.msra.mxu0 %v1618_v30  ;;  %v4244_v30 = vsel %vm1807_vm5, -1e+30, %v3877_v6 }
 0x7e9   : > { %3679 = vmatprep.subr.bf16.mxu0 %v3875_v3 }
 0x7f2   : > { %v3827_v31 = vpop.eup %3826 }
 0x7f3   : > { %v1612_v32 = vsel %vm808_vm2, %v3827_v31, 0.0 }
 0x7f4   : > { %1613 = vadd.xlane.f32.xlu1 %v1612_v32 }
 0x820   : > { %v1521_v11 = vpop.f32.mrb[10].mxu0 }
 0x821   : > { %v1525_v33 = vadd.f32 %v1521_v11, %v4126_v59  ;;  %v3513_v34 = vpop.f32.mrb[11].mxu0  ;;  %v3685_v59 = vpack.c.bf16 %v1894_v58, %v1893_v56 }
 0x881   : > { %v1614_v35 = vpop.xlane.xlu1 %1613 }
 0x882   : > { %3828 = vrcp.f32 %v1614_v35 }
 0x88c   : > { %v3829_v36 = vpop.eup %3828 }
 0x88d   : > { %v1616_v37 = vmul.f32 %v3829_v36, %v3827_v31 }
 0x88f   : > { %3522 = vmatmul.mubr.msk.f32.vlgmr.msra.gmra.mrb[12].mxu0 %vm808_vm2, %v1616_v37 }
 0x890   : > { %3537 = vmatprep.mubr.msk.f32.mxu0 %vm3876_vm0, %v3877_v6 }
 0x962   : > { %v1689_v38 = vpop.f32.mrb[12].mxu0 }
 0x963   : > { %v3523_v39 = vpop.f32.mrb[13].mxu0  ;;  %3527 = vmatmul.mubr.msk.f32.vlgmr.msra.gmra.mrb[10].mxu1 %vm808_vm2, %v1689_v38 }
 0x964   : > { %3562 = vmatprep.mubr.msk.f32.mxu1 %vm3876_vm0, %v3877_v6 }
 0xa36   : > { %v1762_v41 = vpop.f32.mrb[10].mxu1 }
 0xa37   : > { %v1766_v42 = vadd.f32 %v1762_v41, %v1525_v33  ;;  %v3528_v43 = vpop.f32.mrb[11].mxu1 }
 0xa39   : > { %v1773_v44 = vadd.f32 %v3321_v40, %v1766_v42 }
 0xa3b   : > { %v1774_v45 = vadd.f32 %v1773_v44, %v4052_v8  ;;  %v3680_v8 = vpack.c.bf16 %v1810_v53, %v1809_v52 }
 0xa3d   : > { %v1777_v46 = vsel %vm726_vm1, %v1774_v45, 0.0  ;;  %3681 = vmatpush3.bf16.msra.mxu0 %v3680_v8 }
 0xa3e   : > { %1778 = vadd.xlane.f32.xlu1 %v1777_v46  ;;  %3682 = vmatprep.subr.bf16.mxu0 %v3875_v3 }
 0xa41   : > { %3684 = vmatpush3.bf16.msra.mxu0 %v3683_v57 }
 0xa42   : > { %3686 = vmatprep.subr.bf16.mxu0 %v3685_v59 }
 0xacb   : > { %v1779_v47 = vpop.xlane.xlu1 %1778 }
 0xacc   : > { %v1781_v48 = vmul.f32 0.03125, %v1779_v47 }
 0xace   : > { %v1782_v49 = vsub.f32 %v1774_v45, %v1781_v48 }
 0xad0   : > { %v1783_v50 = vmul.f32 %v1782_v49, %v1782_v49 }
 0xad2   : > { %v1784_v51 = vsel %vm726_vm1, %v1783_v50, 0.0  ;;  %v1985_v50 = vld [vmem:[%s4466_s13] sm:$0xff] }
 0xad3   : > { %1785 = vadd.xlane.f32.xlu1 %v1784_v51 }
 0xb60   : > { %v1786_v60 = vpop.xlane.xlu1 %1785 }
 0xb61   : > { %v1787_v61 = vmul.f32 0.03125, %v1786_v60 }
 0xb63   : > { %v1788_v62 = vadd.f32 1e-05, %v1787_v61 }
 0xb65   : > { %3830 = vrsqrt.f32 %v1788_v62 }
 0xb6f   : > { %v3831_v63 = vpop.eup %3830 }
 0xb70   : > { %v1790_v1 = vmul.f32 %v3831_v63, %v1782_v49 }
 0xb72   : > { %v1797_v7 = vmul.f32 %v3322_v0, %v1790_v1 }
 0xb74   : > { %v4209_v9 = vadd.f32 %v3323_v2, %v1797_v7 }
 0xb76   : > { %3538 = vmatmul.mubr.msk.f32.vlgmr.msra.gmra.mrb[14].mxu0 %vm726_vm1, %v4209_v9 }
 0xb77   : > { %3688 = vmatpush3.bf16.msra.mxu0 %v3685_v59  ;;  %3548 = vmatprep.mubr.msk.f32.mxu0 %vm726_vm1, %v707_v12  ;;  %v1986_v12 = vld [vmem:[%s4466_s13 + $0x8] sm:$0xff] }
 0xb78   : > { %3690 = vmatprep.subr.bf16.mxu0 %v3689_v10 }
 0xb7b   : > { %3692 = vmatpush3.bf16.msra.mxu0 %v3689_v10 }
 0xb7c   : > { %3693 = vmatprep.subr.bf16.mxu0 %v3875_v3 }
 0xb7e   : > { %3549 = vmatmul.mubr.msk.f32.vlgmr.msra.gmra.mrb[16].mxu0 %vm726_vm1, %v708_v13 }
 0xb7f   : > { %3555 = vmatprep.mubr.msk.f32.mxu0 %vm3876_vm0, %v3877_v6 }
 0xc49   : > { %v1889_v14 = vpop.f32.mrb[14].mxu0 }
 0xc4a   : > { %v3539_v15 = vpop.f32.mrb[15].mxu0  ;;  %v1890_v27 = vadd.f32 %v3324_v26, %v1889_v14 }
 0xc51   : > { %v3550_v17 = vpop.f32.mrb[16].mxu0 }
 0xc52   : > { %v1982_v19 = vadd.f32 %v3550_v17, %v3326_v16  ;;  %v1976_v21 = vpop.f32.mrb[17].mxu0 }
 0xc53   : > { %v1977_v22 = vadd.f32 %v3326_v16, %v1976_v21 }
 0xc55   : > { %v4227_v24 = vpack.i.bf16 %v1982_v19, %v1977_v22  ;;  %v3694_v25 = vpack.c.bf16 %v1982_v19, %v1977_v22 }
 0xc57   : > { %3785 = vrot.lane.b32.xlu0 %v4227_v24, %s4513_s27  ;;  %3696 = vmatpush3.bf16.xpose.msk.msra.mxu0 %vm4223_vm4, %v3694_v25 }
 0xc58   : > { %3705 = vmatprep.subr.bf16.mxu0 %v3875_v3 }
 0xc5b   : > { %2164 = vrot.lane.b32.xlu0 %v1890_v27, %s4513_s27 }
 0xc5e   : > { %3556 = vmatmul.mubr.msk.f32.vlgmr.msra.gmra.mrb[18].mxu0 %vm808_vm2, %v1890_v27 }
 0xc5f   : > { %3576 = vmatprep.mubr.msk.f32.mxu0 %vm3876_vm0, %v3877_v6 }
 0xcc9   : > { %v3786_v43 = vpop.permute.xlu0 %3785 }
 0xcca   : > { %v3788_v45 = vunpack.i.h.bf16 %v3786_v43  ;;  %v3787_v46 = vunpack.i.l.bf16 %v3786_v43 }
 0xccc   : > { %v3702_v48 = vpack.c.bf16 %v3788_v45, %v3787_v46 }
 0xccd   : > { %v2165_v49 = vpop.permute.xlu0 %2164 }
 0xd31   : > { %v2065_v29 = vpop.f32.mrb[18].mxu0 }
 0xd32   : > { %v2069_v31 = vmul.f32 0.35355338, %v2065_v29  ;;  %v3557_v32 = vpop.f32.mrb[19].mxu0 }
 0xd34   : > { %v2070_v20 = vadd.f32 %v2069_v31, %v4244_v30 }
 0xd36   : > { %v2072_v11 = vsel %vm2071_vm6, %v2070_v20, -inf }
 0xd37   : > { %2073 = vmax.xlane.f32.xlu1 %v2072_v11 }
 0xdc4   : > { %v2074_v33 = vpop.xlane.xlu1 %2073 }
 0xdc5   : > { %v2075_v34 = vsub.f32 %v2070_v20, %v2074_v33 }
 0xdc7   : > { %v2076_v35 = vmul.f32 1.442695, %v2075_v34 }
 0xdc9   : > { %3832 = vpow2.f32 %v2076_v35 }
 0xdd3   : > { %v3833_v36 = vpop.eup %3832 }
 0xdd4   : > { %v2078_v37 = vsel %vm2071_vm6, %v3833_v36, 0.0 }
 0xdd5   : > { %2079 = vadd.xlane.f32.xlu1 %v2078_v37 }
 0xde6   : > { %3780 = vrot.lane.b32.xlu1 %v4227_v24, %s4514_s26 }
 0xe62   : > { %v2080_v18 = vpop.xlane.xlu1 %2079 }
 0xe63   : > { %3834 = vrcp.f32 %v2080_v18 }
 0xe66   : > { %v3781_v38 = vpop.permute.xlu1 %3780 }
 0xe67   : > { %v3783_v39 = vunpack.i.h.bf16 %v3781_v38  ;;  %v3782_v40 = vunpack.i.l.bf16 %v3781_v38 }
 0xe69   : > { %v3698_v42 = vpack.c.bf16 %v3783_v39, %v3782_v40 }
 0xe6b   : > { %3700 = vmatpush3.bf16.msk.msra.mxu1 %vm4251_vm9, %v3698_v42 }
 0xe6c   : > { %3701 = vmatprep.subr.bf16.mxu1 %v3875_v3 }
 0xe6d   : > { %v3835_v44 = vpop.eup %3834 }
 0xe6e   : > { %v2082_v47 = vmul.f32 %v3835_v44, %v3833_v36 }
 0xe70   : > { %3563 = vmatmul.mubr.msk.f32.vlgmr.msra.gmra.mrb[12].mxu1 %vm2071_vm6, %v2082_v47 }
 0xe71   : > { %3569 = vmatprep.mubr.msk.f32.mxu1 %vm3876_vm0, %v3877_v6 }
 0xe74   : > { %3704 = vmatpush3.bf16.xpose.msk.msra.mxu1 %vm4223_vm4, %v3702_v48 }
 0xe75   : > { %3584 = vmatprep.subr.mxu1 %v3877_v6 }
 0xe7b   : > { %3570 = vmatmul.mubr.msk.f32.vlgmr.msra.gmra.mrb[14].mxu1 %vm808_vm2, %v2165_v49 }
 0xe7c   : > { %3586 = vmatprep.mubr.msk.f32.mxu1 %vm3876_vm0, %v3877_v6  ;;  %3585 = vmatpush3.msra.mxu1 %v1985_v50 }
 0xe7d   : > { %3713 = vmatprep.subr.bf16.mxu1 %v3875_v3 }
 0xf43   : > { %v2160_v51 = vpop.f32.mrb[12].mxu1 }
 0xf44   : > { %v3564_v52 = vpop.f32.mrb[13].mxu1  ;;  %3587 = vmatmul.mubr.msk.f32.vlgmr.msra.gmra.mrb[16].mxu1 %vm808_vm2, %v2160_v51 }
 0xf45   : > { %3600 = vmatprep.mubr.msk.f32.mxu1 %vm3876_vm0, %v3877_v6 }
 0xf4e   : > { %v2242_v53 = vpop.f32.mrb[14].mxu1 }
 0xf4f   : > { %v2246_v8 = vmul.f32 0.35355338, %v2242_v53  ;;  %v3571_v54 = vpop.f32.mrb[15].mxu1 }
 0xf51   : > { %v2247_v55 = vadd.f32 %v2246_v8, %v4244_v30 }
 0xf53   : > { %v2248_v56 = vsel %vm2071_vm6, %v2247_v55, -inf }
 0xf54   : > { %2249 = vmax.xlane.f32.xlu0 %v2248_v56 }
 0xf6a   : > { %3790 = vrot.lane.b32.xlu0 %v4227_v24, %s4517_s7 }
 0xf6e   : > { %2485 = vrot.lane.b32.xlu0 %v1890_v27, %s4518_s3 }
 0xf72   : > { %3800 = vrot.lane.b32.xlu0 %v4227_v24, %s4519_s0 }
 0xf76   : > { %2734 = vrot.lane.b32.xlu0 %v1890_v27, %s4519_s0 }
 0xfe1   : > { %v2250_v57 = vpop.xlane.xlu0 %2249 }
 0xfe2   : > { %v2251_v58 = vsub.f32 %v2247_v55, %v2250_v57  ;;  %v1987_v55 = vld [vmem:[%s4466_s13 + $0x10] sm:$0xff] }
 0xfe4   : > { %v2252_v59 = vmul.f32 1.442695, %v2251_v58 }
 0xfe5   : > { %v3791_v60 = vpop.permute.xlu0 %3790 }
 0xfe6   : > { %3836 = vpow2.f32 %v2252_v59  ;;  %v3793_v61 = vunpack.i.h.bf16 %v3791_v60  ;;  %v3792_v62 = vunpack.i.l.bf16 %v3791_v60 }
 0xfe8   : > { %v3706_v63 = vpack.c.bf16 %v3793_v61, %v3792_v62 }
 0xfe9   : > { %v2486_v14 = vpop.permute.xlu0 %2485 }
 0xfea   : > { %3708 = vmatpush3.bf16.msk.msra.mxu0 %vm4251_vm9, %v3706_v63 }
 0xfeb   : > { %3579 = vmatprep.subr.mxu0 %v3877_v6 }
 0xfed   : > { %v3801_v21 = vpop.permute.xlu0 %3800 }
 0xfee   : > { %v3803_v25 = vunpack.i.h.bf16 %v3801_v21  ;;  %v3802_v26 = vunpack.i.l.bf16 %v3801_v21 }
 0xff0   : > { %v3837_v0 = vpop.eup %3836  ;;  %v3718_v27 = vpack.c.bf16 %v3803_v25, %v3802_v26  ;;  %v3021_v26 = vld [vmem:[%s4470_s17 + $0x8] sm:$0xff] }
 0xff1   : > { %v2254_v1 = vsel %vm2071_vm6, %v3837_v0, 0.0  ;;  %v2735_v28 = vpop.permute.xlu0 %2734 }
 0xff2   : > { %2255 = vadd.xlane.f32.xlu1 %v2254_v1 }
0x1003   : > { %3795 = vrot.lane.b32.xlu1 %v4227_v24, %s4518_s3 }
0x1017   : > { %v2481_v2 = vpop.f32.mrb[16].mxu1 }
0x1018   : > { %v3588_v4 = vpop.f32.mrb[17].mxu1 }
0x107f   : > { %v2256_v5 = vpop.xlane.xlu1 %2255 }
0x1080   : > { %3838 = vrcp.f32 %v2256_v5 }
0x1083   : > { %v3796_v13 = vpop.permute.xlu1 %3795 }
0x1084   : > { %v3798_v15 = vunpack.i.h.bf16 %v3796_v13  ;;  %v3797_v16 = vunpack.i.l.bf16 %v3796_v13 }
0x1086   : > { %v3710_v17 = vpack.c.bf16 %v3798_v15, %v3797_v16 }
0x108a   : > { %v3839_v7 = vpop.eup %3838 }
0x108b   : > { %v2258_v10 = vmul.f32 %v3839_v7, %v3837_v0  ;;  %v1988_v0 = vld [vmem:[%s4466_s13 + $0x18] sm:$0xff]  ;;  %v3353_v7 = vld [vmem:[%s4467_s14] ss:$0 sm:$0xff] }
0x108d   : > { %3577 = vmatmul.mubr.msk.f32.vlgmr.msra.gmra.mrb[20].mxu0 %vm2071_vm6, %v2258_v10 }
0x108e   : > { %3580 = vmatpush3.msra.mxu0 %v1986_v12  ;;  %3581 = vmatprep.mubr.msk.f32.mxu0 %vm3876_vm0, %v3877_v6 }
0x108f   : > { %3709 = vmatprep.subr.bf16.mxu0 %v3875_v3 }
0x1160   : > { %v2335_v19 = vpop.f32.mrb[20].mxu0 }
0x1161   : > { %v3578_v22 = vpop.f32.mrb[21].mxu0  ;;  %3582 = vmatmul.mubr.msk.f32.vlgmr.msra.gmra.mrb[22].mxu0 %vm808_vm2, %v2335_v19 }
0x1162   : > { %3712 = vmatpush3.bf16.xpose.msk.msra.mxu0 %vm4223_vm4, %v3710_v17  ;;  %3593 = vmatprep.mubr.msk.f32.mxu0 %vm3876_vm0, %v3877_v6 }
0x1163   : > { %3717 = vmatprep.subr.bf16.mxu0 %v3875_v3 }
0x1169   : > { %3594 = vmatmul.mubr.msk.f32.vlgmr.msra.gmra.mrb[24].mxu0 %vm808_vm2, %v2486_v14 }
0x116a   : > { %3720 = vmatpush3.bf16.xpose.msk.msra.mxu0 %vm4223_vm4, %v3718_v27  ;;  %3612 = vmatprep.mubr.msk.f32.mxu0 %vm3876_vm0, %v3877_v6 }
0x116b   : > { %3725 = vmatprep.subr.bf16.mxu0 %v3875_v3 }
0x1171   : > { %3613 = vmatmul.mubr.msk.f32.vlgmr.msra.gmra.mrb[26].mxu0 %vm808_vm2, %v2735_v28  ;;  %v3023_v28 = vld [vmem:[%s4470_s17 + $0x18] sm:$0xff] }
0x1172   : > { %3635 = vmatprep.mubr.msk.f32.mxu0 %vm3876_vm0, %v3877_v6 }
0x1234   : > { %v2408_v29 = vpop.f32.mrb[22].mxu0 }
0x1235   : > { %v4310_v31 = vadd.f32 %v2481_v2, %v2408_v29  ;;  %v3583_v32 = vpop.f32.mrb[23].mxu0 }
0x1236   : > { %v3106_v32 = vld [vmem:[%s4472_s19 + $0x8] sm:$0xff] }
0x123c   : > { %v2563_v20 = vpop.f32.mrb[24].mxu0 }
0x123d   : > { %v2567_v11 = vmul.f32 0.35355338, %v2563_v20  ;;  %v3595_v33 = vpop.f32.mrb[25].mxu0  ;;  %v3107_v20 = vld [vmem:[%s4472_s19 + $0x10] sm:$0xff] }
0x123e   : > { %v3108_v33 = vld [vmem:[%s4472_s19 + $0x18] sm:$0xff] }
0x123f   : > { %v2568_v23 = vadd.f32 %v2567_v11, %v4244_v30 }
0x1241   : > { %v2569_v34 = vsel %vm2071_vm6, %v2568_v23, -inf }
0x1242   : > { %2570 = vmax.xlane.f32.xlu1 %v2569_v34  ;;  %v3109_v34 = vld [vmem:[%s4472_s19 + $0x20] sm:$0xff] }
0x1244   : > { %v2812_v35 = vpop.f32.mrb[26].mxu0 }
0x1245   : > { %v2816_v36 = vmul.f32 0.35355338, %v2812_v35  ;;  %v3614_v37 = vpop.f32.mrb[27].mxu0  ;;  %v3110_v35 = vld [vmem:[%s4472_s19 + $0x28] sm:$0xff] }
0x1246   : > { %v3111_v37 = vld [vmem:[%s4472_s19 + $0x30] sm:$0xff] }
0x1247   : > { %v2817_v18 = vadd.f32 %v2816_v36, %v4244_v30  ;;  %v3738_v36 = vpack.c.bf16 %v3110_v35, %v3109_v34 }
0x1249   : > { %v2818_v38 = vsel %vm2071_vm6, %v2817_v18, -inf }
0x124a   : > { %2819 = vmax.xlane.f32.xlu1 %v2818_v38 }
0x12cf   : > { %v2571_v39 = vpop.xlane.xlu1 %2570 }
0x12d0   : > { %v2572_v40 = vsub.f32 %v2568_v23, %v2571_v39  ;;  %v3735_v23 = vpack.c.bf16 %v3108_v33, %v3107_v20  ;;  %v3113_v39 = vld [vmem:[%s4472_s19 + $0x40] sm:$0xff] }
0x12d2   : > { %v2573_v42 = vmul.f32 1.442695, %v2572_v40  ;;  %v3114_v40 = vld [vmem:[%s4472_s19 + $0x48] sm:$0xff] }
0x12d4   : > { %3840 = vpow2.f32 %v2573_v42  ;;  %v3744_v42 = vpack.c.bf16 %v3114_v40, %v3113_v39 }
0x12d7   : > { %v2820_v43 = vpop.xlane.xlu1 %2819 }
0x12d8   : > { %v2821_v44 = vsub.f32 %v2817_v18, %v2820_v43  ;;  %v3112_v18 = vld [vmem:[%s4472_s19 + $0x38] sm:$0xff]  ;;  %v3115_v43 = vld [vmem:[%s4472_s19 + $0x50] sm:$0xff] }
0x12d9   : > { %v3741_v38 = vpack.c.bf16 %v3112_v18, %v3111_v37 }
0x12da   : > { %v2822_v45 = vmul.f32 1.442695, %v2821_v44  ;;  %v3116_v44 = vld [vmem:[%s4472_s19 + $0x58] sm:$0xff] }
0x12dc   : > { %3842 = vpow2.f32 %v2822_v45  ;;  %v3747_v45 = vpack.c.bf16 %v3116_v44, %v3115_v43 }
0x12de   : > { %v3841_v46 = vpop.eup %3840 }
0x12df   : > { %v2575_v47 = vsel %vm2071_vm6, %v3841_v46, 0.0 }
0x12e0   : > { %2576 = vadd.xlane.f32.xlu0 %v2575_v47  ;;  %v3118_v47 = vld [vmem:[%s4472_s19 + $0x68] sm:$0xff] }
0x12e6   : > { %v3843_v48 = vpop.eup %3842 }
0x12e7   : > { %v2824_v49 = vsel %vm2071_vm6, %v3843_v48, 0.0 }
0x12e8   : > { %2825 = vadd.xlane.f32.xlu1 %v2824_v49 }
0x12f6   : > { %3805 = vrot.lane.b32.xlu0 %v4227_v24, %s4520_s2 }
0x12f9   : > { %3810 = vrot.lane.b32.xlu1 %v4227_v24, %s4521_s9  ;;  %s4523_s9 = sshll.u32 %s4043_s4, 3 }
0x12fa   : > { %s705_s29 = scalar_lea.vmem %s4476_s23, %s4523_s9 }
0x136d   : > { %v2577_v30 = vpop.xlane.xlu0 %2576 }
0x136e   : > { %3844 = vrcp.f32 %v2577_v30 }
0x1371   : > { %v3806_v50 = vpop.permute.xlu0 %3805 }
0x1372   : > { %v3808_v51 = vunpack.i.h.bf16 %v3806_v50  ;;  %v3807_v52 = vunpack.i.l.bf16 %v3806_v50 }
0x1374   : > { %v3714_v53 = vpack.c.bf16 %v3808_v51, %v3807_v52  ;;  %v3354_v52 = vld [vmem:[%s4468_s15] ss:$0 sm:$0xff] }
0x1375   : > { %v2826_v24 = vpop.xlane.xlu1 %2825 }
0x1376   : > { %3716 = vmatpush3.bf16.msk.msra.mxu1 %vm4251_vm9, %v3714_v53  ;;  %3846 = vrcp.f32 %v2826_v24  ;;  %v3120_v24 = vld [vmem:[%s4472_s19 + $0x78] sm:$0xff] }
0x1377   : > { %3603 = vmatprep.subr.mxu1 %v3877_v6 }
0x1378   : > { %v3845_v8 = vpop.eup %3844 }
0x1379   : > { %v2579_v54 = vmul.f32 %v3845_v8, %v3841_v46  ;;  %v3811_v56 = vpop.permute.xlu1 %3810  ;;  %v3117_v46 = vld [vmem:[%s4472_s19 + $0x60] sm:$0xff] }
0x137a   : > { %v3813_v57 = vunpack.i.h.bf16 %v3811_v56  ;;  %v3812_v58 = vunpack.i.l.bf16 %v3811_v56  ;;  %v3355_v8 = vld [vmem:[%s4522_s28] ss:$0 sm:$0xff] }
0x137b   : > { %3601 = vmatmul.mubr.msk.f32.vlgmr.msra.gmra.mrb[18].mxu1 %vm2071_vm6, %v2579_v54 }
0x137c   : > { %3604 = vmatpush3.msra.mxu1 %v1987_v55  ;;  %3605 = vmatprep.mubr.msk.f32.mxu1 %vm3876_vm0, %v3877_v6  ;;  %v3722_v60 = vpack.c.bf16 %v3813_v57, %v3812_v58  ;;  %v3356_v57 = vld [vmem:[%s4471_s18] ss:$0 sm:$0xff] }
0x137d   : > { %3721 = vmatprep.subr.bf16.mxu1 %v3875_v3 }
0x1380   : > { %v3847_v59 = vpop.eup %3846 }
0x1381   : > { %v2828_v63 = vmul.f32 %v3847_v59, %v3843_v48  ;;  %v3750_v48 = vpack.c.bf16 %v3118_v47, %v3117_v46 }
0x144e   : > { %v2656_v61 = vpop.f32.mrb[18].mxu1 }
0x144f   : > { %v3602_v62 = vpop.f32.mrb[19].mxu1  ;;  %3606 = vmatmul.mubr.msk.f32.vlgmr.msra.gmra.mrb[20].mxu1 %vm808_vm2, %v2656_v61 }
0x1450   : > { %3724 = vmatpush3.bf16.msk.msra.mxu1 %vm4251_vm9, %v3722_v60  ;;  %3619 = vmatprep.mubr.msk.f32.mxu1 %vm3876_vm0, %v3877_v6  ;;  %v3358_v62 = vld [vmem:[%s4473_s20] ss:$0 sm:$0xff] }
0x1451   : > { %3622 = vmatprep.subr.mxu1 %v3877_v6 }
0x1453   : > { %3620 = vmatmul.mubr.msk.f32.vlgmr.msra.gmra.mrb[22].mxu1 %vm2071_vm6, %v2828_v63 }
0x1454   : > { %3624 = vmatprep.mubr.msk.f32.mxu1 %vm3876_vm0, %v3877_v6  ;;  %3623 = vmatpush3.msra.mxu1 %v1988_v0 }
0x1455   : > { %3731 = vmatprep.subr.bf16.mxu1 %v3875_v3 }
0x1522   : > { %v2729_v41 = vpop.f32.mrb[20].mxu1 }
0x1523   : > { %v2733_v1 = vadd.f32 %v2729_v41, %v4310_v31  ;;  %v3607_v2 = vpop.f32.mrb[21].mxu1  ;;  %v3105_v31 = vld [vmem:[%s4472_s19] sm:$0xff] }
0x1524   : > { %v3732_v11 = vpack.c.bf16 %v3106_v32, %v3105_v31 }
0x1526   : > { %v2905_v4 = vpop.f32.mrb[22].mxu1 }
0x1527   : > { %v3621_v5 = vpop.f32.mrb[23].mxu1  ;;  %3625 = vmatmul.mubr.msk.f32.vlgmr.msra.gmra.mrb[24].mxu1 %vm808_vm2, %v2905_v4 }
0x1528   : > { %3670 = vmatprep.mubr.msk.f32.mxu1 %vm3876_vm0, %v3877_v6  ;;  %v3020_v6 = vld [vmem:[%s4470_s17] sm:$0xff]  ;;  %3733 = vmatpush3.bf16.msra.mxu1 %v3732_v11 }
0x1529   : > { %v3726_v27 = vpack.c.bf16 %v3021_v26, %v3020_v6  ;;  %3734 = vmatprep.subr.bf16.mxu1 %v3875_v3 }
0x152b   : > { %3727 = vmatpush3.bf16.msra.mxu0 %v3726_v27 }
0x152c   : > { %3728 = vmatprep.subr.bf16.mxu0 %v3875_v3  ;;  %3736 = vmatpush3.bf16.msra.mxu1 %v3735_v23 }
0x152d   : > { %3737 = vmatprep.subr.bf16.mxu1 %v3875_v3 }
0x1530   : > { %3739 = vmatpush3.bf16.msra.mxu1 %v3738_v36 }
0x1531   : > { %3740 = vmatprep.subr.bf16.mxu1 %v3875_v3 }
0x1534   : > { %3742 = vmatpush3.bf16.msra.mxu1 %v3741_v38 }
0x1535   : > { %3743 = vmatprep.subr.bf16.mxu1 %v3875_v3 }
0x1538   : > { %3745 = vmatpush3.bf16.msra.mxu1 %v3744_v42 }
0x1539   : > { %3746 = vmatprep.subr.bf16.mxu1 %v3875_v3 }
0x153c   : > { %3748 = vmatpush3.bf16.msra.mxu1 %v3747_v45 }
0x153d   : > { %3749 = vmatprep.subr.bf16.mxu1 %v3875_v3 }
0x1540   : > { %3751 = vmatpush3.bf16.msra.mxu1 %v3750_v48 }
0x1541   : > { %3752 = vmatprep.subr.bf16.mxu1 %v3875_v3  ;;  %v3119_v3 = vld [vmem:[%s4472_s19 + $0x70] sm:$0xff] }
0x1542   : > { %v3753_v56 = vpack.c.bf16 %v3120_v24, %v3119_v3 }
0x1544   : > { %3754 = vmatpush3.bf16.msra.mxu1 %v3753_v56 }
0x15fa   : > { %v2978_v10 = vpop.f32.mrb[24].mxu1 }
0x15fb   : > { %v2982_v12 = vadd.f32 %v2978_v10, %v2733_v1  ;;  %v3626_v13 = vpop.f32.mrb[25].mxu1 }
0x15fd   : > { %v2989_v14 = vadd.f32 %v3353_v7, %v2982_v12 }
0x15ff   : > { %v2990_v15 = vadd.f32 %v2989_v14, %v4209_v9  ;;  %v3022_v9 = vld [vmem:[%s4470_s17 + $0x10] sm:$0xff] }
0x1600   : > { %v3729_v29 = vpack.c.bf16 %v3023_v28, %v3022_v9 }
0x1601   : > { %v2993_v16 = vsel %vm726_vm1, %v2990_v15, 0.0 }
0x1602   : > { %2994 = vadd.xlane.f32.xlu0 %v2993_v16  ;;  %3730 = vmatpush3.bf16.msra.mxu0 %v3729_v29 }
0x168f   : > { %v2995_v17 = vpop.xlane.xlu0 %2994 }
0x1690   : > { %v2996_v19 = vmul.f32 0.03125, %v2995_v17  ;;  %v3359_v17 = vld [vmem:[%s4474_s21] ss:$0 sm:$0xff] }
0x1692   : > { %v2997_v21 = vsub.f32 %v2990_v15, %v2996_v19 }
0x1694   : > { %v2998_v22 = vmul.f32 %v2997_v21, %v2997_v21 }
0x1696   : > { %v2999_v25 = vsel %vm726_vm1, %v2998_v22, 0.0 }
0x1697   : > { %3000 = vadd.xlane.f32.xlu1 %v2999_v25 }
0x1724   : > { %v3001_v49 = vpop.xlane.xlu1 %3000 }
0x1725   : > { %v3002_v30 = vmul.f32 0.03125, %v3001_v49 }
0x1727   : > { %v3003_v50 = vadd.f32 1e-05, %v3002_v30 }
0x1729   : > { %3848 = vrsqrt.f32 %v3003_v50 }
0x1733   : > { %v3849_v51 = vpop.eup %3848 }
0x1734   : > { %v3005_v53 = vmul.f32 %v3849_v51, %v2997_v21  ;;  %v3360_v21 = vld [vmem:[%s4475_s22] ss:$0 sm:$0xff] }
0x1736   : > { %v3012_v54 = vmul.f32 %v3354_v52, %v3005_v53 }
0x1738   : > { %v3019_v55 = vadd.f32 %v3355_v8, %v3012_v54 }
0x173a   : > { %3636 = vmatmul.mubr.msk.f32.vlgmr.msra.gmra.mrb[28].mxu0 %vm726_vm1, %v3019_v55 }
0x180d   : > { %v3100_v58 = vpop.f32.mrb[28].mxu0 }
0x180e   : > { %v3101_v59 = vadd.f32 %v3356_v57, %v3100_v58  ;;  %v3637_v60 = vpop.f32.mrb[29].mxu0 }
0x1810   : > { %v3104_v61 = vmax.f32 %v3101_v59, 0.0 }
0x1812   : > { %3671 = vmatmul.mubr.f32.vlgmr.msra.gmra.mrb[26].mxu1 %v3104_v61 }
0x18e5   : > { %v3194_v63 = vpop.f32.mrb[26].mxu1 }
0x18e6   : > { %v3195_v0 = vadd.f32 %v3358_v62, %v3194_v63  ;;  %v3672_v41 = vpop.f32.mrb[27].mxu1 }
0x18e8   : > { %v3198_v1 = vadd.f32 %v3195_v0, %v3019_v55 }
0x18ea   : > { %v3201_v2 = vsel %vm726_vm1, %v3198_v1, 0.0 }
0x18eb   : > { %3202 = vadd.xlane.f32.xlu0 %v3201_v2 }
0x1978   : > { %v3203_v4 = vpop.xlane.xlu0 %3202 }
0x1979   : > { %v3204_v5 = vmul.f32 0.03125, %v3203_v4 }
0x197b   : > { %v3205_v7 = vsub.f32 %v3198_v1, %v3204_v5 }
0x197d   : > { %v3206_v10 = vmul.f32 %v3205_v7, %v3205_v7 }
0x197f   : > { %v3207_v12 = vsel %vm726_vm1, %v3206_v10, 0.0 }
0x1980   : > { %3208 = vadd.xlane.f32.xlu0 %v3207_v12 }
0x1a0d   : > { %v3209_v13 = vpop.xlane.xlu0 %3208 }
0x1a0e   : > { %v3210_v14 = vmul.f32 0.03125, %v3209_v13 }
0x1a10   : > { %v3211_v15 = vadd.f32 1e-05, %v3210_v14 }
0x1a12   : > { %3850 = vrsqrt.f32 %v3211_v15 }
0x1a1c   : > { %v3851_v16 = vpop.eup %3850 }
0x1a1d   : > { %v3213_v19 = vmul.f32 %v3851_v16, %v3205_v7 }
0x1a1f   : > { %v3220_v22 = vmul.f32 %v3359_v17, %v3213_v19 }
0x1a21   : > { %v3227_v25 = vadd.f32 %v3360_v21, %v3220_v22 }
0x1a23   : > { %3228 = vst.msk [vmem:[%s705_s29] sm:$0xff] %vm726_vm1, %v3227_v25 }
0x1a24 PF: > { %s39_s1 = sadd.s32 1, %s3872_s1  }
0x1a25   : > { %p36_p9 = scmp.ge.s32.totalorder %s39_s1, 4  }
0x1a27   :  { %38 = sbr.rel (!%p36_p9) target bundleno = 25 (0x19), region = 141 }

</bundles_post_ra>
